<compile_context>
chip_gen: v7x
topology: tpu7x:2x2x1
jax: 0.10.0
libtpu: 0.0.40
codegen_flags: <defaults>
</compile_context>

<pallas_src>
import functools

import jax
import jax.numpy as jnp
from jax.experimental import pallas as pl
from jax.experimental.pallas import tpu as pltpu


# ---------------------------------------------------------------------------
# Fused kernel: LSTM #1 -> SoftDotAttention -> LSTM #2 ; cls_net on ctx
# ---------------------------------------------------------------------------
def _fused_kernel(x_ref, feat_ref,
                  w_ih1_ref, w_hh1_ref, b1_ref,
                  w_ih2_ref, w_hh2_ref, b2_ref,
                  w_in_ref, w_out_c_ref, w_out_h_ref,
                  wc1_ref, bc1_ref, wc2_ref, bc2_ref, wc3_ref, bc3_ref,
                  x_out_ref, cls_out_ref,
                  ctx_ref):
    """One grid program = one contiguous slice of the batch.

    x_ref      : (Bb, L, F)  f32  action embeddings
    feat_ref   : (Nb, S, F)  f32  per-(b,t) view features, Nb = Bb*L
    weights    : bf16 (MXU operands); biases f32
    x_out_ref  : (Bb, L, H)  f32
    cls_out_ref: (Nb, 60)    f32
    ctx_ref    : (Bb, L, H)  f32 VMEM scratch holding LSTM #1 hidden states
    """
    Bb, L, H = x_out_ref.shape
    F = x_ref.shape[2]
    Nb = Bb * L

    def run_lstm(xw, w_hh_ref, store):
        """Fully unrolled recurrence. xw: (Bb, L, 4H) f32 pre-projected inputs
        (input projection + bias hoisted out of the loop).  `store(t, h)`
        writes the step-t hidden state straight to its destination (no hs
        list / concat / reshape epilogue)."""
        w_hh = w_hh_ref[...]                           # (H, 4H) bf16, hoisted
        h = jnp.zeros((Bb, H), jnp.float32)
        c = jnp.zeros((Bb, H), jnp.float32)
        for t in range(L):                             # static, fully unrolled
            gates = xw[:, t, :] + jnp.dot(h.astype(jnp.bfloat16), w_hh,
                                          preferred_element_type=jnp.float32)
            # Two full-vreg EUP pushes per step instead of four sub-vreg ones.
            sig = jax.nn.sigmoid(gates)                # i | f | . | o
            tnh = jnp.tanh(gates)                      # . | . | g | .
            i = sig[:, 0 * H:1 * H]
            f = sig[:, 1 * H:2 * H]
            g = tnh[:, 2 * H:3 * H]
            o = sig[:, 3 * H:4 * H]
            c = f * c + i * g
            h = o * jnp.tanh(c)
            store(t, h)
        # TODO(synk): hold w_hh in the MXU weight staging registers across the
        #             unrolled loop (pltpu.matmul_push_rhs / matmul_acc_lhs /
        #             matmul_pop) to drop the per-step RHS push from the serial
        #             critical path.

    # ---- LSTM #1 ------------------------------------------------------------
    x_nd = x_ref[...].reshape(Nb, F)
    xw1 = (jnp.dot(x_nd.astype(jnp.bfloat16), w_ih1_ref[...],
                   preferred_element_type=jnp.float32)
           + b1_ref[...]).reshape(Bb, L, 4 * H)

    def store_ctx(t, h):
        ctx_ref[:, t, :] = h

    run_lstm(xw1, w_hh1_ref, store_ctx)
    ctx_flat = ctx_ref[...].reshape(Nb, H)             # rows ordered (b, t)

    # ---- SoftDotAttention (linear_in, scores, softmax, weighted, linear_out) -
    feat = feat_ref[...]                               # (Nb, S, F) f32
    target = jnp.dot(ctx_flat.astype(jnp.bfloat16), w_in_ref[...],
                     preferred_element_type=jnp.float32)            # (Nb, F)
    # VPU multiply + XLU reduce instead of Nb serialized M=1 MXU matmuls.
    scores = jnp.sum(feat * target[:, None, :], axis=-1)            # (Nb, S)
    m = jnp.max(scores, axis=-1, keepdims=True)
    e = jnp.exp(scores - m)
    p = e * pl.reciprocal(jnp.sum(e, axis=-1, keepdims=True), approx=True)
    weighted = jnp.sum(p[:, :, None] * feat, axis=1)                 # (Nb, F)
    # linear_out on cat(weighted, h): weight pre-split -> two MXU matmuls.
    h_tilde = jnp.tanh(
        jnp.dot(weighted.astype(jnp.bfloat16), w_out_c_ref[...],
                preferred_element_type=jnp.float32)
        + jnp.dot(ctx_flat.astype(jnp.bfloat16), w_out_h_ref[...],
                  preferred_element_type=jnp.float32))               # (Nb, H)

    # ---- LSTM #2 (post_lstm): write h straight into the output block --------
    xw2 = (jnp.dot(h_tilde.astype(jnp.bfloat16), w_ih2_ref[...],
                   preferred_element_type=jnp.float32)
           + b2_ref[...]).reshape(Bb, L, 4 * H)

    def store_out(t, h):
        x_out_ref[:, t, :] = h

    run_lstm(xw2, w_hh2_ref, store_out)

    # ---- cls_net on ctx ------------------------------------------------------
    h1 = jnp.maximum(jnp.dot(ctx_flat.astype(jnp.bfloat16), wc1_ref[...],
                             preferred_element_type=jnp.float32) + bc1_ref[...], 0.0)
    h2 = jnp.maximum(jnp.dot(h1.astype(jnp.bfloat16), wc2_ref[...],
                             preferred_element_type=jnp.float32) + bc2_ref[...], 0.0)
    h3 = jnp.maximum(jnp.dot(h2.astype(jnp.bfloat16), wc3_ref[...],
                             preferred_element_type=jnp.float32) + bc3_ref[...], 0.0)
    cls_out_ref[...] = h3
    # TODO(synk): at production N (B*L in the thousands), tile attention/cls
    #             over N with a "parallel" grid axis, present lane-dense
    #             (multiple-of-128) output slabs, and re-derive tile sizes for
    #             v7x's 64 MiB VMEM (vs 128 MiB on v5e/v6e).


# ---------------------------------------------------------------------------
# Wrapper: one pallas_call; batch split over a "parallel" grid axis
# ---------------------------------------------------------------------------
def speaker_encoder_scenecls_forward(action_embeds, feature, lengths, params,
                                     already_dropfeat=False, batch_splits=None):
    # lengths is unused (as in the reference); dropouts are identity at inference.
    del lengths, already_dropfeat
    B, L, Fdim = action_embeds.shape
    S = feature.shape[2]
    N = B * L
    w_ih1, w_hh1, b1 = params["lstm"]
    w_ih2, w_hh2, b2 = params["post_lstm"]
    w_in, w_oc, w_oh = params["attn"]
    wc1, bc1, wc2, bc2, wc3, bc3 = params["cls"]
    H = w_oh.shape[0]
    C = wc3.shape[1]

    # Pure data split of the batch over grid programs; "parallel" lets v7x use
    # both TensorCores, and costs only ~0.35 us of grid overhead on 1-TC chips.
    if batch_splits is None:
        batch_splits = 2 if (B >= 2 and B % 2 == 0) else 1
    G = batch_splits
    assert B % G == 0, "batch must be divisible by batch_splits"
    Bb, Nb = B // G, (B // G) * L

    feat_flat = feature.reshape(N, S, Fdim)    # metadata-only reshape (contiguous)

    def bf16(w):                               # MXU operands in bf16, f32 accum
        return w.astype(jnp.bfloat16)

    def rep(arr):                              # weights/biases: same block each step
        nd = arr.ndim
        return pl.BlockSpec(arr.shape, lambda i, _nd=nd: (0,) * _nd)

    in_arrays = [action_embeds, feat_flat,
                 bf16(w_ih1), bf16(w_hh1), b1,
                 bf16(w_ih2), bf16(w_hh2), b2,
                 bf16(w_in), bf16(w_oc), bf16(w_oh),
                 bf16(wc1), bc1, bf16(wc2), bc2, bf16(wc3), bc3]
    in_specs = ([pl.BlockSpec((Bb, L, Fdim), lambda i: (i, 0, 0)),
                 pl.BlockSpec((Nb, S, Fdim), lambda i: (i, 0, 0))]
                + [rep(a) for a in in_arrays[2:]])

    x, cls_score = pl.pallas_call(
        _fused_kernel,
        out_shape=(jax.ShapeDtypeStruct((B, L, H), jnp.float32),
                   jax.ShapeDtypeStruct((N, C), jnp.float32)),
        grid_spec=pltpu.PrefetchScalarGridSpec(
            num_scalar_prefetch=0,
            grid=(G,),
            in_specs=in_specs,
            out_specs=[pl.BlockSpec((Bb, L, H), lambda i: (i, 0, 0)),
                       pl.BlockSpec((Nb, C), lambda i: (i, 0))],
            scratch_shapes=[pltpu.VMEM((Bb, L, H), jnp.float32)]),
        compiler_params=pltpu.CompilerParams(
            dimension_semantics=("parallel",)),
    )(*in_arrays)
    return x, cls_score


# ---------------------------------------------------------------------------
# Pure-JAX f32 reference (same parameter layout) for validation
# ---------------------------------------------------------------------------
def _reference_forward(action_embeds, feature, params):
    w_ih1, w_hh1, b1 = params["lstm"]
    w_ih2, w_hh2, b2 = params["post_lstm"]
    w_in, w_oc, w_oh = params["attn"]
    wc1, bc1, wc2, bc2, wc3, bc3 = params["cls"]
    B, L, F = action_embeds.shape
    H = w_oh.shape[0]
    N = B * L

    def lstm(x, w_ih, w_hh, b):
        h = jnp.zeros((B, H), jnp.float32)
        c = jnp.zeros((B, H), jnp.float32)
        hs = []
        for t in range(L):
            g = x[:, t, :] @ w_ih + b + h @ w_hh
            i = jax.nn.sigmoid(g[:, :H])
            f = jax.nn.sigmoid(g[:, H:2 * H])
            gg = jnp.tanh(g[:, 2 * H:3 * H])
            o = jax.nn.sigmoid(g[:, 3 * H:])
            c = f * c + i * gg
            h = o * jnp.tanh(c)
            hs.append(h)
        return jnp.stack(hs, axis=1)

    ctx = lstm(action_embeds, w_ih1, w_hh1, b1)
    ctxf = ctx.reshape(N, H)
    feat = feature.reshape(N, -1, F)
    target = ctxf @ w_in
    scores = jnp.einsum('nf,nsf->ns', target, feat)
    p = jax.nn.softmax(scores, axis=-1)
    weighted = jnp.einsum('ns,nsf->nf', p, feat)
    h_tilde = jnp.tanh(weighted @ w_oc + ctxf @ w_oh)
    x2 = lstm(h_tilde.reshape(B, L, H), w_ih2, w_hh2, b2)
    h1 = jax.nn.relu(ctxf @ wc1 + bc1)
    h2 = jax.nn.relu(h1 @ wc2 + bc2)
    cls = jax.nn.relu(h2 @ wc3 + bc3)
    return x2, cls


# ---------------------------------------------------------------------------
# Parameter initialization (deterministic, synthetic — not a checkpoint load)
# ---------------------------------------------------------------------------
def init_params(key, feature_size, hidden_size):
    ks = iter(jax.random.split(key, 20))

    def mat(k, shape):
        fan_in = shape[0]
        return (jax.random.normal(k, shape, jnp.float32)
                / jnp.sqrt(fan_in)).astype(jnp.float32)

    def bias(k, n):
        return 0.01 * jax.random.normal(k, (1, n), jnp.float32)

    H, F = hidden_size, feature_size
    return {
        # LSTM: W_ih (Din, 4H), W_hh (H, 4H), combined bias b_ih + b_hh (1, 4H)
        "lstm": (mat(next(ks), (F, 4 * H)), mat(next(ks), (H, 4 * H)),
                 bias(next(ks), 4 * H)),
        "post_lstm": (mat(next(ks), (H, 4 * H)), mat(next(ks), (H, 4 * H)),
                      bias(next(ks), 4 * H)),
        # Attention: linear_in (H->F, no bias); linear_out ((F+H)->H, no bias)
        # pre-split into the weighted-context part (F,H) and the h part (H,H).
        "attn": (mat(next(ks), (H, F)), mat(next(ks), (F, H)),
                 mat(next(ks), (H, H))),
        # cls_net: Linear(H,256)+ReLU -> Linear(256,128)+ReLU -> Linear(128,60)+ReLU
        "cls": (mat(next(ks), (H, 256)), bias(next(ks), 256),
                mat(next(ks), (256, 128)), bias(next(ks), 128),
                mat(next(ks), (128, 60)), bias(next(ks), 60)),
    }


if __name__ == "__main__":
    B, L, VIEWS = 2, 8, 36
    FEATURE_SIZE, HIDDEN_SIZE = 64, 32

    key = jax.random.PRNGKey(0)
    k_param, k_act, k_feat = jax.random.split(key, 3)

    params = init_params(k_param, FEATURE_SIZE, HIDDEN_SIZE)
    action_embeds = jax.random.normal(k_act, (B, L, FEATURE_SIZE), jnp.float32)
    feature = jax.random.normal(k_feat, (B, L, VIEWS, FEATURE_SIZE), jnp.float32)
    lengths = jnp.full((B,), L, jnp.int32)

    fwd = jax.jit(functools.partial(speaker_encoder_scenecls_forward,
                                    params=params))
    x, cls_score = fwd(action_embeds, feature, lengths)
    jax.block_until_ready(x)
    jax.block_until_ready(cls_score)

    assert x.shape == (B, L, HIDDEN_SIZE), x.shape
    assert cls_score.shape == (B * L, 60), cls_score.shape
    assert bool(jnp.all(jnp.isfinite(x))) and bool(jnp.all(jnp.isfinite(cls_score)))

    # Loose tolerance: kernel uses bf16 MXU operands + approx softmax reciprocal.
    x_ref, cls_ref = _reference_forward(action_embeds, feature, params)
    assert float(jnp.max(jnp.abs(x - x_ref))) < 1e-1, "post_lstm output mismatch"
    assert float(jnp.max(jnp.abs(cls_score - cls_ref))) < 1e-1, "cls output mismatch"

    print("KERNEL_OK")
</pallas_src>

<mosaic_0001>
module attributes {stable_mosaic.version = 11 : i64} {
  func.func @_fused_kernel(%arg0: i32, %arg1: memref<1x8x64xf32, #tpu.memory_space<vmem>>, %arg2: memref<8x36x64xf32, #tpu.memory_space<vmem>>, %arg3: memref<64x128xbf16, #tpu.memory_space<vmem>>, %arg4: memref<32x128xbf16, #tpu.memory_space<vmem>>, %arg5: memref<1x128xf32, #tpu.memory_space<vmem>>, %arg6: memref<32x128xbf16, #tpu.memory_space<vmem>>, %arg7: memref<32x128xbf16, #tpu.memory_space<vmem>>, %arg8: memref<1x128xf32, #tpu.memory_space<vmem>>, %arg9: memref<32x64xbf16, #tpu.memory_space<vmem>>, %arg10: memref<64x32xbf16, #tpu.memory_space<vmem>>, %arg11: memref<32x32xbf16, #tpu.memory_space<vmem>>, %arg12: memref<32x256xbf16, #tpu.memory_space<vmem>>, %arg13: memref<1x256xf32, #tpu.memory_space<vmem>>, %arg14: memref<256x128xbf16, #tpu.memory_space<vmem>>, %arg15: memref<1x128xf32, #tpu.memory_space<vmem>>, %arg16: memref<128x60xbf16, #tpu.memory_space<vmem>>, %arg17: memref<1x60xf32, #tpu.memory_space<vmem>>, %arg18: memref<1x8x32xf32, #tpu.memory_space<vmem>>, %arg19: memref<8x60xf32, #tpu.memory_space<vmem>>, %arg20: memref<1x8x32xf32, #tpu.memory_space<vmem>>) attributes {dimension_semantics = [#tpu.dimension_semantics<parallel>], iteration_bounds = array<i64: 2>, scalar_prefetch = 0 : i64, scratch_operands = 1 : i64, tpu.core_type = #tpu.core_type<tc>, window_params = [{transform_indices = @transform_0, window_bounds = array<i64: 1, 8, 64>}, {transform_indices = @transform_1, window_bounds = array<i64: 8, 36, 64>}, {pipeline_mode = #tpu.pipeline_mode<synchronous>, transform_indices = @transform_2, window_bounds = array<i64: 64, 128>}, {pipeline_mode = #tpu.pipeline_mode<synchronous>, transform_indices = @transform_3, window_bounds = array<i64: 32, 128>}, {pipeline_mode = #tpu.pipeline_mode<synchronous>, transform_indices = @transform_4, window_bounds = array<i64: 1, 128>}, {pipeline_mode = #tpu.pipeline_mode<synchronous>, transform_indices = @transform_5, window_bounds = array<i64: 32, 128>}, {pipeline_mode = #tpu.pipeline_mode<synchronous>, transform_indices = @transform_6, window_bounds = array<i64: 32, 128>}, {pipeline_mode = #tpu.pipeline_mode<synchronous>, transform_indices = @transform_7, window_bounds = array<i64: 1, 128>}, {pipeline_mode = #tpu.pipeline_mode<synchronous>, transform_indices = @transform_8, window_bounds = array<i64: 32, 64>}, {pipeline_mode = #tpu.pipeline_mode<synchronous>, transform_indices = @transform_9, window_bounds = array<i64: 64, 32>}, {pipeline_mode = #tpu.pipeline_mode<synchronous>, transform_indices = @transform_10, window_bounds = array<i64: 32, 32>}, {pipeline_mode = #tpu.pipeline_mode<synchronous>, transform_indices = @transform_11, window_bounds = array<i64: 32, 256>}, {pipeline_mode = #tpu.pipeline_mode<synchronous>, transform_indices = @transform_12, window_bounds = array<i64: 1, 256>}, {pipeline_mode = #tpu.pipeline_mode<synchronous>, transform_indices = @transform_13, window_bounds = array<i64: 256, 128>}, {pipeline_mode = #tpu.pipeline_mode<synchronous>, transform_indices = @transform_14, window_bounds = array<i64: 1, 128>}, {pipeline_mode = #tpu.pipeline_mode<synchronous>, transform_indices = @transform_15, window_bounds = array<i64: 128, 60>}, {pipeline_mode = #tpu.pipeline_mode<synchronous>, transform_indices = @transform_16, window_bounds = array<i64: 1, 60>}, {transform_indices = @transform_17, window_bounds = array<i64: 1, 8, 32>}, {transform_indices = @transform_18, window_bounds = array<i64: 8, 60>}]} {
    %c0 = arith.constant 0 : index
    %c0_0 = arith.constant 0 : index
    %c0_1 = arith.constant 0 : index
    %0 = vector.load %arg1[%c0, %c0_0, %c0_1] : memref<1x8x64xf32, #tpu.memory_space<vmem>>, vector<1x8x64xf32>
    %1 = vector.shape_cast %0 : vector<1x8x64xf32> to vector<8x64xf32>
    %2 = arith.truncf %1 : vector<8x64xf32> to vector<8x64xbf16>
    %c0_2 = arith.constant 0 : index
    %c0_3 = arith.constant 0 : index
    %3 = vector.load %arg3[%c0_2, %c0_3] : memref<64x128xbf16, #tpu.memory_space<vmem>>, vector<64x128xbf16>
    %cst = arith.constant dense<0.000000e+00> : vector<8x128xf32>
    %4 = tpu.matmul %2, %3, %cst {dimension_numbers = #tpu.dot_dimension_numbers<[1], [0], [0], [1], [0, 0, 1, 1], [], []>} : vector<8x64xbf16>, vector<64x128xbf16>, vector<8x128xf32> -> vector<8x128xf32>
    %c0_4 = arith.constant 0 : index
    %c0_5 = arith.constant 0 : index
    %5 = vector.load %arg5[%c0_4, %c0_5] : memref<1x128xf32, #tpu.memory_space<vmem>>, vector<1x128xf32>
    %6 = vector.broadcast %5 : vector<1x128xf32> to vector<8x128xf32>
    %7 = arith.addf %4, %6 : vector<8x128xf32>
    %8 = vector.shape_cast %7 : vector<8x128xf32> to vector<1x8x128xf32>
    %c0_6 = arith.constant 0 : index
    %c0_7 = arith.constant 0 : index
    %9 = vector.load %arg4[%c0_6, %c0_7] : memref<32x128xbf16, #tpu.memory_space<vmem>>, vector<32x128xbf16>
    %cst_8 = arith.constant 0.000000e+00 : f32
    %10 = vector.broadcast %cst_8 : f32 to vector<1x32xf32>
    %cst_9 = arith.constant 0.000000e+00 : f32
    %11 = vector.broadcast %cst_9 : f32 to vector<1x32xf32>
    %12 = vector.extract_strided_slice %8 {offsets = [0, 0, 0], sizes = [1, 1, 128], strides = [1, 1, 1]} : vector<1x8x128xf32> to vector<1x1x128xf32>
    %13 = vector.shape_cast %12 : vector<1x1x128xf32> to vector<1x128xf32>
    %14 = arith.truncf %10 : vector<1x32xf32> to vector<1x32xbf16>
    %cst_10 = arith.constant dense<0.000000e+00> : vector<1x128xf32>
    %15 = tpu.matmul %14, %9, %cst_10 {dimension_numbers = #tpu.dot_dimension_numbers<[1], [0], [0], [1], [0, 0, 1, 1], [], []>} : vector<1x32xbf16>, vector<32x128xbf16>, vector<1x128xf32> -> vector<1x128xf32>
    %16 = arith.addf %13, %15 : vector<1x128xf32>
    %17 = arith.negf %16 : vector<1x128xf32>
    %18 = math.exp %17 : vector<1x128xf32>
    %cst_11 = arith.constant 1.000000e+00 : f32
    %19 = vector.broadcast %cst_11 : f32 to vector<1x128xf32>
    %20 = arith.addf %19, %18 : vector<1x128xf32>
    %21 = arith.divf %19, %20 : vector<1x128xf32>
    %22 = math.tanh %16 : vector<1x128xf32>
    %23 = vector.extract_strided_slice %21 {offsets = [0, 0], sizes = [1, 32], strides = [1, 1]} : vector<1x128xf32> to vector<1x32xf32>
    %24 = vector.extract_strided_slice %21 {offsets = [0, 32], sizes = [1, 32], strides = [1, 1]} : vector<1x128xf32> to vector<1x32xf32>
    %25 = vector.extract_strided_slice %22 {offsets = [0, 64], sizes = [1, 32], strides = [1, 1]} : vector<1x128xf32> to vector<1x32xf32>
    %26 = vector.extract_strided_slice %21 {offsets = [0, 96], sizes = [1, 32], strides = [1, 1]} : vector<1x128xf32> to vector<1x32xf32>
    %27 = arith.mulf %24, %11 : vector<1x32xf32>
    %28 = arith.mulf %23, %25 : vector<1x32xf32>
    %29 = arith.addf %27, %28 : vector<1x32xf32>
    %30 = math.tanh %29 : vector<1x32xf32>
    %31 = arith.mulf %26, %30 : vector<1x32xf32>
    %c0_12 = arith.constant 0 : index
    %c0_13 = arith.constant 0 : index
    %c0_14 = arith.constant 0 : index
    %32 = vector.load %arg20[%c0_12, %c0_13, %c0_14] : memref<1x8x32xf32, #tpu.memory_space<vmem>>, vector<1x1x32xf32>
    %33 = vector.shape_cast %32 : vector<1x1x32xf32> to vector<1x32xf32>
    %34 = vector.shape_cast %31 : vector<1x32xf32> to vector<1x1x32xf32>
    tpu.vector_store %arg20[%c0_12, %c0_13, %c0_14], %34 {strides = array<i32>} : memref<1x8x32xf32, #tpu.memory_space<vmem>>, vector<1x1x32xf32>,
    %35 = vector.extract_strided_slice %8 {offsets = [0, 1, 0], sizes = [1, 1, 128], strides = [1, 1, 1]} : vector<1x8x128xf32> to vector<1x1x128xf32>
    %36 = vector.shape_cast %35 : vector<1x1x128xf32> to vector<1x128xf32>
    %37 = arith.truncf %31 : vector<1x32xf32> to vector<1x32xbf16>
    %cst_15 = arith.constant dense<0.000000e+00> : vector<1x128xf32>
    %38 = tpu.matmul %37, %9, %cst_15 {dimension_numbers = #tpu.dot_dimension_numbers<[1], [0], [0], [1], [0, 0, 1, 1], [], []>} : vector<1x32xbf16>, vector<32x128xbf16>, vector<1x128xf32> -> vector<1x128xf32>
    %39 = arith.addf %36, %38 : vector<1x128xf32>
    %40 = arith.negf %39 : vector<1x128xf32>
    %41 = math.exp %40 : vector<1x128xf32>
    %cst_16 = arith.constant 1.000000e+00 : f32
    %42 = vector.broadcast %cst_16 : f32 to vector<1x128xf32>
    %43 = arith.addf %42, %41 : vector<1x128xf32>
    %44 = arith.divf %42, %43 : vector<1x128xf32>
    %45 = math.tanh %39 : vector<1x128xf32>
    %46 = vector.extract_strided_slice %44 {offsets = [0, 0], sizes = [1, 32], strides = [1, 1]} : vector<1x128xf32> to vector<1x32xf32>
    %47 = vector.extract_strided_slice %44 {offsets = [0, 32], sizes = [1, 32], strides = [1, 1]} : vector<1x128xf32> to vector<1x32xf32>
    %48 = vector.extract_strided_slice %45 {offsets = [0, 64], sizes = [1, 32], strides = [1, 1]} : vector<1x128xf32> to vector<1x32xf32>
    %49 = vector.extract_strided_slice %44 {offsets = [0, 96], sizes = [1, 32], strides = [1, 1]} : vector<1x128xf32> to vector<1x32xf32>
    %50 = arith.mulf %47, %29 : vector<1x32xf32>
    %51 = arith.mulf %46, %48 : vector<1x32xf32>
    %52 = arith.addf %50, %51 : vector<1x32xf32>
    %53 = math.tanh %52 : vector<1x32xf32>
    %54 = arith.mulf %49, %53 : vector<1x32xf32>
    %c0_17 = arith.constant 0 : index
    %c1 = arith.constant 1 : index
    %c0_18 = arith.constant 0 : index
    %55 = vector.load %arg20[%c0_17, %c1, %c0_18] : memref<1x8x32xf32, #tpu.memory_space<vmem>>, vector<1x1x32xf32>
    %56 = vector.shape_cast %55 : vector<1x1x32xf32> to vector<1x32xf32>
    %57 = vector.shape_cast %54 : vector<1x32xf32> to vector<1x1x32xf32>
    tpu.vector_store %arg20[%c0_17, %c1, %c0_18], %57 {strides = array<i32>} : memref<1x8x32xf32, #tpu.memory_space<vmem>>, vector<1x1x32xf32>,
    %58 = vector.extract_strided_slice %8 {offsets = [0, 2, 0], sizes = [1, 1, 128], strides = [1, 1, 1]} : vector<1x8x128xf32> to vector<1x1x128xf32>
    %59 = vector.shape_cast %58 : vector<1x1x128xf32> to vector<1x128xf32>
    %60 = arith.truncf %54 : vector<1x32xf32> to vector<1x32xbf16>
    %cst_19 = arith.constant dense<0.000000e+00> : vector<1x128xf32>
    %61 = tpu.matmul %60, %9, %cst_19 {dimension_numbers = #tpu.dot_dimension_numbers<[1], [0], [0], [1], [0, 0, 1, 1], [], []>} : vector<1x32xbf16>, vector<32x128xbf16>, vector<1x128xf32> -> vector<1x128xf32>
    %62 = arith.addf %59, %61 : vector<1x128xf32>
    %63 = arith.negf %62 : vector<1x128xf32>
    %64 = math.exp %63 : vector<1x128xf32>
    %cst_20 = arith.constant 1.000000e+00 : f32
    %65 = vector.broadcast %cst_20 : f32 to vector<1x128xf32>
    %66 = arith.addf %65, %64 : vector<1x128xf32>
    %67 = arith.divf %65, %66 : vector<1x128xf32>
    %68 = math.tanh %62 : vector<1x128xf32>
    %69 = vector.extract_strided_slice %67 {offsets = [0, 0], sizes = [1, 32], strides = [1, 1]} : vector<1x128xf32> to vector<1x32xf32>
    %70 = vector.extract_strided_slice %67 {offsets = [0, 32], sizes = [1, 32], strides = [1, 1]} : vector<1x128xf32> to vector<1x32xf32>
    %71 = vector.extract_strided_slice %68 {offsets = [0, 64], sizes = [1, 32], strides = [1, 1]} : vector<1x128xf32> to vector<1x32xf32>
    %72 = vector.extract_strided_slice %67 {offsets = [0, 96], sizes = [1, 32], strides = [1, 1]} : vector<1x128xf32> to vector<1x32xf32>
    %73 = arith.mulf %70, %52 : vector<1x32xf32>
    %74 = arith.mulf %69, %71 : vector<1x32xf32>
    %75 = arith.addf %73, %74 : vector<1x32xf32>
    %76 = math.tanh %75 : vector<1x32xf32>
    %77 = arith.mulf %72, %76 : vector<1x32xf32>
    %c0_21 = arith.constant 0 : index
    %c2 = arith.constant 2 : index
    %c0_22 = arith.constant 0 : index
    %78 = vector.load %arg20[%c0_21, %c2, %c0_22] : memref<1x8x32xf32, #tpu.memory_space<vmem>>, vector<1x1x32xf32>
    %79 = vector.shape_cast %78 : vector<1x1x32xf32> to vector<1x32xf32>
    %80 = vector.shape_cast %77 : vector<1x32xf32> to vector<1x1x32xf32>
    tpu.vector_store %arg20[%c0_21, %c2, %c0_22], %80 {strides = array<i32>} : memref<1x8x32xf32, #tpu.memory_space<vmem>>, vector<1x1x32xf32>,
    %81 = vector.extract_strided_slice %8 {offsets = [0, 3, 0], sizes = [1, 1, 128], strides = [1, 1, 1]} : vector<1x8x128xf32> to vector<1x1x128xf32>
    %82 = vector.shape_cast %81 : vector<1x1x128xf32> to vector<1x128xf32>
    %83 = arith.truncf %77 : vector<1x32xf32> to vector<1x32xbf16>
    %cst_23 = arith.constant dense<0.000000e+00> : vector<1x128xf32>
    %84 = tpu.matmul %83, %9, %cst_23 {dimension_numbers = #tpu.dot_dimension_numbers<[1], [0], [0], [1], [0, 0, 1, 1], [], []>} : vector<1x32xbf16>, vector<32x128xbf16>, vector<1x128xf32> -> vector<1x128xf32>
    %85 = arith.addf %82, %84 : vector<1x128xf32>
    %86 = arith.negf %85 : vector<1x128xf32>
    %87 = math.exp %86 : vector<1x128xf32>
    %cst_24 = arith.constant 1.000000e+00 : f32
    %88 = vector.broadcast %cst_24 : f32 to vector<1x128xf32>
    %89 = arith.addf %88, %87 : vector<1x128xf32>
    %90 = arith.divf %88, %89 : vector<1x128xf32>
    %91 = math.tanh %85 : vector<1x128xf32>
    %92 = vector.extract_strided_slice %90 {offsets = [0, 0], sizes = [1, 32], strides = [1, 1]} : vector<1x128xf32> to vector<1x32xf32>
    %93 = vector.extract_strided_slice %90 {offsets = [0, 32], sizes = [1, 32], strides = [1, 1]} : vector<1x128xf32> to vector<1x32xf32>
    %94 = vector.extract_strided_slice %91 {offsets = [0, 64], sizes = [1, 32], strides = [1, 1]} : vector<1x128xf32> to vector<1x32xf32>
    %95 = vector.extract_strided_slice %90 {offsets = [0, 96], sizes = [1, 32], strides = [1, 1]} : vector<1x128xf32> to vector<1x32xf32>
    %96 = arith.mulf %93, %75 : vector<1x32xf32>
    %97 = arith.mulf %92, %94 : vector<1x32xf32>
    %98 = arith.addf %96, %97 : vector<1x32xf32>
    %99 = math.tanh %98 : vector<1x32xf32>
    %100 = arith.mulf %95, %99 : vector<1x32xf32>
    %c0_25 = arith.constant 0 : index
    %c3 = arith.constant 3 : index
    %c0_26 = arith.constant 0 : index
    %101 = vector.load %arg20[%c0_25, %c3, %c0_26] : memref<1x8x32xf32, #tpu.memory_space<vmem>>, vector<1x1x32xf32>
    %102 = vector.shape_cast %101 : vector<1x1x32xf32> to vector<1x32xf32>
    %103 = vector.shape_cast %100 : vector<1x32xf32> to vector<1x1x32xf32>
    tpu.vector_store %arg20[%c0_25, %c3, %c0_26], %103 {strides = array<i32>} : memref<1x8x32xf32, #tpu.memory_space<vmem>>, vector<1x1x32xf32>,
    %104 = vector.extract_strided_slice %8 {offsets = [0, 4, 0], sizes = [1, 1, 128], strides = [1, 1, 1]} : vector<1x8x128xf32> to vector<1x1x128xf32>
    %105 = vector.shape_cast %104 : vector<1x1x128xf32> to vector<1x128xf32>
    %106 = arith.truncf %100 : vector<1x32xf32> to vector<1x32xbf16>
    %cst_27 = arith.constant dense<0.000000e+00> : vector<1x128xf32>
    %107 = tpu.matmul %106, %9, %cst_27 {dimension_numbers = #tpu.dot_dimension_numbers<[1], [0], [0], [1], [0, 0, 1, 1], [], []>} : vector<1x32xbf16>, vector<32x128xbf16>, vector<1x128xf32> -> vector<1x128xf32>
    %108 = arith.addf %105, %107 : vector<1x128xf32>
    %109 = arith.negf %108 : vector<1x128xf32>
    %110 = math.exp %109 : vector<1x128xf32>
    %cst_28 = arith.constant 1.000000e+00 : f32
    %111 = vector.broadcast %cst_28 : f32 to vector<1x128xf32>
    %112 = arith.addf %111, %110 : vector<1x128xf32>
    %113 = arith.divf %111, %112 : vector<1x128xf32>
    %114 = math.tanh %108 : vector<1x128xf32>
    %115 = vector.extract_strided_slice %113 {offsets = [0, 0], sizes = [1, 32], strides = [1, 1]} : vector<1x128xf32> to vector<1x32xf32>
    %116 = vector.extract_strided_slice %113 {offsets = [0, 32], sizes = [1, 32], strides = [1, 1]} : vector<1x128xf32> to vector<1x32xf32>
    %117 = vector.extract_strided_slice %114 {offsets = [0, 64], sizes = [1, 32], strides = [1, 1]} : vector<1x128xf32> to vector<1x32xf32>
    %118 = vector.extract_strided_slice %113 {offsets = [0, 96], sizes = [1, 32], strides = [1, 1]} : vector<1x128xf32> to vector<1x32xf32>
    %119 = arith.mulf %116, %98 : vector<1x32xf32>
    %120 = arith.mulf %115, %117 : vector<1x32xf32>
    %121 = arith.addf %119, %120 : vector<1x32xf32>
    %122 = math.tanh %121 : vector<1x32xf32>
    %123 = arith.mulf %118, %122 : vector<1x32xf32>
    %c0_29 = arith.constant 0 : index
    %c4 = arith.constant 4 : index
    %c0_30 = arith.constant 0 : index
    %124 = vector.load %arg20[%c0_29, %c4, %c0_30] : memref<1x8x32xf32, #tpu.memory_space<vmem>>, vector<1x1x32xf32>
    %125 = vector.shape_cast %124 : vector<1x1x32xf32> to vector<1x32xf32>
    %126 = vector.shape_cast %123 : vector<1x32xf32> to vector<1x1x32xf32>
    tpu.vector_store %arg20[%c0_29, %c4, %c0_30], %126 {strides = array<i32>} : memref<1x8x32xf32, #tpu.memory_space<vmem>>, vector<1x1x32xf32>,
    %127 = vector.extract_strided_slice %8 {offsets = [0, 5, 0], sizes = [1, 1, 128], strides = [1, 1, 1]} : vector<1x8x128xf32> to vector<1x1x128xf32>
    %128 = vector.shape_cast %127 : vector<1x1x128xf32> to vector<1x128xf32>
    %129 = arith.truncf %123 : vector<1x32xf32> to vector<1x32xbf16>
    %cst_31 = arith.constant dense<0.000000e+00> : vector<1x128xf32>
    %130 = tpu.matmul %129, %9, %cst_31 {dimension_numbers = #tpu.dot_dimension_numbers<[1], [0], [0], [1], [0, 0, 1, 1], [], []>} : vector<1x32xbf16>, vector<32x128xbf16>, vector<1x128xf32> -> vector<1x128xf32>
    %131 = arith.addf %128, %130 : vector<1x128xf32>
    %132 = arith.negf %131 : vector<1x128xf32>
    %133 = math.exp %132 : vector<1x128xf32>
    %cst_32 = arith.constant 1.000000e+00 : f32
    %134 = vector.broadcast %cst_32 : f32 to vector<1x128xf32>
    %135 = arith.addf %134, %133 : vector<1x128xf32>
    %136 = arith.divf %134, %135 : vector<1x128xf32>
    %137 = math.tanh %131 : vector<1x128xf32>
    %138 = vector.extract_strided_slice %136 {offsets = [0, 0], sizes = [1, 32], strides = [1, 1]} : vector<1x128xf32> to vector<1x32xf32>
    %139 = vector.extract_strided_slice %136 {offsets = [0, 32], sizes = [1, 32], strides = [1, 1]} : vector<1x128xf32> to vector<1x32xf32>
    %140 = vector.extract_strided_slice %137 {offsets = [0, 64], sizes = [1, 32], strides = [1, 1]} : vector<1x128xf32> to vector<1x32xf32>
    %141 = vector.extract_strided_slice %136 {offsets = [0, 96], sizes = [1, 32], strides = [1, 1]} : vector<1x128xf32> to vector<1x32xf32>
    %142 = arith.mulf %139, %121 : vector<1x32xf32>
    %143 = arith.mulf %138, %140 : vector<1x32xf32>
    %144 = arith.addf %142, %143 : vector<1x32xf32>
    %145 = math.tanh %144 : vector<1x32xf32>
    %146 = arith.mulf %141, %145 : vector<1x32xf32>
    %c0_33 = arith.constant 0 : index
    %c5 = arith.constant 5 : index
    %c0_34 = arith.constant 0 : index
    %147 = vector.load %arg20[%c0_33, %c5, %c0_34] : memref<1x8x32xf32, #tpu.memory_space<vmem>>, vector<1x1x32xf32>
    %148 = vector.shape_cast %147 : vector<1x1x32xf32> to vector<1x32xf32>
    %149 = vector.shape_cast %146 : vector<1x32xf32> to vector<1x1x32xf32>
    tpu.vector_store %arg20[%c0_33, %c5, %c0_34], %149 {strides = array<i32>} : memref<1x8x32xf32, #tpu.memory_space<vmem>>, vector<1x1x32xf32>,
    %150 = vector.extract_strided_slice %8 {offsets = [0, 6, 0], sizes = [1, 1, 128], strides = [1, 1, 1]} : vector<1x8x128xf32> to vector<1x1x128xf32>
    %151 = vector.shape_cast %150 : vector<1x1x128xf32> to vector<1x128xf32>
    %152 = arith.truncf %146 : vector<1x32xf32> to vector<1x32xbf16>
    %cst_35 = arith.constant dense<0.000000e+00> : vector<1x128xf32>
    %153 = tpu.matmul %152, %9, %cst_35 {dimension_numbers = #tpu.dot_dimension_numbers<[1], [0], [0], [1], [0, 0, 1, 1], [], []>} : vector<1x32xbf16>, vector<32x128xbf16>, vector<1x128xf32> -> vector<1x128xf32>
    %154 = arith.addf %151, %153 : vector<1x128xf32>
    %155 = arith.negf %154 : vector<1x128xf32>
    %156 = math.exp %155 : vector<1x128xf32>
    %cst_36 = arith.constant 1.000000e+00 : f32
    %157 = vector.broadcast %cst_36 : f32 to vector<1x128xf32>
    %158 = arith.addf %157, %156 : vector<1x128xf32>
    %159 = arith.divf %157, %158 : vector<1x128xf32>
    %160 = math.tanh %154 : vector<1x128xf32>
    %161 = vector.extract_strided_slice %159 {offsets = [0, 0], sizes = [1, 32], strides = [1, 1]} : vector<1x128xf32> to vector<1x32xf32>
    %162 = vector.extract_strided_slice %159 {offsets = [0, 32], sizes = [1, 32], strides = [1, 1]} : vector<1x128xf32> to vector<1x32xf32>
    %163 = vector.extract_strided_slice %160 {offsets = [0, 64], sizes = [1, 32], strides = [1, 1]} : vector<1x128xf32> to vector<1x32xf32>
    %164 = vector.extract_strided_slice %159 {offsets = [0, 96], sizes = [1, 32], strides = [1, 1]} : vector<1x128xf32> to vector<1x32xf32>
    %165 = arith.mulf %162, %144 : vector<1x32xf32>
    %166 = arith.mulf %161, %163 : vector<1x32xf32>
    %167 = arith.addf %165, %166 : vector<1x32xf32>
    %168 = math.tanh %167 : vector<1x32xf32>
    %169 = arith.mulf %164, %168 : vector<1x32xf32>
    %c0_37 = arith.constant 0 : index
    %c6 = arith.constant 6 : index
    %c0_38 = arith.constant 0 : index
    %170 = vector.load %arg20[%c0_37, %c6, %c0_38] : memref<1x8x32xf32, #tpu.memory_space<vmem>>, vector<1x1x32xf32>
    %171 = vector.shape_cast %170 : vector<1x1x32xf32> to vector<1x32xf32>
    %172 = vector.shape_cast %169 : vector<1x32xf32> to vector<1x1x32xf32>
    tpu.vector_store %arg20[%c0_37, %c6, %c0_38], %172 {strides = array<i32>} : memref<1x8x32xf32, #tpu.memory_space<vmem>>, vector<1x1x32xf32>,
    %173 = vector.extract_strided_slice %8 {offsets = [0, 7, 0], sizes = [1, 1, 128], strides = [1, 1, 1]} : vector<1x8x128xf32> to vector<1x1x128xf32>
    %174 = vector.shape_cast %173 : vector<1x1x128xf32> to vector<1x128xf32>
    %175 = arith.truncf %169 : vector<1x32xf32> to vector<1x32xbf16>
    %cst_39 = arith.constant dense<0.000000e+00> : vector<1x128xf32>
    %176 = tpu.matmul %175, %9, %cst_39 {dimension_numbers = #tpu.dot_dimension_numbers<[1], [0], [0], [1], [0, 0, 1, 1], [], []>} : vector<1x32xbf16>, vector<32x128xbf16>, vector<1x128xf32> -> vector<1x128xf32>
    %177 = arith.addf %174, %176 : vector<1x128xf32>
    %178 = arith.negf %177 : vector<1x128xf32>
    %179 = math.exp %178 : vector<1x128xf32>
    %cst_40 = arith.constant 1.000000e+00 : f32
    %180 = vector.broadcast %cst_40 : f32 to vector<1x128xf32>
    %181 = arith.addf %180, %179 : vector<1x128xf32>
    %182 = arith.divf %180, %181 : vector<1x128xf32>
    %183 = math.tanh %177 : vector<1x128xf32>
    %184 = vector.extract_strided_slice %182 {offsets = [0, 0], sizes = [1, 32], strides = [1, 1]} : vector<1x128xf32> to vector<1x32xf32>
    %185 = vector.extract_strided_slice %182 {offsets = [0, 32], sizes = [1, 32], strides = [1, 1]} : vector<1x128xf32> to vector<1x32xf32>
    %186 = vector.extract_strided_slice %183 {offsets = [0, 64], sizes = [1, 32], strides = [1, 1]} : vector<1x128xf32> to vector<1x32xf32>
    %187 = vector.extract_strided_slice %182 {offsets = [0, 96], sizes = [1, 32], strides = [1, 1]} : vector<1x128xf32> to vector<1x32xf32>
    %188 = arith.mulf %185, %167 : vector<1x32xf32>
    %189 = arith.mulf %184, %186 : vector<1x32xf32>
    %190 = arith.addf %188, %189 : vector<1x32xf32>
    %191 = math.tanh %190 : vector<1x32xf32>
    %192 = arith.mulf %187, %191 : vector<1x32xf32>
    %c0_41 = arith.constant 0 : index
    %c7 = arith.constant 7 : index
    %c0_42 = arith.constant 0 : index
    %193 = vector.load %arg20[%c0_41, %c7, %c0_42] : memref<1x8x32xf32, #tpu.memory_space<vmem>>, vector<1x1x32xf32>
    %194 = vector.shape_cast %193 : vector<1x1x32xf32> to vector<1x32xf32>
    %195 = vector.shape_cast %192 : vector<1x32xf32> to vector<1x1x32xf32>
    tpu.vector_store %arg20[%c0_41, %c7, %c0_42], %195 {strides = array<i32>} : memref<1x8x32xf32, #tpu.memory_space<vmem>>, vector<1x1x32xf32>,
    %c0_43 = arith.constant 0 : index
    %c0_44 = arith.constant 0 : index
    %c0_45 = arith.constant 0 : index
    %196 = vector.load %arg20[%c0_43, %c0_44, %c0_45] : memref<1x8x32xf32, #tpu.memory_space<vmem>>, vector<1x8x32xf32>
    %197 = vector.shape_cast %196 : vector<1x8x32xf32> to vector<8x32xf32>
    %c0_46 = arith.constant 0 : index
    %c0_47 = arith.constant 0 : index
    %c0_48 = arith.constant 0 : index
    %198 = vector.load %arg2[%c0_46, %c0_47, %c0_48] : memref<8x36x64xf32, #tpu.memory_space<vmem>>, vector<8x36x64xf32>
    %199 = arith.truncf %197 : vector<8x32xf32> to vector<8x32xbf16>
    %c0_49 = arith.constant 0 : index
    %c0_50 = arith.constant 0 : index
    %200 = vector.load %arg9[%c0_49, %c0_50] : memref<32x64xbf16, #tpu.memory_space<vmem>>, vector<32x64xbf16>
    %cst_51 = arith.constant dense<0.000000e+00> : vector<8x64xf32>
    %201 = tpu.matmul %199, %200, %cst_51 {dimension_numbers = #tpu.dot_dimension_numbers<[1], [0], [0], [1], [0, 0, 1, 1], [], []>} : vector<8x32xbf16>, vector<32x64xbf16>, vector<8x64xf32> -> vector<8x64xf32>
    %202 = vector.shape_cast %201 : vector<8x64xf32> to vector<8x1x64xf32>
    %203 = vector.broadcast %202 : vector<8x1x64xf32> to vector<8x36x64xf32>
    %204 = arith.mulf %198, %203 : vector<8x36x64xf32>
    %cst_52 = arith.constant dense<0.000000e+00> : vector<8x36xf32>
    %205 = vector.multi_reduction <add>, %204, %cst_52 [2] : vector<8x36x64xf32> to vector<8x36xf32>
    %cst_53 = arith.constant dense<0xFF800000> : vector<8xf32>
    %206 = vector.multi_reduction <maximumf>, %205, %cst_53 [1] : vector<8x36xf32> to vector<8xf32>
    %207 = vector.shape_cast %206 : vector<8xf32> to vector<8x1xf32>
    %208 = vector.broadcast %207 : vector<8x1xf32> to vector<8x36xf32>
    %209 = arith.subf %205, %208 : vector<8x36xf32>
    %210 = math.exp %209 : vector<8x36xf32>
    %cst_54 = arith.constant dense<0.000000e+00> : vector<8xf32>
    %211 = vector.multi_reduction <add>, %210, %cst_54 [1] : vector<8x36xf32> to vector<8xf32>
    %212 = vector.shape_cast %211 : vector<8xf32> to vector<8x1xf32>
    %213 = tpu.reciprocal %212 {approx = true} : vector<8x1xf32> -> vector<8x1xf32>
    %214 = vector.broadcast %213 : vector<8x1xf32> to vector<8x36xf32>
    %215 = arith.mulf %210, %214 : vector<8x36xf32>
    %216 = vector.shape_cast %215 : vector<8x36xf32> to vector<8x36x1xf32>
    %217 = vector.broadcast %216 : vector<8x36x1xf32> to vector<8x36x64xf32>
    %218 = arith.mulf %217, %198 : vector<8x36x64xf32>
    %cst_55 = arith.constant dense<0.000000e+00> : vector<8x64xf32>
    %219 = vector.multi_reduction <add>, %218, %cst_55 [1] : vector<8x36x64xf32> to vector<8x64xf32>
    %220 = arith.truncf %219 : vector<8x64xf32> to vector<8x64xbf16>
    %c0_56 = arith.constant 0 : index
    %c0_57 = arith.constant 0 : index
    %221 = vector.load %arg10[%c0_56, %c0_57] : memref<64x32xbf16, #tpu.memory_space<vmem>>, vector<64x32xbf16>
    %cst_58 = arith.constant dense<0.000000e+00> : vector<8x32xf32>
    %222 = tpu.matmul %220, %221, %cst_58 {dimension_numbers = #tpu.dot_dimension_numbers<[1], [0], [0], [1], [0, 0, 1, 1], [], []>} : vector<8x64xbf16>, vector<64x32xbf16>, vector<8x32xf32> -> vector<8x32xf32>
    %223 = arith.truncf %197 : vector<8x32xf32> to vector<8x32xbf16>
    %c0_59 = arith.constant 0 : index
    %c0_60 = arith.constant 0 : index
    %224 = vector.load %arg11[%c0_59, %c0_60] : memref<32x32xbf16, #tpu.memory_space<vmem>>, vector<32x32xbf16>
    %cst_61 = arith.constant dense<0.000000e+00> : vector<8x32xf32>
    %225 = tpu.matmul %223, %224, %cst_61 {dimension_numbers = #tpu.dot_dimension_numbers<[1], [0], [0], [1], [0, 0, 1, 1], [], []>} : vector<8x32xbf16>, vector<32x32xbf16>, vector<8x32xf32> -> vector<8x32xf32>
    %226 = arith.addf %222, %225 : vector<8x32xf32>
    %227 = math.tanh %226 : vector<8x32xf32>
    %228 = arith.truncf %227 : vector<8x32xf32> to vector<8x32xbf16>
    %c0_62 = arith.constant 0 : index
    %c0_63 = arith.constant 0 : index
    %229 = vector.load %arg6[%c0_62, %c0_63] : memref<32x128xbf16, #tpu.memory_space<vmem>>, vector<32x128xbf16>
    %cst_64 = arith.constant dense<0.000000e+00> : vector<8x128xf32>
    %230 = tpu.matmul %228, %229, %cst_64 {dimension_numbers = #tpu.dot_dimension_numbers<[1], [0], [0], [1], [0, 0, 1, 1], [], []>} : vector<8x32xbf16>, vector<32x128xbf16>, vector<8x128xf32> -> vector<8x128xf32>
    %c0_65 = arith.constant 0 : index
    %c0_66 = arith.constant 0 : index
    %231 = vector.load %arg8[%c0_65, %c0_66] : memref<1x128xf32, #tpu.memory_space<vmem>>, vector<1x128xf32>
    %232 = vector.broadcast %231 : vector<1x128xf32> to vector<8x128xf32>
    %233 = arith.addf %230, %232 : vector<8x128xf32>
    %234 = vector.shape_cast %233 : vector<8x128xf32> to vector<1x8x128xf32>
    %c0_67 = arith.constant 0 : index
    %c0_68 = arith.constant 0 : index
    %235 = vector.load %arg7[%c0_67, %c0_68] : memref<32x128xbf16, #tpu.memory_space<vmem>>, vector<32x128xbf16>
    %cst_69 = arith.constant 0.000000e+00 : f32
    %236 = vector.broadcast %cst_69 : f32 to vector<1x32xf32>
    %cst_70 = arith.constant 0.000000e+00 : f32
    %237 = vector.broadcast %cst_70 : f32 to vector<1x32xf32>
    %238 = vector.extract_strided_slice %234 {offsets = [0, 0, 0], sizes = [1, 1, 128], strides = [1, 1, 1]} : vector<1x8x128xf32> to vector<1x1x128xf32>
    %239 = vector.shape_cast %238 : vector<1x1x128xf32> to vector<1x128xf32>
    %240 = arith.truncf %236 : vector<1x32xf32> to vector<1x32xbf16>
    %cst_71 = arith.constant dense<0.000000e+00> : vector<1x128xf32>
    %241 = tpu.matmul %240, %235, %cst_71 {dimension_numbers = #tpu.dot_dimension_numbers<[1], [0], [0], [1], [0, 0, 1, 1], [], []>} : vector<1x32xbf16>, vector<32x128xbf16>, vector<1x128xf32> -> vector<1x128xf32>
    %242 = arith.addf %239, %241 : vector<1x128xf32>
    %243 = arith.negf %242 : vector<1x128xf32>
    %244 = math.exp %243 : vector<1x128xf32>
    %cst_72 = arith.constant 1.000000e+00 : f32
    %245 = vector.broadcast %cst_72 : f32 to vector<1x128xf32>
    %246 = arith.addf %245, %244 : vector<1x128xf32>
    %247 = arith.divf %245, %246 : vector<1x128xf32>
    %248 = math.tanh %242 : vector<1x128xf32>
    %249 = vector.extract_strided_slice %247 {offsets = [0, 0], sizes = [1, 32], strides = [1, 1]} : vector<1x128xf32> to vector<1x32xf32>
    %250 = vector.extract_strided_slice %247 {offsets = [0, 32], sizes = [1, 32], strides = [1, 1]} : vector<1x128xf32> to vector<1x32xf32>
    %251 = vector.extract_strided_slice %248 {offsets = [0, 64], sizes = [1, 32], strides = [1, 1]} : vector<1x128xf32> to vector<1x32xf32>
    %252 = vector.extract_strided_slice %247 {offsets = [0, 96], sizes = [1, 32], strides = [1, 1]} : vector<1x128xf32> to vector<1x32xf32>
    %253 = arith.mulf %250, %237 : vector<1x32xf32>
    %254 = arith.mulf %249, %251 : vector<1x32xf32>
    %255 = arith.addf %253, %254 : vector<1x32xf32>
    %256 = math.tanh %255 : vector<1x32xf32>
    %257 = arith.mulf %252, %256 : vector<1x32xf32>
    %c0_73 = arith.constant 0 : index
    %c0_74 = arith.constant 0 : index
    %c0_75 = arith.constant 0 : index
    %258 = vector.load %arg18[%c0_73, %c0_74, %c0_75] : memref<1x8x32xf32, #tpu.memory_space<vmem>>, vector<1x1x32xf32>
    %259 = vector.shape_cast %258 : vector<1x1x32xf32> to vector<1x32xf32>
    %260 = vector.shape_cast %257 : vector<1x32xf32> to vector<1x1x32xf32>
    tpu.vector_store %arg18[%c0_73, %c0_74, %c0_75], %260 {strides = array<i32>} : memref<1x8x32xf32, #tpu.memory_space<vmem>>, vector<1x1x32xf32>,
    %261 = vector.extract_strided_slice %234 {offsets = [0, 1, 0], sizes = [1, 1, 128], strides = [1, 1, 1]} : vector<1x8x128xf32> to vector<1x1x128xf32>
    %262 = vector.shape_cast %261 : vector<1x1x128xf32> to vector<1x128xf32>
    %263 = arith.truncf %257 : vector<1x32xf32> to vector<1x32xbf16>
    %cst_76 = arith.constant dense<0.000000e+00> : vector<1x128xf32>
    %264 = tpu.matmul %263, %235, %cst_76 {dimension_numbers = #tpu.dot_dimension_numbers<[1], [0], [0], [1], [0, 0, 1, 1], [], []>} : vector<1x32xbf16>, vector<32x128xbf16>, vector<1x128xf32> -> vector<1x128xf32>
    %265 = arith.addf %262, %264 : vector<1x128xf32>
    %266 = arith.negf %265 : vector<1x128xf32>
    %267 = math.exp %266 : vector<1x128xf32>
    %cst_77 = arith.constant 1.000000e+00 : f32
    %268 = vector.broadcast %cst_77 : f32 to vector<1x128xf32>
    %269 = arith.addf %268, %267 : vector<1x128xf32>
    %270 = arith.divf %268, %269 : vector<1x128xf32>
    %271 = math.tanh %265 : vector<1x128xf32>
    %272 = vector.extract_strided_slice %270 {offsets = [0, 0], sizes = [1, 32], strides = [1, 1]} : vector<1x128xf32> to vector<1x32xf32>
    %273 = vector.extract_strided_slice %270 {offsets = [0, 32], sizes = [1, 32], strides = [1, 1]} : vector<1x128xf32> to vector<1x32xf32>
    %274 = vector.extract_strided_slice %271 {offsets = [0, 64], sizes = [1, 32], strides = [1, 1]} : vector<1x128xf32> to vector<1x32xf32>
    %275 = vector.extract_strided_slice %270 {offsets = [0, 96], sizes = [1, 32], strides = [1, 1]} : vector<1x128xf32> to vector<1x32xf32>
    %276 = arith.mulf %273, %255 : vector<1x32xf32>
    %277 = arith.mulf %272, %274 : vector<1x32xf32>
    %278 = arith.addf %276, %277 : vector<1x32xf32>
    %279 = math.tanh %278 : vector<1x32xf32>
    %280 = arith.mulf %275, %279 : vector<1x32xf32>
    %c0_78 = arith.constant 0 : index
    %c1_79 = arith.constant 1 : index
    %c0_80 = arith.constant 0 : index
    %281 = vector.load %arg18[%c0_78, %c1_79, %c0_80] : memref<1x8x32xf32, #tpu.memory_space<vmem>>, vector<1x1x32xf32>
    %282 = vector.shape_cast %281 : vector<1x1x32xf32> to vector<1x32xf32>
    %283 = vector.shape_cast %280 : vector<1x32xf32> to vector<1x1x32xf32>
    tpu.vector_store %arg18[%c0_78, %c1_79, %c0_80], %283 {strides = array<i32>} : memref<1x8x32xf32, #tpu.memory_space<vmem>>, vector<1x1x32xf32>,
    %284 = vector.extract_strided_slice %234 {offsets = [0, 2, 0], sizes = [1, 1, 128], strides = [1, 1, 1]} : vector<1x8x128xf32> to vector<1x1x128xf32>
    %285 = vector.shape_cast %284 : vector<1x1x128xf32> to vector<1x128xf32>
    %286 = arith.truncf %280 : vector<1x32xf32> to vector<1x32xbf16>
    %cst_81 = arith.constant dense<0.000000e+00> : vector<1x128xf32>
    %287 = tpu.matmul %286, %235, %cst_81 {dimension_numbers = #tpu.dot_dimension_numbers<[1], [0], [0], [1], [0, 0, 1, 1], [], []>} : vector<1x32xbf16>, vector<32x128xbf16>, vector<1x128xf32> -> vector<1x128xf32>
    %288 = arith.addf %285, %287 : vector<1x128xf32>
    %289 = arith.negf %288 : vector<1x128xf32>
    %290 = math.exp %289 : vector<1x128xf32>
    %cst_82 = arith.constant 1.000000e+00 : f32
    %291 = vector.broadcast %cst_82 : f32 to vector<1x128xf32>
    %292 = arith.addf %291, %290 : vector<1x128xf32>
    %293 = arith.divf %291, %292 : vector<1x128xf32>
    %294 = math.tanh %288 : vector<1x128xf32>
    %295 = vector.extract_strided_slice %293 {offsets = [0, 0], sizes = [1, 32], strides = [1, 1]} : vector<1x128xf32> to vector<1x32xf32>
    %296 = vector.extract_strided_slice %293 {offsets = [0, 32], sizes = [1, 32], strides = [1, 1]} : vector<1x128xf32> to vector<1x32xf32>
    %297 = vector.extract_strided_slice %294 {offsets = [0, 64], sizes = [1, 32], strides = [1, 1]} : vector<1x128xf32> to vector<1x32xf32>
    %298 = vector.extract_strided_slice %293 {offsets = [0, 96], sizes = [1, 32], strides = [1, 1]} : vector<1x128xf32> to vector<1x32xf32>
    %299 = arith.mulf %296, %278 : vector<1x32xf32>
    %300 = arith.mulf %295, %297 : vector<1x32xf32>
    %301 = arith.addf %299, %300 : vector<1x32xf32>
    %302 = math.tanh %301 : vector<1x32xf32>
    %303 = arith.mulf %298, %302 : vector<1x32xf32>
    %c0_83 = arith.constant 0 : index
    %c2_84 = arith.constant 2 : index
    %c0_85 = arith.constant 0 : index
    %304 = vector.load %arg18[%c0_83, %c2_84, %c0_85] : memref<1x8x32xf32, #tpu.memory_space<vmem>>, vector<1x1x32xf32>
    %305 = vector.shape_cast %304 : vector<1x1x32xf32> to vector<1x32xf32>
    %306 = vector.shape_cast %303 : vector<1x32xf32> to vector<1x1x32xf32>
    tpu.vector_store %arg18[%c0_83, %c2_84, %c0_85], %306 {strides = array<i32>} : memref<1x8x32xf32, #tpu.memory_space<vmem>>, vector<1x1x32xf32>,
    %307 = vector.extract_strided_slice %234 {offsets = [0, 3, 0], sizes = [1, 1, 128], strides = [1, 1, 1]} : vector<1x8x128xf32> to vector<1x1x128xf32>
    %308 = vector.shape_cast %307 : vector<1x1x128xf32> to vector<1x128xf32>
    %309 = arith.truncf %303 : vector<1x32xf32> to vector<1x32xbf16>
    %cst_86 = arith.constant dense<0.000000e+00> : vector<1x128xf32>
    %310 = tpu.matmul %309, %235, %cst_86 {dimension_numbers = #tpu.dot_dimension_numbers<[1], [0], [0], [1], [0, 0, 1, 1], [], []>} : vector<1x32xbf16>, vector<32x128xbf16>, vector<1x128xf32> -> vector<1x128xf32>
    %311 = arith.addf %308, %310 : vector<1x128xf32>
    %312 = arith.negf %311 : vector<1x128xf32>
    %313 = math.exp %312 : vector<1x128xf32>
    %cst_87 = arith.constant 1.000000e+00 : f32
    %314 = vector.broadcast %cst_87 : f32 to vector<1x128xf32>
    %315 = arith.addf %314, %313 : vector<1x128xf32>
    %316 = arith.divf %314, %315 : vector<1x128xf32>
    %317 = math.tanh %311 : vector<1x128xf32>
    %318 = vector.extract_strided_slice %316 {offsets = [0, 0], sizes = [1, 32], strides = [1, 1]} : vector<1x128xf32> to vector<1x32xf32>
    %319 = vector.extract_strided_slice %316 {offsets = [0, 32], sizes = [1, 32], strides = [1, 1]} : vector<1x128xf32> to vector<1x32xf32>
    %320 = vector.extract_strided_slice %317 {offsets = [0, 64], sizes = [1, 32], strides = [1, 1]} : vector<1x128xf32> to vector<1x32xf32>
    %321 = vector.extract_strided_slice %316 {offsets = [0, 96], sizes = [1, 32], strides = [1, 1]} : vector<1x128xf32> to vector<1x32xf32>
    %322 = arith.mulf %319, %301 : vector<1x32xf32>
    %323 = arith.mulf %318, %320 : vector<1x32xf32>
    %324 = arith.addf %322, %323 : vector<1x32xf32>
    %325 = math.tanh %324 : vector<1x32xf32>
    %326 = arith.mulf %321, %325 : vector<1x32xf32>
    %c0_88 = arith.constant 0 : index
    %c3_89 = arith.constant 3 : index
    %c0_90 = arith.constant 0 : index
    %327 = vector.load %arg18[%c0_88, %c3_89, %c0_90] : memref<1x8x32xf32, #tpu.memory_space<vmem>>, vector<1x1x32xf32>
    %328 = vector.shape_cast %327 : vector<1x1x32xf32> to vector<1x32xf32>
    %329 = vector.shape_cast %326 : vector<1x32xf32> to vector<1x1x32xf32>
    tpu.vector_store %arg18[%c0_88, %c3_89, %c0_90], %329 {strides = array<i32>} : memref<1x8x32xf32, #tpu.memory_space<vmem>>, vector<1x1x32xf32>,
    %330 = vector.extract_strided_slice %234 {offsets = [0, 4, 0], sizes = [1, 1, 128], strides = [1, 1, 1]} : vector<1x8x128xf32> to vector<1x1x128xf32>
    %331 = vector.shape_cast %330 : vector<1x1x128xf32> to vector<1x128xf32>
    %332 = arith.truncf %326 : vector<1x32xf32> to vector<1x32xbf16>
    %cst_91 = arith.constant dense<0.000000e+00> : vector<1x128xf32>
    %333 = tpu.matmul %332, %235, %cst_91 {dimension_numbers = #tpu.dot_dimension_numbers<[1], [0], [0], [1], [0, 0, 1, 1], [], []>} : vector<1x32xbf16>, vector<32x128xbf16>, vector<1x128xf32> -> vector<1x128xf32>
    %334 = arith.addf %331, %333 : vector<1x128xf32>
    %335 = arith.negf %334 : vector<1x128xf32>
    %336 = math.exp %335 : vector<1x128xf32>
    %cst_92 = arith.constant 1.000000e+00 : f32
    %337 = vector.broadcast %cst_92 : f32 to vector<1x128xf32>
    %338 = arith.addf %337, %336 : vector<1x128xf32>
    %339 = arith.divf %337, %338 : vector<1x128xf32>
    %340 = math.tanh %334 : vector<1x128xf32>
    %341 = vector.extract_strided_slice %339 {offsets = [0, 0], sizes = [1, 32], strides = [1, 1]} : vector<1x128xf32> to vector<1x32xf32>
    %342 = vector.extract_strided_slice %339 {offsets = [0, 32], sizes = [1, 32], strides = [1, 1]} : vector<1x128xf32> to vector<1x32xf32>
    %343 = vector.extract_strided_slice %340 {offsets = [0, 64], sizes = [1, 32], strides = [1, 1]} : vector<1x128xf32> to vector<1x32xf32>
    %344 = vector.extract_strided_slice %339 {offsets = [0, 96], sizes = [1, 32], strides = [1, 1]} : vector<1x128xf32> to vector<1x32xf32>
    %345 = arith.mulf %342, %324 : vector<1x32xf32>
    %346 = arith.mulf %341, %343 : vector<1x32xf32>
    %347 = arith.addf %345, %346 : vector<1x32xf32>
    %348 = math.tanh %347 : vector<1x32xf32>
    %349 = arith.mulf %344, %348 : vector<1x32xf32>
    %c0_93 = arith.constant 0 : index
    %c4_94 = arith.constant 4 : index
    %c0_95 = arith.constant 0 : index
    %350 = vector.load %arg18[%c0_93, %c4_94, %c0_95] : memref<1x8x32xf32, #tpu.memory_space<vmem>>, vector<1x1x32xf32>
    %351 = vector.shape_cast %350 : vector<1x1x32xf32> to vector<1x32xf32>
    %352 = vector.shape_cast %349 : vector<1x32xf32> to vector<1x1x32xf32>
    tpu.vector_store %arg18[%c0_93, %c4_94, %c0_95], %352 {strides = array<i32>} : memref<1x8x32xf32, #tpu.memory_space<vmem>>, vector<1x1x32xf32>,
    %353 = vector.extract_strided_slice %234 {offsets = [0, 5, 0], sizes = [1, 1, 128], strides = [1, 1, 1]} : vector<1x8x128xf32> to vector<1x1x128xf32>
    %354 = vector.shape_cast %353 : vector<1x1x128xf32> to vector<1x128xf32>
    %355 = arith.truncf %349 : vector<1x32xf32> to vector<1x32xbf16>
    %cst_96 = arith.constant dense<0.000000e+00> : vector<1x128xf32>
    %356 = tpu.matmul %355, %235, %cst_96 {dimension_numbers = #tpu.dot_dimension_numbers<[1], [0], [0], [1], [0, 0, 1, 1], [], []>} : vector<1x32xbf16>, vector<32x128xbf16>, vector<1x128xf32> -> vector<1x128xf32>
    %357 = arith.addf %354, %356 : vector<1x128xf32>
    %358 = arith.negf %357 : vector<1x128xf32>
    %359 = math.exp %358 : vector<1x128xf32>
    %cst_97 = arith.constant 1.000000e+00 : f32
    %360 = vector.broadcast %cst_97 : f32 to vector<1x128xf32>
    %361 = arith.addf %360, %359 : vector<1x128xf32>
    %362 = arith.divf %360, %361 : vector<1x128xf32>
    %363 = math.tanh %357 : vector<1x128xf32>
    %364 = vector.extract_strided_slice %362 {offsets = [0, 0], sizes = [1, 32], strides = [1, 1]} : vector<1x128xf32> to vector<1x32xf32>
    %365 = vector.extract_strided_slice %362 {offsets = [0, 32], sizes = [1, 32], strides = [1, 1]} : vector<1x128xf32> to vector<1x32xf32>
    %366 = vector.extract_strided_slice %363 {offsets = [0, 64], sizes = [1, 32], strides = [1, 1]} : vector<1x128xf32> to vector<1x32xf32>
    %367 = vector.extract_strided_slice %362 {offsets = [0, 96], sizes = [1, 32], strides = [1, 1]} : vector<1x128xf32> to vector<1x32xf32>
    %368 = arith.mulf %365, %347 : vector<1x32xf32>
    %369 = arith.mulf %364, %366 : vector<1x32xf32>
    %370 = arith.addf %368, %369 : vector<1x32xf32>
    %371 = math.tanh %370 : vector<1x32xf32>
    %372 = arith.mulf %367, %371 : vector<1x32xf32>
    %c0_98 = arith.constant 0 : index
    %c5_99 = arith.constant 5 : index
    %c0_100 = arith.constant 0 : index
    %373 = vector.load %arg18[%c0_98, %c5_99, %c0_100] : memref<1x8x32xf32, #tpu.memory_space<vmem>>, vector<1x1x32xf32>
    %374 = vector.shape_cast %373 : vector<1x1x32xf32> to vector<1x32xf32>
    %375 = vector.shape_cast %372 : vector<1x32xf32> to vector<1x1x32xf32>
    tpu.vector_store %arg18[%c0_98, %c5_99, %c0_100], %375 {strides = array<i32>} : memref<1x8x32xf32, #tpu.memory_space<vmem>>, vector<1x1x32xf32>,
    %376 = vector.extract_strided_slice %234 {offsets = [0, 6, 0], sizes = [1, 1, 128], strides = [1, 1, 1]} : vector<1x8x128xf32> to vector<1x1x128xf32>
    %377 = vector.shape_cast %376 : vector<1x1x128xf32> to vector<1x128xf32>
    %378 = arith.truncf %372 : vector<1x32xf32> to vector<1x32xbf16>
    %cst_101 = arith.constant dense<0.000000e+00> : vector<1x128xf32>
    %379 = tpu.matmul %378, %235, %cst_101 {dimension_numbers = #tpu.dot_dimension_numbers<[1], [0], [0], [1], [0, 0, 1, 1], [], []>} : vector<1x32xbf16>, vector<32x128xbf16>, vector<1x128xf32> -> vector<1x128xf32>
    %380 = arith.addf %377, %379 : vector<1x128xf32>
    %381 = arith.negf %380 : vector<1x128xf32>
    %382 = math.exp %381 : vector<1x128xf32>
    %cst_102 = arith.constant 1.000000e+00 : f32
    %383 = vector.broadcast %cst_102 : f32 to vector<1x128xf32>
    %384 = arith.addf %383, %382 : vector<1x128xf32>
    %385 = arith.divf %383, %384 : vector<1x128xf32>
    %386 = math.tanh %380 : vector<1x128xf32>
    %387 = vector.extract_strided_slice %385 {offsets = [0, 0], sizes = [1, 32], strides = [1, 1]} : vector<1x128xf32> to vector<1x32xf32>
    %388 = vector.extract_strided_slice %385 {offsets = [0, 32], sizes = [1, 32], strides = [1, 1]} : vector<1x128xf32> to vector<1x32xf32>
    %389 = vector.extract_strided_slice %386 {offsets = [0, 64], sizes = [1, 32], strides = [1, 1]} : vector<1x128xf32> to vector<1x32xf32>
    %390 = vector.extract_strided_slice %385 {offsets = [0, 96], sizes = [1, 32], strides = [1, 1]} : vector<1x128xf32> to vector<1x32xf32>
    %391 = arith.mulf %388, %370 : vector<1x32xf32>
    %392 = arith.mulf %387, %389 : vector<1x32xf32>
    %393 = arith.addf %391, %392 : vector<1x32xf32>
    %394 = math.tanh %393 : vector<1x32xf32>
    %395 = arith.mulf %390, %394 : vector<1x32xf32>
    %c0_103 = arith.constant 0 : index
    %c6_104 = arith.constant 6 : index
    %c0_105 = arith.constant 0 : index
    %396 = vector.load %arg18[%c0_103, %c6_104, %c0_105] : memref<1x8x32xf32, #tpu.memory_space<vmem>>, vector<1x1x32xf32>
    %397 = vector.shape_cast %396 : vector<1x1x32xf32> to vector<1x32xf32>
    %398 = vector.shape_cast %395 : vector<1x32xf32> to vector<1x1x32xf32>
    tpu.vector_store %arg18[%c0_103, %c6_104, %c0_105], %398 {strides = array<i32>} : memref<1x8x32xf32, #tpu.memory_space<vmem>>, vector<1x1x32xf32>,
    %399 = vector.extract_strided_slice %234 {offsets = [0, 7, 0], sizes = [1, 1, 128], strides = [1, 1, 1]} : vector<1x8x128xf32> to vector<1x1x128xf32>
    %400 = vector.shape_cast %399 : vector<1x1x128xf32> to vector<1x128xf32>
    %401 = arith.truncf %395 : vector<1x32xf32> to vector<1x32xbf16>
    %cst_106 = arith.constant dense<0.000000e+00> : vector<1x128xf32>
    %402 = tpu.matmul %401, %235, %cst_106 {dimension_numbers = #tpu.dot_dimension_numbers<[1], [0], [0], [1], [0, 0, 1, 1], [], []>} : vector<1x32xbf16>, vector<32x128xbf16>, vector<1x128xf32> -> vector<1x128xf32>
    %403 = arith.addf %400, %402 : vector<1x128xf32>
    %404 = arith.negf %403 : vector<1x128xf32>
    %405 = math.exp %404 : vector<1x128xf32>
    %cst_107 = arith.constant 1.000000e+00 : f32
    %406 = vector.broadcast %cst_107 : f32 to vector<1x128xf32>
    %407 = arith.addf %406, %405 : vector<1x128xf32>
    %408 = arith.divf %406, %407 : vector<1x128xf32>
    %409 = math.tanh %403 : vector<1x128xf32>
    %410 = vector.extract_strided_slice %408 {offsets = [0, 0], sizes = [1, 32], strides = [1, 1]} : vector<1x128xf32> to vector<1x32xf32>
    %411 = vector.extract_strided_slice %408 {offsets = [0, 32], sizes = [1, 32], strides = [1, 1]} : vector<1x128xf32> to vector<1x32xf32>
    %412 = vector.extract_strided_slice %409 {offsets = [0, 64], sizes = [1, 32], strides = [1, 1]} : vector<1x128xf32> to vector<1x32xf32>
    %413 = vector.extract_strided_slice %408 {offsets = [0, 96], sizes = [1, 32], strides = [1, 1]} : vector<1x128xf32> to vector<1x32xf32>
    %414 = arith.mulf %411, %393 : vector<1x32xf32>
    %415 = arith.mulf %410, %412 : vector<1x32xf32>
    %416 = arith.addf %414, %415 : vector<1x32xf32>
    %417 = math.tanh %416 : vector<1x32xf32>
    %418 = arith.mulf %413, %417 : vector<1x32xf32>
    %c0_108 = arith.constant 0 : index
    %c7_109 = arith.constant 7 : index
    %c0_110 = arith.constant 0 : index
    %419 = vector.load %arg18[%c0_108, %c7_109, %c0_110] : memref<1x8x32xf32, #tpu.memory_space<vmem>>, vector<1x1x32xf32>
    %420 = vector.shape_cast %419 : vector<1x1x32xf32> to vector<1x32xf32>
    %421 = vector.shape_cast %418 : vector<1x32xf32> to vector<1x1x32xf32>
    tpu.vector_store %arg18[%c0_108, %c7_109, %c0_110], %421 {strides = array<i32>} : memref<1x8x32xf32, #tpu.memory_space<vmem>>, vector<1x1x32xf32>,
    %422 = arith.truncf %197 : vector<8x32xf32> to vector<8x32xbf16>
    %c0_111 = arith.constant 0 : index
    %c0_112 = arith.constant 0 : index
    %423 = vector.load %arg12[%c0_111, %c0_112] : memref<32x256xbf16, #tpu.memory_space<vmem>>, vector<32x256xbf16>
    %cst_113 = arith.constant dense<0.000000e+00> : vector<8x256xf32>
    %424 = tpu.matmul %422, %423, %cst_113 {dimension_numbers = #tpu.dot_dimension_numbers<[1], [0], [0], [1], [0, 0, 1, 1], [], []>} : vector<8x32xbf16>, vector<32x256xbf16>, vector<8x256xf32> -> vector<8x256xf32>
    %c0_114 = arith.constant 0 : index
    %c0_115 = arith.constant 0 : index
    %425 = vector.load %arg13[%c0_114, %c0_115] : memref<1x256xf32, #tpu.memory_space<vmem>>, vector<1x256xf32>
    %426 = vector.broadcast %425 : vector<1x256xf32> to vector<8x256xf32>
    %427 = arith.addf %424, %426 : vector<8x256xf32>
    %cst_116 = arith.constant 0.000000e+00 : f32
    %428 = vector.broadcast %cst_116 : f32 to vector<8x256xf32>
    %429 = arith.maximumf %427, %428 : vector<8x256xf32>
    %430 = arith.truncf %429 : vector<8x256xf32> to vector<8x256xbf16>
    %c0_117 = arith.constant 0 : index
    %c0_118 = arith.constant 0 : index
    %431 = vector.load %arg14[%c0_117, %c0_118] : memref<256x128xbf16, #tpu.memory_space<vmem>>, vector<256x128xbf16>
    %cst_119 = arith.constant dense<0.000000e+00> : vector<8x128xf32>
    %432 = tpu.matmul %430, %431, %cst_119 {dimension_numbers = #tpu.dot_dimension_numbers<[1], [0], [0], [1], [0, 0, 1, 1], [], []>} : vector<8x256xbf16>, vector<256x128xbf16>, vector<8x128xf32> -> vector<8x128xf32>
    %c0_120 = arith.constant 0 : index
    %c0_121 = arith.constant 0 : index
    %433 = vector.load %arg15[%c0_120, %c0_121] : memref<1x128xf32, #tpu.memory_space<vmem>>, vector<1x128xf32>
    %434 = vector.broadcast %433 : vector<1x128xf32> to vector<8x128xf32>
    %435 = arith.addf %432, %434 : vector<8x128xf32>
    %cst_122 = arith.constant 0.000000e+00 : f32
    %436 = vector.broadcast %cst_122 : f32 to vector<8x128xf32>
    %437 = arith.maximumf %435, %436 : vector<8x128xf32>
    %438 = arith.truncf %437 : vector<8x128xf32> to vector<8x128xbf16>
    %c0_123 = arith.constant 0 : index
    %c0_124 = arith.constant 0 : index
    %439 = vector.load %arg16[%c0_123, %c0_124] : memref<128x60xbf16, #tpu.memory_space<vmem>>, vector<128x60xbf16>
    %cst_125 = arith.constant dense<0.000000e+00> : vector<8x60xf32>
    %440 = tpu.matmul %438, %439, %cst_125 {dimension_numbers = #tpu.dot_dimension_numbers<[1], [0], [0], [1], [0, 0, 1, 1], [], []>} : vector<8x128xbf16>, vector<128x60xbf16>, vector<8x60xf32> -> vector<8x60xf32>
    %c0_126 = arith.constant 0 : index
    %c0_127 = arith.constant 0 : index
    %441 = vector.load %arg17[%c0_126, %c0_127] : memref<1x60xf32, #tpu.memory_space<vmem>>, vector<1x60xf32>
    %442 = vector.broadcast %441 : vector<1x60xf32> to vector<8x60xf32>
    %443 = arith.addf %440, %442 : vector<8x60xf32>
    %cst_128 = arith.constant 0.000000e+00 : f32
    %444 = vector.broadcast %cst_128 : f32 to vector<8x60xf32>
    %445 = arith.maximumf %443, %444 : vector<8x60xf32>
    %c0_129 = arith.constant 0 : index
    %c0_130 = arith.constant 0 : index
    %446 = vector.load %arg19[%c0_129, %c0_130] : memref<8x60xf32, #tpu.memory_space<vmem>>, vector<8x60xf32>
    tpu.vector_store %arg19[%c0_129, %c0_130], %445 {strides = array<i32>} : memref<8x60xf32, #tpu.memory_space<vmem>>, vector<8x60xf32>,
    return
  }
  func.func @transform_0(%arg0: i32) -> (i32, i32, i32) {
    %c0_i32 = arith.constant 0 : i32
    %c0_i32_0 = arith.constant 0 : i32
    %c0_i32_1 = arith.constant 0 : i32
    return %arg0, %c0_i32, %c0_i32_0 : i32, i32, i32
  }
  func.func @transform_1(%arg0: i32) -> (i32, i32, i32) {
    %c0_i32 = arith.constant 0 : i32
    %c0_i32_0 = arith.constant 0 : i32
    %c0_i32_1 = arith.constant 0 : i32
    return %arg0, %c0_i32, %c0_i32_0 : i32, i32, i32
  }
  func.func @transform_2(%arg0: i32) -> (i32, i32) {
    %c0_i32 = arith.constant 0 : i32
    %c0_i32_0 = arith.constant 0 : i32
    %c0_i32_1 = arith.constant 0 : i32
    return %c0_i32, %c0_i32_0 : i32, i32
  }
  func.func @transform_3(%arg0: i32) -> (i32, i32) {
    %c0_i32 = arith.constant 0 : i32
    %c0_i32_0 = arith.constant 0 : i32
    %c0_i32_1 = arith.constant 0 : i32
    return %c0_i32, %c0_i32_0 : i32, i32
  }
  func.func @transform_4(%arg0: i32) -> (i32, i32) {
    %c0_i32 = arith.constant 0 : i32
    %c0_i32_0 = arith.constant 0 : i32
    %c0_i32_1 = arith.constant 0 : i32
    return %c0_i32, %c0_i32_0 : i32, i32
  }
  func.func @transform_5(%arg0: i32) -> (i32, i32) {
    %c0_i32 = arith.constant 0 : i32
    %c0_i32_0 = arith.constant 0 : i32
    %c0_i32_1 = arith.constant 0 : i32
    return %c0_i32, %c0_i32_0 : i32, i32
  }
  func.func @transform_6(%arg0: i32) -> (i32, i32) {
    %c0_i32 = arith.constant 0 : i32
    %c0_i32_0 = arith.constant 0 : i32
    %c0_i32_1 = arith.constant 0 : i32
    return %c0_i32, %c0_i32_0 : i32, i32
  }
  func.func @transform_7(%arg0: i32) -> (i32, i32) {
    %c0_i32 = arith.constant 0 : i32
    %c0_i32_0 = arith.constant 0 : i32
    %c0_i32_1 = arith.constant 0 : i32
    return %c0_i32, %c0_i32_0 : i32, i32
  }
  func.func @transform_8(%arg0: i32) -> (i32, i32) {
    %c0_i32 = arith.constant 0 : i32
    %c0_i32_0 = arith.constant 0 : i32
    %c0_i32_1 = arith.constant 0 : i32
    return %c0_i32, %c0_i32_0 : i32, i32
  }
  func.func @transform_9(%arg0: i32) -> (i32, i32) {
    %c0_i32 = arith.constant 0 : i32
    %c0_i32_0 = arith.constant 0 : i32
    %c0_i32_1 = arith.constant 0 : i32
    return %c0_i32, %c0_i32_0 : i32, i32
  }
  func.func @transform_10(%arg0: i32) -> (i32, i32) {
    %c0_i32 = arith.constant 0 : i32
    %c0_i32_0 = arith.constant 0 : i32
    %c0_i32_1 = arith.constant 0 : i32
    return %c0_i32, %c0_i32_0 : i32, i32
  }
  func.func @transform_11(%arg0: i32) -> (i32, i32) {
    %c0_i32 = arith.constant 0 : i32
    %c0_i32_0 = arith.constant 0 : i32
    %c0_i32_1 = arith.constant 0 : i32
    return %c0_i32, %c0_i32_0 : i32, i32
  }
  func.func @transform_12(%arg0: i32) -> (i32, i32) {
    %c0_i32 = arith.constant 0 : i32
    %c0_i32_0 = arith.constant 0 : i32
    %c0_i32_1 = arith.constant 0 : i32
    return %c0_i32, %c0_i32_0 : i32, i32
  }
  func.func @transform_13(%arg0: i32) -> (i32, i32) {
    %c0_i32 = arith.constant 0 : i32
    %c0_i32_0 = arith.constant 0 : i32
    %c0_i32_1 = arith.constant 0 : i32
    return %c0_i32, %c0_i32_0 : i32, i32
  }
  func.func @transform_14(%arg0: i32) -> (i32, i32) {
    %c0_i32 = arith.constant 0 : i32
    %c0_i32_0 = arith.constant 0 : i32
    %c0_i32_1 = arith.constant 0 : i32
    return %c0_i32, %c0_i32_0 : i32, i32
  }
  func.func @transform_15(%arg0: i32) -> (i32, i32) {
    %c0_i32 = arith.constant 0 : i32
    %c0_i32_0 = arith.constant 0 : i32
    %c0_i32_1 = arith.constant 0 : i32
    return %c0_i32, %c0_i32_0 : i32, i32
  }
  func.func @transform_16(%arg0: i32) -> (i32, i32) {
    %c0_i32 = arith.constant 0 : i32
    %c0_i32_0 = arith.constant 0 : i32
    %c0_i32_1 = arith.constant 0 : i32
    return %c0_i32, %c0_i32_0 : i32, i32
  }
  func.func @transform_17(%arg0: i32) -> (i32, i32, i32) {
    %c0_i32 = arith.constant 0 : i32
    %c0_i32_0 = arith.constant 0 : i32
    %c0_i32_1 = arith.constant 0 : i32
    return %arg0, %c0_i32, %c0_i32_0 : i32, i32, i32
  }
  func.func @transform_18(%arg0: i32) -> (i32, i32) {
    %c0_i32 = arith.constant 0 : i32
    %c0_i32_0 = arith.constant 0 : i32
    return %arg0, %c0_i32 : i32, i32
  }
}

</mosaic_0001>

<bundles_post_ra>
// kernel: speaker_encoder_scenecls_forward.1
= control target key start
LH: loop header
LB: loop body
LE: loop exit
PB: predicated region body
PF: predicated region fallthrough
CT: control target
= control target key end

     0   :  { %s6887_s0 = inlined_call_operand.vmem [shape: f32[2,8,64], index: 0, kind: input, shape index: {}]   ;;  %s6888_s1 = inlined_call_operand.vmem [shape: f32[16,36,64], index: 1, kind: input, shape index: {}]   ;;  %s6889_s2 = inlined_call_operand.vmem [shape: bf16[64,128], index: 2, kind: input, shape index: {}]   ;;  %s6890_s3 = inlined_call_operand.vmem [shape: bf16[32,128], index: 3, kind: input, shape index: {}]   ;;  %s6891_s4 = inlined_call_operand.vmem [shape: f32[1,128], index: 4, kind: input, shape index: {}]   ;;  %s6892_s5 = inlined_call_operand.vmem [shape: bf16[32,128], index: 5, kind: input, shape index: {}]   ;;  %s6893_s6 = inlined_call_operand.vmem [shape: bf16[32,128], index: 6, kind: input, shape index: {}]   ;;  %s6894_s7 = inlined_call_operand.vmem [shape: f32[1,128], index: 7, kind: input, shape index: {}]   ;;  %s6895_s8 = inlined_call_operand.vmem [shape: bf16[32,64], index: 8, kind: input, shape index: {}]   ;;  %s6896_s9 = inlined_call_operand.vmem [shape: bf16[64,32], index: 9, kind: input, shape index: {}]   ;;  %s6897_s10 = inlined_call_operand.vmem [shape: bf16[32,32], index: 10, kind: input, shape index: {}]   ;;  %s6898_s11 = inlined_call_operand.vmem [shape: bf16[32,256], index: 11, kind: input, shape index: {}]   ;;  %s6899_s12 = inlined_call_operand.vmem [shape: f32[1,256], index: 12, kind: input, shape index: {}]   ;;  %s6900_s13 = inlined_call_operand.vmem [shape: bf16[256,128], index: 13, kind: input, shape index: {}]   ;;  %s6901_s14 = inlined_call_operand.vmem [shape: f32[1,128], index: 14, kind: input, shape index: {}]   ;;  %s6902_s15 = inlined_call_operand.vmem [shape: bf16[128,60], index: 15, kind: input, shape index: {}]   ;;  %s6903_s16 = inlined_call_operand.vmem [shape: f32[1,60], index: 16, kind: input, shape index: {}]   ;;  %s6904_s17 = inlined_call_operand.hbm [shape: f32[2,8,32], index: 17, kind: output, shape index: {0}]   ;;  %s6905_s18 = inlined_call_operand.hbm [shape: f32[16,60], index: 18, kind: output, shape index: {1}]  }
   0x1   :  { %6971 = sst [smem:[#allocation42_spill]] %s6887_s0 }
   0x2   :  { %6972 = sst [smem:[#allocation43_spill]] %s6888_s1 }
   0x3   :  { %6973 = sst [smem:[#allocation44_spill]] %s6889_s2 }
   0x4   :  { %6974 = sst [smem:[#allocation45_spill]] %s6890_s3 }
   0x5   :  { %6975 = sst [smem:[#allocation46_spill]] %s6891_s4 }
   0x6   :  { %6976 = sst [smem:[#allocation47_spill]] %s6892_s5 }
   0x7   :  { %6977 = sst [smem:[#allocation48_spill]] %s6893_s6 }
   0x8   :  { %6978 = sst [smem:[#allocation49_spill]] %s6894_s7 }
   0x9   :  { %6979 = sst [smem:[#allocation50_spill]] %s6895_s8 }
   0xa   :  { %24 = vsyncpa [#allocation4], 0 }
   0xb   :  { %26 = vsyncpa [#allocation4 + $0x1], 0 }
   0xc   :  { %27 = vsyncpa [#allocation6], 0 }
   0xd   :  { %29 = vsyncpa [#allocation6 + $0x1], 0  ;;  %s5329_s27 = smov 0   ;;  %s5331_s28 = smov 0  }
   0xe   :  { %s5333_s29 = smov 0   ;;  %s5335_s30 = smov 0  }
   0xf LB: > { %6980 = sst [smem:[#allocation9_spill]] %s5220_s29  ;;  %s5350_s0 = sadd.s32 4294967295, %s5224_s30   ;;  %s5224_s30 = sphi %s5335_s30, %s7085_s30   ;;  %s5220_s29 = sphi %s5333_s29, %s7087_s29   ;;  %s5216_s28 = sphi %s5331_s28, %s7089_s28   ;;  %s5212_s27 = sphi %s5329_s27, %s7088_s27  }
  0x10   : > { %s4378_s19 = sadd.s32 4294967294, %s5224_s30   ;;  %s5354_s1 = sadd.s32 1, %s5224_s30  }
  0x11   : > { %6981 = sst [smem:[#allocation10_spill]] %s5354_s1  ;;  %s409_s20 = sadd.s32 1, %s5220_s29 }
  0x12   : > { %s406_s21 = ssub.s32 %s5224_s30, %s5354_s1  ;;  %p419_p0 = scmp.ne.s32.totalorder %s5220_s29, %s5216_s28 }
  0x13   : > { %p407_p1 = scmp.eq.s32.totalorder %s406_s21, 0  ;;  %p420_p2 = scmp.eq.s32.totalorder %s5350_s0, 1 }
  0x14   : > { %p425_p3 = scmp.ne.s32.totalorder %s5216_s28, %s5212_s27  ;;  %p426_p4 = scmp.eq.s32.totalorder %s4378_s19, 1 }
  0x15   : > { %s5365_s22 = scalar_select %p407_p1, %s5220_s29, %s409_s20  }
  0x16   : > { %p5367_p5 = por %p420_p2, %p419_p0  ;;  %p5371_p6 = por %p426_p4, %p425_p3 }
  0x17   : > { %6982 = sst [smem:[#allocation11_spill]] %s5365_s22  ;;  %p4381_p7 = scmp.ge.s32.totalorder %s5224_s30, 1 }
  0x18   : > { %p532_p8 = scmp.lt.s32.totalorder %s5224_s30, 3 }
  0x1a   : > { %p533_p9 = pnand %p4381_p7, %p532_p8 }
  0x1c   : > { %536 = sbr.rel (%p533_p9) target bundleno = 12875 (0x324b), region = 88 }
  0x23   : > { %s6985_s26 = sld [smem:[#allocation44_spill]]  ;;  %v6919_v1 = vmov 0.0   ;;  %s6986_s3 = sld [smem:[#allocation45_spill]]  ;;  %vm5227_vm0 = vmmov 0   ;;  %v6917_v5 = vmov 0   ;;  %vm649_vm1 = vcmask 523264  }
  0x24   : > { %4577 = vmatprep.subr.bf16.mxu0 %v6919_v1  ;;  %4589 = vmatprep.subr.bf16.mxu1 %v6919_v1  ;;  %p596_p10 = scmp.lt.s32.totalorder %s5350_s0, 1  ;;  %s6987_s1 = sld [smem:[#allocation42_spill]]  ;;  %vm709_vm2 = vcmask 261120   ;;  %vm6934_vm3 = vcmask 253952   ;;  %vm6933_vm4 = vcmask 256002   ;;  %vm6932_vm5 = vcmask 258052  }
  0x25   : > { %4593 = vmatprep.mubr.msk.bf16.mxu1 %vm5227_vm0, %v6919_v1  ;;  %4585 = vmatprep.mubr.msk.bf16.mxu0 %vm5227_vm0, %v6919_v1  ;;  %s6988_s4 = sld [smem:[#allocation46_spill]]  ;;  %s6968_s19 = smov 32   ;;  %vm6916_vm6 = vcmask 260102   ;;  %vm6915_vm7 = vcmask 254977   ;;  %vm6914_vm8 = vcmask 257027   ;;  %vm6913_vm9 = vcmask 259077  }
  0x26   : > { %4829 = vset.pattern.permute.xlu0 %v6917_v5  ;;  %s597_s20 = scalar_select %p596_p10, %s5350_s0, 1  ;;  %4828 = vset.pattern.permute.xlu1 %v6917_v5  ;;  %vm6912_vm10 = vcmask 261127   ;;  %vm1626_vm11 = vcmask 519168   ;;  %vm1786_vm12 = vcmask 130112   ;;  %vm1793_vm13 = vcmask 195712  }
  0x27   : > { %s6989_s8 = sld [smem:[#allocation50_spill]]  ;;  %s6991_s25 = sld [smem:[#allocation43_spill]]  ;;  %vm1800_vm14 = vcmask 261312   ;;  %vm1807_vm15 = vcmask 326912  }
  0x28   : > { %s4384_s21 = sshll.u32 %s597_s20, 3  ;;  %s7069_s5 = sld [smem:[#allocation47_spill]] }
  0x29   : > { %v4830_v0 = vld [vmem:[%s6985_s26] sm:$0xff]   ;;  %v4831_v2 = vld [vmem:[%s6985_s26 + $0x8] sm:$0xff]   ;;  %v4833_v6 = vld [vmem:[%s6985_s26 + $0x10] sm:$0xff]   ;;  %s7070_s6 = sld [smem:[#allocation48_spill]]  ;;  %s7072_s7 = sld [smem:[#allocation49_spill]] }
  0x2a   : > { %4578 = vmatpush3.bf16.msra.mxu0 %v4830_v0  ;;  %v5388_v3 = vld [vmem:[%s6986_s3] sm:$0xff]   ;;  %v5400_v4 = vld [vmem:[%s6986_s3 + $0x8] sm:$0xff]   ;;  %v4835_v7 = vld [vmem:[%s6985_s26 + $0x18] sm:$0xff]   ;;  %s599_s22 = scalar_lea.vmem %s6987_s1, %s4384_s21  ;;  %s6910_s1 = smov 64  }
  0x2b   : > { %4579 = vmatprep.subr.bf16.mxu0 %v6919_v1  ;;  %4590 = vmatpush3.bf16.msra.mxu1 %v5388_v3  ;;  %v608_v8 = vld [vmem:[%s599_s22] sm:$0xff]  ;;  %s6777_s29 = sand.u32 1, %s5216_s28  }
  0x2c   : > { %4591 = vmatprep.subr.bf16.mxu1 %v6919_v1  ;;  %v609_v9 = vpack.c.bf16 %v608_v8, %v608_v8  ;;  %v4387_v14 = vld [vmem:[%s6988_s4] ss:$0 sm:$0xff]  ;;  %s4249_s21 = scalar_lea.sflag [#allocation6], %s6777_s29 }
  0x2e   : > { %4580 = vmatpush3.bf16.msra.mxu0 %v4831_v2 }
  0x2f   : > { %4581 = vmatprep.subr.bf16.mxu0 %v6919_v1  ;;  %4592 = vmatpush3.bf16.msra.mxu1 %v5400_v4 }
  0x30   : > { %4597 = vmatprep.subr.bf16.mxu1 %v6919_v1 }
  0x32   : > { %4582 = vmatpush3.bf16.msra.mxu0 %v4833_v6  ;;  %4594 = vmatmul.mubr.bf16.vlgmr.msra.gmra.mrb[0].mxu1 %v6917_v5 }
  0x33   : > { %4583 = vmatprep.subr.bf16.mxu0 %v6919_v1  ;;  %4598 = vmatpush3.bf16.msra.mxu1 %v5388_v3 }
  0x34   : > { %4601 = vmatprep.mubr.msk.bf16.mxu1 %vm5227_vm0, %v6919_v1  ;;  %4599 = vmatprep.subr.bf16.mxu1 %v6919_v1 }
  0x36   : > { %4584 = vmatpush3.bf16.msra.mxu0 %v4835_v7 }
  0x37   : > { %4605 = vmatprep.subr.bf16.mxu0 %v6919_v1  ;;  %4600 = vmatpush3.bf16.msra.mxu1 %v5400_v4 }
  0x38   : > { %4613 = vmatprep.subr.bf16.mxu1 %v6919_v1 }
  0x39   : > { %4586 = vmatmul.mubr.msk.bf16.vlgmr.msra.gmra.mrb[0].mxu0 %vm649_vm1, %v609_v9 }
  0x3a   : > { %4606 = vmatpush3.bf16.msra.mxu0 %v5388_v3  ;;  %4609 = vmatprep.mubr.msk.bf16.mxu0 %vm5227_vm0, %v6919_v1 }
  0x3b   : > { %4607 = vmatprep.subr.bf16.mxu0 %v6919_v1 }
  0x3e   : > { %4608 = vmatpush3.bf16.msra.mxu0 %v5400_v4 }
  0x3f   : > { %4621 = vmatprep.subr.bf16.mxu0 %v6919_v1 }
 0x105   : > { %v747_v10 = vpop.f32.mrb[0].mxu1 }
 0x106   : > { %v4595_v11 = vpop.f32.mrb[1].mxu1 }
 0x107   : > { %v750_v12 = vpop.f32.mrb[2].mxu1 }
 0x108   : > { %v4596_v13 = vpop.f32.mrb[3].mxu1 }
 0x10c   : > { %v687_v15 = vpop.f32.mrb[0].mxu0 }
 0x10d   : > { %v5437_v16 = vadd.f32 %v4387_v14, %v687_v15  ;;  %v4587_v17 = vpop.f32.mrb[1].mxu0 }
 0x10e   : > { %v690_v18 = vpop.f32.mrb[2].mxu0 }
 0x10f   : > { %v4588_v19 = vpop.f32.mrb[3].mxu0  ;;  %v753_v20 = vadd.f32 %v747_v10, %v5437_v16 }
 0x111   : > { %4878 = vtanh.f32 %v753_v20  ;;  %v4395_v22 = vmul.f32 -1.442695, %v753_v20 }
 0x113   : > { %4880 = vpow2.f32 %v4395_v22 }
 0x11b   : > { %v4879_v21 = vpop.eup %4878 }
 0x11c   : > { %763 = vrot.lane.b32.xlu0 %v4879_v21, %s6910_s1 }
 0x11d   : > { %v4881_v23 = vpop.eup %4880 }
 0x11e   : > { %v757_v24 = vadd.f32 1.0, %v4881_v23 }
 0x120   : > { %4882 = vrcp.f32 %v757_v24 }
 0x12a   : > { %v4883_v25 = vpop.eup %4882 }
 0x12b   : > { %v761_v28 = vmul.f32 0.0, %v4883_v25 }
 0x18e   : > { %v764_v26 = vpop.permute.xlu0 %763 }
 0x18f   : > { %v766_v27 = vmul.f32 %v4883_v25, %v764_v26 }
 0x191   : > { %768 = vrot.lane.b32.xlu0 %v766_v27, %s6968_s19 }
 0x203   : > { %v769_v29 = vpop.permute.xlu0 %768 }
 0x204   : > { %v771_v30 = vadd.f32 %v769_v29, %v761_v28 }
 0x206   : > { %4884 = vtanh.f32 %v771_v30  ;;  %v843_v49 = vrot.slane %v771_v30, 7 }
 0x210   : > { %v4885_v31 = vpop.eup %4884 }
 0x211   : > { %774 = vrot.lane.b32.xlu1 %v4885_v31, %s6910_s1 }
 0x283   : > { %v775_v32 = vpop.permute.xlu1 %774 }
 0x284   : > { %v5443_v33 = vmul.f32 %v4883_v25, %v775_v32 }
 0x286   : > { %v784_v34 = vpack.c.bf16 %v5443_v33, %v5443_v33 }
 0x288   : > { %786 = vrot.lane.b32.xlu1 %v784_v34, %s6968_s19 }
 0x2fa   : > { %v787_v35 = vpop.permute.xlu1 %786 }
 0x2fb   : > { %4602 = vmatmul.mubr.msk.bf16.vlgmr.msra.gmra.mrb[4].mxu1 %vm709_vm2, %v787_v35 }
 0x2fc   : > { %4614 = vmatpush3.bf16.msra.mxu1 %v5388_v3  ;;  %4617 = vmatprep.mubr.msk.bf16.mxu1 %vm5227_vm0, %v6919_v1 }
 0x2fd   : > { %4615 = vmatprep.subr.bf16.mxu1 %v6919_v1 }
 0x300   : > { %4616 = vmatpush3.bf16.msra.mxu1 %v5400_v4 }
 0x301   : > { %4629 = vmatprep.subr.bf16.mxu1 %v6919_v1 }
 0x3ce   : > { %v825_v36 = vpop.f32.mrb[4].mxu1 }
 0x3cf   : > { %v832_v37 = vrot.slane %v825_v36, 7  ;;  %v4603_v38 = vpop.f32.mrb[5].mxu1 }
 0x3d0   : > { %v828_v39 = vpop.f32.mrb[6].mxu1 }
 0x3d1   : > { %v834_v40 = vadd.f32 %v832_v37, %v5437_v16  ;;  %v4604_v41 = vpop.f32.mrb[7].mxu1 }
 0x3d3   : > { %4886 = vtanh.f32 %v834_v40  ;;  %v4397_v43 = vmul.f32 -1.442695, %v834_v40 }
 0x3d5   : > { %4888 = vpow2.f32 %v4397_v43 }
 0x3dd   : > { %v4887_v42 = vpop.eup %4886 }
 0x3de   : > { %847 = vrot.lane.b32.xlu0 %v4887_v42, %s6910_s1 }
 0x3df   : > { %v4889_v44 = vpop.eup %4888 }
 0x3e0   : > { %v838_v45 = vadd.f32 1.0, %v4889_v44 }
 0x3e2   : > { %4890 = vrcp.f32 %v838_v45 }
 0x3ec   : > { %v4891_v46 = vpop.eup %4890 }
 0x3ed   : > { %v845_v50 = vmul.f32 %v4891_v46, %v843_v49 }
 0x450   : > { %v848_v47 = vpop.permute.xlu0 %847 }
 0x451   : > { %v850_v48 = vmul.f32 %v4891_v46, %v848_v47 }
 0x453   : > { %852 = vrot.lane.b32.xlu1 %v850_v48, %s6968_s19 }
 0x4c5   : > { %v853_v51 = vpop.permute.xlu1 %852 }
 0x4c6   : > { %v855_v52 = vadd.f32 %v853_v51, %v845_v50 }
 0x4c8   : > { %4892 = vtanh.f32 %v855_v52  ;;  %v929_v12 = vrot.slane %v855_v52, 7 }
 0x4d2   : > { %v4893_v53 = vpop.eup %4892 }
 0x4d3   : > { %858 = vrot.lane.b32.xlu0 %v4893_v53, %s6910_s1 }
 0x545   : > { %v859_v54 = vpop.permute.xlu0 %858 }
 0x546   : > { %v5459_v55 = vmul.f32 %v4891_v46, %v859_v54 }
 0x548   : > { %v868_v56 = vpack.c.bf16 %v5459_v55, %v5459_v55 }
 0x54a   : > { %v870_v57 = vshrl.u32 %v868_v56, 16 }
 0x54c   : > { %872 = vrot.lane.b32.xlu1 %v870_v57, %s6968_s19 }
 0x5be   : > { %v873_v58 = vpop.permute.xlu1 %872 }
 0x5bf   : > { %4610 = vmatmul.mubr.msk.bf16.vlgmr.msra.gmra.mrb[4].mxu0 %vm709_vm2, %v873_v58 }
 0x5c0   : > { %4622 = vmatpush3.bf16.msra.mxu0 %v5388_v3  ;;  %4625 = vmatprep.mubr.msk.bf16.mxu0 %vm5227_vm0, %v6919_v1 }
 0x5c1   : > { %4623 = vmatprep.subr.bf16.mxu0 %v6919_v1 }
 0x5c4   : > { %4624 = vmatpush3.bf16.msra.mxu0 %v5400_v4 }
 0x5c5   : > { %4637 = vmatprep.subr.bf16.mxu0 %v6919_v1 }
 0x692   : > { %v911_v59 = vpop.f32.mrb[4].mxu0 }
 0x693   : > { %v918_v60 = vrot.slane %v911_v59, 6  ;;  %v4611_v61 = vpop.f32.mrb[5].mxu0 }
 0x694   : > { %v914_v62 = vpop.f32.mrb[6].mxu0 }
 0x695   : > { %v920_v63 = vadd.f32 %v918_v60, %v5437_v16  ;;  %v4612_v0 = vpop.f32.mrb[7].mxu0 }
 0x697   : > { %4894 = vtanh.f32 %v920_v63  ;;  %v4399_v6 = vmul.f32 -1.442695, %v920_v63 }
 0x699   : > { %4896 = vpow2.f32 %v4399_v6 }
 0x6a1   : > { %v4895_v2 = vpop.eup %4894 }
 0x6a2   : > { %933 = vrot.lane.b32.xlu0 %v4895_v2, %s6910_s1 }
 0x6a3   : > { %v4897_v7 = vpop.eup %4896 }
 0x6a4   : > { %v924_v8 = vadd.f32 1.0, %v4897_v7 }
 0x6a6   : > { %4898 = vrcp.f32 %v924_v8 }
 0x6b0   : > { %v4899_v9 = vpop.eup %4898 }
 0x6b1   : > { %v931_v13 = vmul.f32 %v4899_v9, %v929_v12 }
 0x714   : > { %v934_v10 = vpop.permute.xlu0 %933 }
 0x715   : > { %v936_v11 = vmul.f32 %v4899_v9, %v934_v10 }
 0x717   : > { %938 = vrot.lane.b32.xlu1 %v936_v11, %s6968_s19 }
 0x789   : > { %v939_v14 = vpop.permute.xlu1 %938 }
 0x78a   : > { %v941_v15 = vadd.f32 %v939_v14, %v931_v13 }
 0x78c   : > { %4900 = vtanh.f32 %v941_v15  ;;  %v1014_v37 = vrot.slane %v941_v15, 7 }
 0x796   : > { %v4901_v17 = vpop.eup %4900 }
 0x797   : > { %944 = vrot.lane.b32.xlu0 %v4901_v17, %s6910_s1 }
 0x809   : > { %v945_v18 = vpop.permute.xlu0 %944 }
 0x80a   : > { %v5475_v19 = vmul.f32 %v4899_v9, %v945_v18 }
 0x80c   : > { %v954_v20 = vpack.c.bf16 %v5475_v19, %v5475_v19 }
 0x80e   : > { %v956_v21 = vrot.slane %v954_v20, 1 }
 0x810   : > { %957 = vrot.lane.b32.xlu1 %v956_v21, %s6968_s19 }
 0x882   : > { %v958_v22 = vpop.permute.xlu1 %957 }
 0x883   : > { %4618 = vmatmul.mubr.msk.bf16.vlgmr.msra.gmra.mrb[8].mxu1 %vm709_vm2, %v958_v22 }
 0x884   : > { %4630 = vmatpush3.bf16.msra.mxu1 %v5388_v3  ;;  %4633 = vmatprep.mubr.msk.bf16.mxu1 %vm5227_vm0, %v6919_v1 }
 0x885   : > { %4631 = vmatprep.subr.bf16.mxu1 %v6919_v1 }
 0x888   : > { %4632 = vmatpush3.bf16.msra.mxu1 %v5400_v4 }
 0x889   : > { %4645 = vmatprep.subr.bf16.mxu1 %v6919_v1 }
 0x956   : > { %v996_v23 = vpop.f32.mrb[8].mxu1 }
 0x957   : > { %v1003_v24 = vrot.slane %v996_v23, 5  ;;  %v4619_v25 = vpop.f32.mrb[9].mxu1 }
 0x958   : > { %v999_v26 = vpop.f32.mrb[10].mxu1 }
 0x959   : > { %v1005_v27 = vadd.f32 %v1003_v24, %v5437_v16  ;;  %v4620_v28 = vpop.f32.mrb[11].mxu1 }
 0x95b   : > { %4902 = vtanh.f32 %v1005_v27  ;;  %v4401_v30 = vmul.f32 -1.442695, %v1005_v27 }
 0x95d   : > { %4904 = vpow2.f32 %v4401_v30 }
 0x965   : > { %v4903_v29 = vpop.eup %4902 }
 0x966   : > { %1018 = vrot.lane.b32.xlu0 %v4903_v29, %s6910_s1 }
 0x967   : > { %v4905_v31 = vpop.eup %4904 }
 0x968   : > { %v1009_v32 = vadd.f32 1.0, %v4905_v31 }
 0x96a   : > { %4906 = vrcp.f32 %v1009_v32 }
 0x974   : > { %v4907_v34 = vpop.eup %4906 }
 0x975   : > { %v1016_v38 = vmul.f32 %v4907_v34, %v1014_v37 }
 0x9d8   : > { %v1019_v35 = vpop.permute.xlu0 %1018 }
 0x9d9   : > { %v1021_v36 = vmul.f32 %v4907_v34, %v1019_v35 }
 0x9db   : > { %1023 = vrot.lane.b32.xlu1 %v1021_v36, %s6968_s19 }
 0xa4d   : > { %v1024_v39 = vpop.permute.xlu1 %1023 }
 0xa4e   : > { %v1026_v40 = vadd.f32 %v1024_v39, %v1016_v38 }
 0xa50   : > { %4908 = vtanh.f32 %v1026_v40  ;;  %v1101_v62 = vrot.slane %v1026_v40, 7 }
 0xa5a   : > { %v4909_v41 = vpop.eup %4908 }
 0xa5b   : > { %1029 = vrot.lane.b32.xlu0 %v4909_v41, %s6910_s1 }
 0xacd   : > { %v1030_v42 = vpop.permute.xlu0 %1029 }
 0xace   : > { %v5491_v43 = vmul.f32 %v4907_v34, %v1030_v42 }
 0xad0   : > { %v1039_v44 = vpack.c.bf16 %v5491_v43, %v5491_v43 }
 0xad2   : > { %v1041_v45 = vshrl.u32 %v1039_v44, 16 }
 0xad4   : > { %v1043_v46 = vrot.slane %v1041_v45, 1 }
 0xad6   : > { %1044 = vrot.lane.b32.xlu1 %v1043_v46, %s6968_s19 }
 0xb48   : > { %v1045_v47 = vpop.permute.xlu1 %1044 }
 0xb49   : > { %4626 = vmatmul.mubr.msk.bf16.vlgmr.msra.gmra.mrb[8].mxu0 %vm709_vm2, %v1045_v47 }
 0xb4a   : > { %4638 = vmatpush3.bf16.msra.mxu0 %v5388_v3  ;;  %4641 = vmatprep.mubr.msk.bf16.mxu0 %vm5227_vm0, %v6919_v1 }
 0xb4b   : > { %4639 = vmatprep.subr.bf16.mxu0 %v6919_v1 }
 0xb4e   : > { %4640 = vmatpush3.bf16.msra.mxu0 %v5400_v4 }
 0xb4f   : > { %4653 = vmatprep.subr.bf16.mxu0 %v6919_v1 }
 0xc1c   : > { %v1083_v48 = vpop.f32.mrb[8].mxu0 }
 0xc1d   : > { %v1090_v49 = vrot.slane %v1083_v48, 4  ;;  %v4627_v50 = vpop.f32.mrb[9].mxu0 }
 0xc1e   : > { %v1086_v51 = vpop.f32.mrb[10].mxu0 }
 0xc1f   : > { %v1092_v52 = vadd.f32 %v1090_v49, %v5437_v16  ;;  %v4628_v53 = vpop.f32.mrb[11].mxu0 }
 0xc21   : > { %4910 = vtanh.f32 %v1092_v52  ;;  %v4403_v56 = vmul.f32 -1.442695, %v1092_v52 }
 0xc23   : > { %4912 = vpow2.f32 %v4403_v56 }
 0xc2b   : > { %v4911_v54 = vpop.eup %4910 }
 0xc2c   : > { %1105 = vrot.lane.b32.xlu0 %v4911_v54, %s6910_s1 }
 0xc2d   : > { %v4913_v57 = vpop.eup %4912 }
 0xc2e   : > { %v1096_v58 = vadd.f32 1.0, %v4913_v57 }
 0xc30   : > { %4914 = vrcp.f32 %v1096_v58 }
 0xc3a   : > { %v4915_v59 = vpop.eup %4914 }
 0xc3b   : > { %v1103_v63 = vmul.f32 %v4915_v59, %v1101_v62 }
 0xc9e   : > { %v1106_v60 = vpop.permute.xlu0 %1105 }
 0xc9f   : > { %v1108_v61 = vmul.f32 %v4915_v59, %v1106_v60 }
 0xca1   : > { %1110 = vrot.lane.b32.xlu1 %v1108_v61, %s6968_s19 }
 0xd13   : > { %v1111_v0 = vpop.permute.xlu1 %1110 }
 0xd14   : > { %v1113_v2 = vadd.f32 %v1111_v0, %v1103_v63 }
 0xd16   : > { %4916 = vtanh.f32 %v1113_v2  ;;  %v1186_v25 = vrot.slane %v1113_v2, 7 }
 0xd20   : > { %v4917_v6 = vpop.eup %4916 }
 0xd21   : > { %1116 = vrot.lane.b32.xlu0 %v4917_v6, %s6910_s1 }
 0xd93   : > { %v1117_v7 = vpop.permute.xlu0 %1116 }
 0xd94   : > { %v5507_v8 = vmul.f32 %v4915_v59, %v1117_v7 }
 0xd96   : > { %v1126_v9 = vpack.c.bf16 %v5507_v8, %v5507_v8 }
 0xd98   : > { %v1128_v10 = vrot.slane %v1126_v9, 2 }
 0xd9a   : > { %1129 = vrot.lane.b32.xlu1 %v1128_v10, %s6968_s19 }
 0xe0c   : > { %v1130_v11 = vpop.permute.xlu1 %1129 }
 0xe0d   : > { %4634 = vmatmul.mubr.msk.bf16.vlgmr.msra.gmra.mrb[12].mxu1 %vm709_vm2, %v1130_v11 }
 0xe0e   : > { %4646 = vmatpush3.bf16.msra.mxu1 %v5388_v3  ;;  %4649 = vmatprep.mubr.msk.bf16.mxu1 %vm5227_vm0, %v6919_v1 }
 0xe0f   : > { %4647 = vmatprep.subr.bf16.mxu1 %v6919_v1 }
 0xe12   : > { %4648 = vmatpush3.bf16.msra.mxu1 %v5400_v4 }
 0xe13   : > { %4661 = vmatprep.subr.bf16.mxu1 %v6919_v1 }
 0xee0   : > { %v1168_v12 = vpop.f32.mrb[12].mxu1 }
 0xee1   : > { %v1175_v13 = vrot.slane %v1168_v12, 3  ;;  %v4635_v14 = vpop.f32.mrb[13].mxu1 }
 0xee2   : > { %v1171_v15 = vpop.f32.mrb[14].mxu1 }
 0xee3   : > { %v1177_v17 = vadd.f32 %v1175_v13, %v5437_v16  ;;  %v4636_v18 = vpop.f32.mrb[15].mxu1 }
 0xee5   : > { %4918 = vtanh.f32 %v1177_v17  ;;  %v4405_v3 = vmul.f32 -1.442695, %v1177_v17 }
 0xee7   : > { %4920 = vpow2.f32 %v4405_v3 }
 0xeef   : > { %v4919_v20 = vpop.eup %4918 }
 0xef0   : > { %1190 = vrot.lane.b32.xlu0 %v4919_v20, %s6910_s1 }
 0xef1   : > { %v4921_v21 = vpop.eup %4920 }
 0xef2   : > { %v1181_v22 = vadd.f32 1.0, %v4921_v21 }
 0xef4   : > { %4922 = vrcp.f32 %v1181_v22  ;;  %v4836_v22 = vld [vmem:[%s6989_s8] sm:$0xff]  }
 0xefe   : > { %v4923_v23 = vpop.eup %4922 }
 0xeff   : > { %v1188_v26 = vmul.f32 %v4923_v23, %v1186_v25 }
 0xf62   : > { %v1191_v4 = vpop.permute.xlu0 %1190 }
 0xf63   : > { %v1193_v24 = vmul.f32 %v4923_v23, %v1191_v4 }
 0xf65   : > { %1195 = vrot.lane.b32.xlu1 %v1193_v24, %s6968_s19 }
 0xfd7   : > { %v1196_v27 = vpop.permute.xlu1 %1195 }
 0xfd8   : > { %v1198_v28 = vadd.f32 %v1196_v27, %v1188_v26 }
 0xfda   : > { %4924 = vtanh.f32 %v1198_v28  ;;  %v1273_v51 = vrot.slane %v1198_v28, 7 }
 0xfe4   : > { %v4925_v29 = vpop.eup %4924 }
 0xfe5   : > { %1201 = vrot.lane.b32.xlu0 %v4925_v29, %s6910_s1 }
0x1057   : > { %v1202_v30 = vpop.permute.xlu0 %1201 }
0x1058   : > { %v5523_v31 = vmul.f32 %v4923_v23, %v1202_v30  ;;  %v4837_v23 = vld [vmem:[%s6897_s10] sm:$0xff]  }
0x105a   : > { %v1211_v32 = vpack.c.bf16 %v5523_v31, %v5523_v31 }
0x105c   : > { %v1213_v34 = vshrl.u32 %v1211_v32, 16 }
0x105e   : > { %v1215_v35 = vrot.slane %v1213_v34, 2  ;;  %v1489_v34 = vlaneseq }
0x1060   : > { %1216 = vrot.lane.b32.xlu1 %v1215_v35, %s6968_s19 }
0x10d2   : > { %v1217_v36 = vpop.permute.xlu1 %1216 }
0x10d3   : > { %4642 = vmatmul.mubr.msk.bf16.vlgmr.msra.gmra.mrb[12].mxu0 %vm709_vm2, %v1217_v36  ;;  %v5593_v36 = vshrl.u32 %v1489_v34, 7 }
0x10d4   : > { %4657 = vmatprep.mubr.msk.bf16.mxu0 %vm5227_vm0, %v6919_v1  ;;  %4654 = vmatpush3.bf16.msra.mxu0 %v4836_v22 }
0x10d5   : > { %4655 = vmatprep.subr.bf16.mxu0 %v6919_v1 }
0x11a6   : > { %v1255_v37 = vpop.f32.mrb[12].mxu0 }
0x11a7   : > { %v1262_v38 = vrot.slane %v1255_v37, 2  ;;  %v4643_v39 = vpop.f32.mrb[13].mxu0 }
0x11a8   : > { %v1258_v40 = vpop.f32.mrb[14].mxu0 }
0x11a9   : > { %v1264_v41 = vadd.f32 %v1262_v38, %v5437_v16  ;;  %v4644_v42 = vpop.f32.mrb[15].mxu0 }
0x11ab   : > { %4926 = vtanh.f32 %v1264_v41  ;;  %v4407_v45 = vmul.f32 -1.442695, %v1264_v41  ;;  %v5600_v41 = vsub.s32 0, %v5593_v36 }
0x11ad   : > { %4928 = vpow2.f32 %v4407_v45 }
0x11b5   : > { %v4927_v44 = vpop.eup %4926 }
0x11b6   : > { %1277 = vrot.lane.b32.xlu0 %v4927_v44, %s6910_s1 }
0x11b7   : > { %v4929_v46 = vpop.eup %4928 }
0x11b8   : > { %v1268_v47 = vadd.f32 1.0, %v4929_v46 }
0x11ba   : > { %4930 = vrcp.f32 %v1268_v47 }
0x11c4   : > { %v4931_v48 = vpop.eup %4930 }
0x11c5   : > { %v1275_v52 = vmul.f32 %v4931_v48, %v1273_v51 }
0x1228   : > { %v1278_v49 = vpop.permute.xlu0 %1277 }
0x1229   : > { %v1280_v50 = vmul.f32 %v4931_v48, %v1278_v49 }
0x122b   : > { %1282 = vrot.lane.b32.xlu1 %v1280_v50, %s6968_s19 }
0x129d   : > { %v1283_v53 = vpop.permute.xlu1 %1282 }
0x129e   : > { %v1285_v54 = vadd.f32 %v1283_v53, %v1275_v52 }
0x12a0   : > { %4932 = vtanh.f32 %v1285_v54 }
0x12aa   : > { %v4933_v56 = vpop.eup %4932 }
0x12ab   : > { %1288 = vrot.lane.b32.xlu0 %v4933_v56, %s6910_s1 }
0x131d   : > { %v1289_v57 = vpop.permute.xlu0 %1288 }
0x131e   : > { %v1291_v58 = vmul.f32 %v4931_v48, %v1289_v57 }
0x1320   : > { %v1298_v59 = vpack.c.bf16 %v1291_v58, %v1291_v58 }
0x1322   : > { %v1300_v60 = vrot.slane %v1298_v59, 3 }
0x1324   : > { %1301 = vrot.lane.b32.xlu1 %v1300_v60, %s6968_s19 }
0x1396   : > { %v1302_v61 = vpop.permute.xlu1 %1301 }
0x1397   : > { %4650 = vmatmul.mubr.msk.bf16.vlgmr.msra.gmra.mrb[16].mxu1 %vm709_vm2, %v1302_v61 }
0x1398   : > { %4665 = vmatprep.mubr.msk.bf16.mxu1 %vm5227_vm0, %v6919_v1  ;;  %4662 = vmatpush3.bf16.msra.mxu1 %v4837_v23 }
0x1399   : > { %4663 = vmatprep.subr.bf16.mxu1 %v6919_v1 }
0x146a   : > { %v1340_v62 = vpop.f32.mrb[16].mxu1 }
0x146b   : > { %v1347_v63 = vrot.slane %v1340_v62, 1  ;;  %v4651_v0 = vpop.f32.mrb[17].mxu1 }
0x146c   : > { %v1343_v2 = vpop.f32.mrb[18].mxu1 }
0x146d   : > { %v1349_v6 = vadd.f32 %v1347_v63, %v5437_v16  ;;  %v4652_v7 = vpop.f32.mrb[19].mxu1  ;;  %v1358_v16 = vrot.slane %v1285_v54, 7 }
0x146f   : > { %4934 = vtanh.f32 %v1349_v6  ;;  %v4409_v10 = vmul.f32 -1.442695, %v1349_v6 }
0x1471   : > { %4936 = vpow2.f32 %v4409_v10 }
0x1479   : > { %v4935_v9 = vpop.eup %4934 }
0x147a   : > { %1362 = vrot.lane.b32.xlu0 %v4935_v9, %s6910_s1 }
0x147b   : > { %v4937_v11 = vpop.eup %4936 }
0x147c   : > { %v1353_v12 = vadd.f32 1.0, %v4937_v11 }
0x147e   : > { %4938 = vrcp.f32 %v1353_v12 }
0x1488   : > { %v4939_v13 = vpop.eup %4938 }
0x1489   : > { %v1360_v17 = vmul.f32 %v4939_v13, %v1358_v16 }
0x14ec   : > { %v1363_v14 = vpop.permute.xlu0 %1362 }
0x14ed   : > { %v1365_v15 = vmul.f32 %v4939_v13, %v1363_v14 }
0x14ef   : > { %1367 = vrot.lane.b32.xlu1 %v1365_v15, %s6968_s19 }
0x14f3   : > { %779 = vrot.lane.b32.xlu1 %v5443_v33, %s6968_s19 }
0x14f7   : > { %949 = vrot.lane.b32.xlu1 %v5475_v19, %s6968_s19 }
0x14fb   : > { %1121 = vrot.lane.b32.xlu1 %v5507_v8, %s6968_s19 }
0x14ff   : > { %1293 = vrot.lane.b32.xlu1 %v1291_v58, %s6968_s19 }
0x1561   : > { %v1368_v18 = vpop.permute.xlu1 %1367 }
0x1562   : > { %v1370_v20 = vadd.f32 %v1368_v18, %v1360_v17 }
0x1564   : > { %4940 = vtanh.f32 %v1370_v20 }
0x1565   : > { %v780_v3 = vpop.permute.xlu1 %779 }
0x1566   : > { %783 = vst.msk [vmem:[#allocation2] sm:$0x1] %vm6934_vm3, %v780_v3  ;;  %vm1992_vm3 = vcmask 293888  }
0x1569   : > { %v950_v21 = vpop.permute.xlu1 %949 }
0x156a   : > { %953 = vst.msk [vmem:[#allocation2] sm:$0x4] %vm6933_vm4, %v950_v21  ;;  %vm1989_vm4 = vcmask 1047559  }
0x156d   : > { %v1122_v33 = vpop.permute.xlu1 %1121 }
0x156e   : > { %v4941_v19 = vpop.eup %4940  ;;  %1125 = vst.msk [vmem:[#allocation2] sm:$0x10] %vm6932_vm5, %v1122_v33  ;;  %vm1987_vm5 = vcmask 1046534  }
0x156f   : > { %1373 = vrot.lane.b32.xlu0 %v4941_v19, %s6910_s1  ;;  %s4385_s1 = sshll.u32 %s5350_s0, 3 }
0x1570   : > { %p601_p11 = scmp.lt.s32.totalorder %s4385_s1, 15 }
0x1571   : > { %v1294_v8 = vpop.permute.xlu1 %1293 }
0x1572   : > { %1297 = vst.msk [vmem:[#allocation2] sm:$0x40] %vm6916_vm6, %v1294_v8  ;;  %s7091_s1 = smov (!%p601_p11, %s4385_s1), 15  ;;  %vm1985_vm6 = vcmask 1045509  }
0x1573   : > { %863 = vrot.lane.b32.xlu0 %v5459_v55, %s6968_s19  ;;  %v4838_v55 = vld [vmem:[%s6989_s8 + $0x8] sm:$0xff]   ;;  %s4777_s20 = smul.u32 40, %s7091_s1  ;;  %s7073_s1 = smov 64  }
0x1574   : > { %4656 = vmatpush3.bf16.msra.mxu0 %v4838_v55 }
0x1575   : > { %4681 = vmatprep.subr.bf16.mxu0 %v6919_v1  ;;  %s5605_s22 = scalar_lea.vmem %s6991_s25, %s4777_s20  ;;  %s4382_s20 = sshll.u32 %s6777_s29, 3 }
0x1576   : > { %v1385_v48 = vld [vmem:[%s5605_s22 + $0x8] sm:$0xff]  ;;  %v1384_v49 = vld [vmem:[%s5605_s22] sm:$0xff]  ;;  %v1386_v51 = vld [vmem:[%s5605_s22 + $0x10] sm:$0xff]  ;;  %s595_s24 = scalar_lea.vmem [#allocation5], %s4382_s20  ;;  %s6970_s25 = sshll.u32 %s5350_s0, 7 }
0x1577   : > { %1034 = vrot.lane.b32.xlu0 %v5491_v43, %s6968_s19  ;;  %v4839_v43 = vld [vmem:[%s6897_s10 + $0x8] sm:$0xff]   ;;  %v1388_v52 = vld [vmem:[%s5605_s22 + $0x20] sm:$0xf]  ;;  %v1387_v61 = vld [vmem:[%s5605_s22 + $0x18] sm:$0xff] }
0x1578   : > { %4664 = vmatpush3.bf16.msra.mxu1 %v4839_v43  ;;  %v1390_v62 = vld [vmem:[%s5605_s22 + $0x30] sm:$0xff]  ;;  %v1391_v9 = vld [vmem:[%s5605_s22 + $0x38] sm:$0xff]  ;;  %v1389_v10 = vld [vmem:[%s5605_s22 + $0x28] sm:$0xff] }
0x1579   : > { %4669 = vmatprep.subr.bf16.mxu1 %v6919_v1  ;;  %v1395_v17 = vld [vmem:[%s5605_s22 + $0x58] sm:$0xff]  ;;  %v1394_v18 = vld [vmem:[%s5605_s22 + $0x50] sm:$0xff]  ;;  %v1392_v8 = vld [vmem:[%s5605_s22 + $0x40] sm:$0xff] }
0x157a   : > { %v1396_v22 = vld [vmem:[%s5605_s22 + $0x60] sm:$0xff] }
0x157b   : > { %1206 = vrot.lane.b32.xlu0 %v5523_v31, %s6968_s19  ;;  %v5231_v31 = vmov 1966171168  }
0x157c   : > { %v1487_v32 = vunpack.c.l.s4 %v5231_v31 }
0x157e   : > { %v1488_v35 = vunpack.c.0.s8 %v1487_v32 }
0x1580   : > { %v5596_v37 = vsub.s32 %v1488_v35, %v5593_v36 }
0x15e1   : > { %v1374_v4 = vpop.permute.xlu0 %1373 }
0x15e2   : > { %v1376_v24 = vmul.f32 %v4939_v13, %v1374_v4 }
0x15e4   : > { %1378 = vrot.lane.b32.xlu0 %v1376_v24, %s6968_s19 }
0x15e5   : > { %v864_v25 = vpop.permute.xlu0 %863 }
0x15e6   : > { %867 = vst.msk [vmem:[#allocation2] sm:$0x2] %vm6915_vm7, %v864_v25  ;;  %v1397_v25 = vld [vmem:[%s5605_s22 + $0x68] sm:$0xff]  ;;  %vm1983_vm7 = vcmask 1044484  }
0x15e9   : > { %v1035_v26 = vpop.permute.xlu0 %1034 }
0x15ea   : > { %1038 = vst.msk [vmem:[#allocation2] sm:$0x8] %vm6914_vm8, %v1035_v26  ;;  %v1393_v26 = vld [vmem:[%s5605_s22 + $0x48] sm:$0xf]  ;;  %vm1981_vm8 = vcmask 1043459  }
0x15ed   : > { %v1207_v27 = vpop.permute.xlu0 %1206 }
0x15ee   : > { %1210 = vst.msk [vmem:[#allocation2] sm:$0x20] %vm6913_vm9, %v1207_v27  ;;  %vm1979_vm9 = vcmask 1042434  }
0x1656   : > { %v1379_v28 = vpop.permute.xlu0 %1378 }
0x1657   : > { %1382 = vst.msk [vmem:[#allocation2] sm:$0x80] %vm6912_vm10, %v1379_v28  ;;  %vm1977_vm10 = vcmask 1041409  }
0x165e   : > { %v1383_v29 = vld [vmem:[#allocation2] sm:$0xff] }
0x165f   : > { %v5581_v30 = vpack.c.bf16 %v1383_v29, %v1383_v29 }
0x1661   : > { %6990 = vst [vmem:[#allocation12_spill] sm:$0xff] %v5581_v30  ;;  %4658 = vmatmul.mubr.msk.bf16.vlgmr.msra.gmra.mrb[16].mxu0 %vm709_vm2, %v5581_v30  ;;  %4666 = vmatmul.mubr.msk.bf16.vlgmr.msra.gmra.mrb[20].mxu1 %vm709_vm2, %v5581_v30 }
0x1662   : > { %4677 = vmatprep.mubr.msk.bf16.mxu1 %vm5227_vm0, %v6919_v1  ;;  %4685 = vmatprep.mubr.msk.bf16.mxu0 %vm5227_vm0, %v6919_v1 }
0x1734   : > { %v1478_v38 = vpop.f32.mrb[16].mxu0 }
0x1735   : > { %v1492_v39 = vrot.slane %v1478_v38, %v5596_v37  ;;  %v4659_v40 = vpop.f32.mrb[17].mxu0  ;;  %v1485_v11 = vcombine.high %v1478_v38, %v1478_v38  ;;  %v1405_v38 = vld [vmem:[%s5605_s22 + $0xa8] sm:$0xff] }
0x1736   : > { %v1481_v42 = vpop.f32.mrb[18].mxu0 }
0x1737   : > { %v1500_v44 = vcombine.high %v1492_v39, %v1492_v39  ;;  %v1508_v45 = vrot.slane %v1492_v39, %v5596_v37  ;;  %v4660_v46 = vpop.f32.mrb[19].mxu0  ;;  %v1499_v20 = vrot.slane %v1485_v11, %v5596_v37  ;;  %v1404_v39 = vld [vmem:[%s5605_s22 + $0xa0] sm:$0xff] }
0x1739   : > { %v5609_v47 = vrot.slane %v1500_v44, %v5596_v37  ;;  %v1537_v50 = vrot.slane %v1508_v45, %v5600_v41  ;;  %v1530_v63 = vcombine.high %v1508_v45, %v1508_v45  ;;  %v5637_v23 = vrot.slane %v1499_v20, %v5596_v37 }
0x173b   : > { %v1575_v53 = vmul.f32 %v1537_v50, %v1385_v48  ;;  %v1574_v54 = vmul.f32 %v1537_v50, %v1384_v49  ;;  %v1541_v56 = vrot.slane %v5609_v47, %v5600_v41  ;;  %v1576_v59 = vmul.f32 %v1537_v50, %v1386_v51  ;;  %v1398_v48 = vld [vmem:[%s5605_s22 + $0x70] sm:$0xf] }
0x173c   : > { %v1578_v60 = vmul.f32 %v1537_v50, %v1388_v52  ;;  %v1577_v6 = vmul.f32 %v1537_v50, %v1387_v61  ;;  %v1545_v12 = vrot.slane %v1530_v63, %v5600_v41  ;;  %v1532_v27 = vcombine.high %v5609_v47, %v5609_v47  ;;  %v1400_v47 = vld [vmem:[%s5605_s22 + $0x80] sm:$0xff]  ;;  %v1407_v63 = vld [vmem:[%s5605_s22 + $0xb8] sm:$0xff] }
0x173d   : > { %v1617_v57 = vsel %vm649_vm1, %v1575_v53, 0.0  ;;  %v1614_v58 = vsel %vm649_vm1, %v1574_v54, 0.0  ;;  %v1620_v0 = vsel %vm649_vm1, %v1576_v59, 0.0  ;;  %v1580_v7 = vmul.f32 %v1541_v56, %v1390_v62  ;;  %v1401_v54 = vld [vmem:[%s5605_s22 + $0x88] sm:$0xff]  ;;  %v1402_v62 = vld [vmem:[%s5605_s22 + $0x90] sm:$0xff] }
0x173e   : > { %1618 = vadd.xlane.f32.xlu0 %v1617_v57  ;;  %1615 = vadd.xlane.f32.xlu1 %v1614_v58  ;;  %v1627_v2 = vsel %vm1626_vm11, %v1578_v60, 0.0  ;;  %v1623_v13 = vsel %vm649_vm1, %v1577_v6, 0.0  ;;  %v1581_v15 = vmul.f32 %v1541_v56, %v1391_v9  ;;  %v1579_v16 = vmul.f32 %v1541_v56, %v1389_v10  ;;  %v1408_v9 = vld [vmem:[%s5605_s22 + $0xc0] sm:$0xf]  ;;  %v1409_v10 = vld [vmem:[%s5605_s22 + $0xc8] sm:$0xff] }
0x173f   : > { %v1633_v14 = vsel %vm649_vm1, %v1580_v7, 0.0  ;;  %v1585_v33 = vmul.f32 %v1545_v12, %v1395_v17  ;;  %v1584_v19 = vmul.f32 %v1545_v12, %v1394_v18  ;;  %v1582_v4 = vmul.f32 %v1541_v56, %v1392_v8 }
0x1740   : > { %v1636_v3 = vsel %vm649_vm1, %v1581_v15, 0.0  ;;  %v1630_v21 = vsel %vm649_vm1, %v1579_v16, 0.0  ;;  %v1586_v24 = vmul.f32 %v1545_v12, %v1396_v22  ;;  %v1553_v28 = vrot.slane %v5637_v23, %v5600_v41  ;;  %v1399_v15 = vld [vmem:[%s5605_s22 + $0x78] sm:$0xff] }
0x1741   : > { %v1648_v55 = vsel %vm649_vm1, %v1585_v33, 0.0  ;;  %v1645_v43 = vsel %vm649_vm1, %v1584_v19, 0.0  ;;  %v1639_v29 = vsel %vm649_vm1, %v1582_v4, 0.0  ;;  %v1587_v32 = vmul.f32 %v1545_v12, %v1397_v25  ;;  %v1403_v16 = vld [vmem:[%s5605_s22 + $0x98] sm:$0xf]  ;;  %v1410_v33 = vld [vmem:[%s5605_s22 + $0xd0] sm:$0xff] }
0x1742   : > { %1621 = vadd.xlane.f32.xlu0 %v1620_v0  ;;  %1628 = vadd.xlane.f32.xlu1 %v1627_v2  ;;  %v1651_v31 = vsel %vm649_vm1, %v1586_v24, 0.0  ;;  %v1583_v35 = vmul.f32 %v1541_v56, %v1393_v26  ;;  %v1549_v40 = vrot.slane %v1532_v27, %v5600_v41  ;;  %v1595_v45 = vmul.f32 %v1553_v28, %v1405_v38  ;;  %v1406_v56 = vld [vmem:[%s5605_s22 + $0xb0] sm:$0xff]  ;;  %v1411_v19 = vld [vmem:[%s5605_s22 + $0xd8] sm:$0xff] }
0x1743   : > { %v1654_v42 = vsel %vm649_vm1, %v1587_v32, 0.0  ;;  %v1594_v46 = vmul.f32 %v1553_v28, %v1404_v39  ;;  %v1501_v49 = vcombine.high %v1499_v20, %v1499_v20  ;;  %v1588_v53 = vmul.f32 %v1545_v12, %v1398_v48  ;;  %v1414_v4 = vld [vmem:[%s5605_s22 + $0xf0] sm:$0xff]  ;;  %v1415_v24 = vld [vmem:[%s5605_s22 + $0xf8] sm:$0xff] }
0x1744   : > { %v1642_v44 = vsel %vm1626_vm11, %v1583_v35, 0.0  ;;  %v1678_v50 = vsel %vm649_vm1, %v1595_v45, 0.0  ;;  %v1590_v52 = vmul.f32 %v1549_v40, %v1400_v47  ;;  %v1591_v60 = vmul.f32 %v1549_v40, %v1401_v54 }
0x1745   : > { %v1675_v51 = vsel %vm649_vm1, %v1594_v46, 0.0  ;;  %v1529_v57 = vrot.slane %v1501_v49, %v5596_v37  ;;  %v1657_v59 = vsel %vm1626_vm11, %v1588_v53, 0.0  ;;  %v1596_v61 = vmul.f32 %v1553_v28, %v1406_v56 }
0x1746   : > { %1624 = vadd.xlane.f32.xlu0 %v1623_v13  ;;  %1634 = vadd.xlane.f32.xlu1 %v1633_v14  ;;  %v1663_v58 = vsel %vm649_vm1, %v1590_v52, 0.0  ;;  %v1666_v2 = vsel %vm649_vm1, %v1591_v60, 0.0  ;;  %v1592_v6 = vmul.f32 %v1549_v40, %v1402_v62  ;;  %v1597_v7 = vmul.f32 %v1553_v28, %v1407_v63  ;;  %v1423_v63 = vld [vmem:[%s5605_s22 + $0x138] sm:$0xf] }
0x1747   : > { %v1557_v0 = vrot.slane %v1529_v57, %v5600_v41  ;;  %v1681_v37 = vsel %vm649_vm1, %v1596_v61, 0.0  ;;  %v1598_v13 = vmul.f32 %v1553_v28, %v1408_v9  ;;  %v1531_v17 = vcombine.high %v5637_v23, %v5637_v23 }
0x1748   : > { %v1669_v11 = vsel %vm649_vm1, %v1592_v6, 0.0  ;;  %v1684_v12 = vsel %vm649_vm1, %v1597_v7, 0.0  ;;  %v1533_v32 = vcombine.high %v1529_v57, %v1529_v57  ;;  %v1420_v57 = vld [vmem:[%s5605_s22 + $0x120] sm:$0xff] }
0x1749   : > { %v1599_v14 = vmul.f32 %v1557_v0, %v1409_v10  ;;  %v1687_v18 = vsel %vm1626_vm11, %v1598_v13, 0.0  ;;  %v1561_v8 = vrot.slane %v1531_v17, %v5600_v41 }
0x174a   : > { %1637 = vadd.xlane.f32.xlu1 %v1636_v3  ;;  %1631 = vadd.xlane.f32.xlu0 %v1630_v21  ;;  %v1589_v3 = vmul.f32 %v1549_v40, %v1399_v15  ;;  %v1593_v21 = vmul.f32 %v1549_v40, %v1403_v16  ;;  %v1565_v45 = vrot.slane %v1533_v32, %v5600_v41 }
0x174b   : > { %v1690_v20 = vsel %vm649_vm1, %v1599_v14, 0.0  ;;  %v1604_v27 = vmul.f32 %v1561_v8, %v1414_v4  ;;  %v1605_v28 = vmul.f32 %v1561_v8, %v1415_v24 }
0x174c   : > { %v1660_v22 = vsel %vm649_vm1, %v1589_v3, 0.0  ;;  %v1672_v23 = vsel %vm1626_vm11, %v1593_v21, 0.0  ;;  %v1610_v61 = vmul.f32 %v1565_v45, %v1420_v57  ;;  %v1613_v6 = vmul.f32 %v1565_v45, %v1423_v63 }
0x174d   : > { %v1705_v35 = vsel %vm649_vm1, %v1604_v27, 0.0  ;;  %v1708_v38 = vsel %vm649_vm1, %v1605_v28, 0.0 }
0x174e   : > { %1649 = vadd.xlane.f32.xlu1 %v1648_v55  ;;  %1646 = vadd.xlane.f32.xlu0 %v1645_v43  ;;  %v1600_v55 = vmul.f32 %v1557_v0, %v1410_v33  ;;  %v1601_v43 = vmul.f32 %v1557_v0, %v1411_v19  ;;  %v1732_v9 = vsel %vm1626_vm11, %v1613_v6, 0.0 }
0x1750   : > { %v1693_v25 = vsel %vm649_vm1, %v1600_v55, 0.0  ;;  %v1696_v26 = vsel %vm649_vm1, %v1601_v43, 0.0 }
0x1752   : > { %1640 = vadd.xlane.f32.xlu1 %v1639_v29  ;;  %1652 = vadd.xlane.f32.xlu0 %v1651_v31  ;;  %v1416_v29 = vld [vmem:[%s5605_s22 + $0x100] sm:$0xff] }
0x1753   : > { %v1412_v31 = vld [vmem:[%s5605_s22 + $0xe0] sm:$0xff]  ;;  %v1606_v39 = vmul.f32 %v1561_v8, %v1416_v29  ;;  %v1776_v29 = vand.u32 127, %v1489_v34 }
0x1754   : > { %v1602_v40 = vmul.f32 %v1557_v0, %v1412_v31 }
0x1755   : > { %v1711_v46 = vsel %vm649_vm1, %v1606_v39, 0.0  ;;  %v1795_v39 = vadd.s32 4294967272, %v1776_v29 }
0x1756   : > { %1655 = vadd.xlane.f32.xlu1 %v1654_v42  ;;  %1643 = vadd.xlane.f32.xlu0 %v1642_v44  ;;  %v1417_v42 = vld [vmem:[%s5605_s22 + $0x108] sm:$0xff]  ;;  %v1699_v47 = vsel %vm649_vm1, %v1602_v40, 0.0 }
0x1757   : > { %v1413_v44 = vld [vmem:[%s5605_s22 + $0xe8] sm:$0xf]  ;;  %v1607_v48 = vmul.f32 %v1561_v8, %v1417_v42 }
0x1758   : > { %v1603_v49 = vmul.f32 %v1557_v0, %v1413_v44  ;;  %v1422_v0 = vld [vmem:[%s5605_s22 + $0x130] sm:$0xff] }
0x1759   : > { %v1714_v52 = vsel %vm649_vm1, %v1607_v48, 0.0  ;;  %v1612_v7 = vmul.f32 %v1565_v45, %v1422_v0 }
0x175a   : > { %1679 = vadd.xlane.f32.xlu0 %v1678_v50  ;;  %1676 = vadd.xlane.f32.xlu1 %v1675_v51  ;;  %v1418_v50 = vld [vmem:[%s5605_s22 + $0x110] sm:$0xf]  ;;  %v1419_v51 = vld [vmem:[%s5605_s22 + $0x118] sm:$0xff]  ;;  %v1702_v53 = vsel %vm1626_vm11, %v1603_v49, 0.0 }
0x175b   : > { %v1608_v54 = vmul.f32 %v1561_v8, %v1418_v50  ;;  %v1609_v56 = vmul.f32 %v1565_v45, %v1419_v51  ;;  %v1729_v10 = vsel %vm649_vm1, %v1612_v7, 0.0 }
0x175d   : > { %v1720_v60 = vsel %vm649_vm1, %v1609_v56, 0.0 }
0x175e   : > { %1664 = vadd.xlane.f32.xlu0 %v1663_v58  ;;  %1658 = vadd.xlane.f32.xlu1 %v1657_v59  ;;  %v1421_v58 = vld [vmem:[%s5605_s22 + $0x128] sm:$0xff]  ;;  %v1717_v59 = vsel %vm1626_vm11, %v1608_v54, 0.0 }
0x175f   : > { %v1611_v62 = vmul.f32 %v1565_v45, %v1421_v58  ;;  %v5771_v45 = vsub.s32 %v1776_v29, %v5593_v36 }
0x1761   : > { %6995 = vst [vmem:[#allocation16_spill] sm:$0xff] %v5771_v45 }
0x1762   : > { %1667 = vadd.xlane.f32.xlu0 %v1666_v2  ;;  %1682 = vadd.xlane.f32.xlu1 %v1681_v37  ;;  %v1723_v2 = vsel %vm649_vm1, %v1610_v61, 0.0  ;;  %v1726_v37 = vsel %vm649_vm1, %v1611_v62, 0.0 }
0x1766   : > { %1670 = vadd.xlane.f32.xlu0 %v1669_v11  ;;  %1685 = vadd.xlane.f32.xlu1 %v1684_v12 }
0x176a   : > { %1688 = vadd.xlane.f32.xlu1 %v1687_v18  ;;  %1691 = vadd.xlane.f32.xlu0 %v1690_v20 }
0x176e   : > { %1661 = vadd.xlane.f32.xlu1 %v1660_v22  ;;  %1673 = vadd.xlane.f32.xlu0 %v1672_v23 }
0x1772   : > { %1694 = vadd.xlane.f32.xlu1 %v1693_v25  ;;  %1697 = vadd.xlane.f32.xlu0 %v1696_v26 }
0x1776   : > { %1706 = vadd.xlane.f32.xlu1 %v1705_v35  ;;  %1709 = vadd.xlane.f32.xlu0 %v1708_v38  ;;  %v1781_v35 = vadd.s32 4294967288, %v1776_v29  ;;  %v1788_v38 = vadd.s32 4294967280, %v1776_v29 }
0x1778   : > { %v5768_v44 = vsub.s32 %v1781_v35, %v5593_v36  ;;  %v5774_v34 = vsub.s32 %v1788_v38, %v5593_v36 }
0x177a   : > { %1712 = vadd.xlane.f32.xlu1 %v1711_v46  ;;  %1700 = vadd.xlane.f32.xlu0 %v1699_v47  ;;  %6994 = vst [vmem:[#allocation15_spill] sm:$0xff] %v5768_v44  ;;  %v1802_v46 = vadd.s32 4294967264, %v1776_v29  ;;  %v5777_v47 = vsub.s32 %v1795_v39, %v5593_v36 }
0x177e   : > { %1715 = vadd.xlane.f32.xlu1 %v1714_v52  ;;  %1703 = vadd.xlane.f32.xlu0 %v1702_v53  ;;  %v5790_v53 = vsub.s32 %v1802_v46, %v5593_v36 }
0x1782   : > { %1718 = vadd.xlane.f32.xlu1 %v1717_v59  ;;  %1721 = vadd.xlane.f32.xlu0 %v1720_v60 }
0x1786   : > { %1724 = vadd.xlane.f32.xlu1 %v1723_v2  ;;  %1727 = vadd.xlane.f32.xlu0 %v1726_v37 }
0x178a   : > { %1733 = vadd.xlane.f32.xlu1 %v1732_v9  ;;  %1730 = vadd.xlane.f32.xlu0 %v1729_v10 }
0x17cb   : > { %v5710_v11 = vpop.xlane.xlu0 %1618  ;;  %v5712_v12 = vpop.xlane.xlu1 %1615 }
0x17cc   : > { %v1785_v51 = vrot.slane %v5710_v11, %v5768_v44  ;;  %v1780_v52 = vrot.slane %v5712_v12, %v5771_v45 }
0x17ce   : > { %v1787_v7 = vsel %vm1786_vm12, %v1785_v51, %v1780_v52 }
0x17cf   : > { %v5714_v13 = vpop.xlane.xlu0 %1621  ;;  %v5716_v14 = vpop.xlane.xlu1 %1628 }
0x17d0   : > { %v1792_v56 = vrot.slane %v5714_v13, %v5774_v34  ;;  %v1806_v9 = vrot.slane %v5716_v14, %v5790_v53 }
0x17d2   : > { %v1794_v29 = vsel %vm1793_vm13, %v1792_v56, %v1787_v7 }
0x17d3   : > { %v5718_v15 = vpop.xlane.xlu0 %1624  ;;  %v5720_v16 = vpop.xlane.xlu1 %1634 }
0x17d4   : > { %v1816_v54 = vrot.slane %v5720_v16, %v5768_v44  ;;  %v1799_v59 = vrot.slane %v5718_v15, %v5777_v47 }
0x17d6   : > { %v1801_v46 = vsel %vm1800_vm14, %v1799_v59, %v1794_v29 }
0x17d7   : > { %v5722_v17 = vpop.xlane.xlu1 %1637  ;;  %v5724_v18 = vpop.xlane.xlu0 %1631  ;;  %v1808_v7 = vsel %vm1807_vm15, %v1806_v9, %v1801_v46 }
0x17d8   : > { %v1812_v48 = vrot.slane %v5724_v18, %v5771_v45  ;;  %v1821_v57 = vrot.slane %v5722_v17, %v5774_v34 }
0x17da   : > { %v1817_v60 = vsel %vm1786_vm12, %v1816_v54, %v1812_v48 }
0x17db   : > { %v5726_v20 = vpop.xlane.xlu1 %1649  ;;  %v5728_v3 = vpop.xlane.xlu0 %1646  ;;  %v1822_v35 = vsel %vm1793_vm13, %v1821_v57, %v1817_v60 }
0x17dc   : > { %v1840_v0 = vrot.slane %v5726_v20, %v5768_v44  ;;  %v1836_v2 = vrot.slane %v5728_v3, %v5771_v45 }
0x17de   : > { %v1841_v57 = vsel %vm1786_vm12, %v1840_v0, %v1836_v2 }
0x17df   : > { %v5730_v21 = vpop.xlane.xlu1 %1640  ;;  %v5732_v33 = vpop.xlane.xlu0 %1652 }
0x17e0   : > { %v1826_v61 = vrot.slane %v5730_v21, %v5777_v47  ;;  %v1845_v10 = vrot.slane %v5732_v33, %v5774_v34 }
0x17e2   : > { %v1827_v48 = vsel %vm1800_vm14, %v1826_v61, %v1822_v35  ;;  %v1846_v61 = vsel %vm1793_vm13, %v1845_v10, %v1841_v57 }
0x17e3   : > { %v5734_v19 = vpop.xlane.xlu1 %1655  ;;  %v5736_v8 = vpop.xlane.xlu0 %1643 }
0x17e4   : > { %v1831_v37 = vrot.slane %v5736_v8, %v5790_v53  ;;  %v1850_v38 = vrot.slane %v5734_v19, %v5777_v47 }
0x17e6   : > { %v1832_v60 = vsel %vm1807_vm15, %v1831_v37, %v1827_v48  ;;  %v1851_v29 = vsel %vm1800_vm14, %v1850_v38, %v1846_v61 }
0x17e7   : > { %v5738_v22 = vpop.xlane.xlu0 %1679  ;;  %v5740_v23 = vpop.xlane.xlu1 %1676  ;;  %v1978_v37 = vsel %vm1977_vm10, %v1832_v60, %v1808_v7 }
0x17e8   : > { %v1884_v59 = vrot.slane %v5740_v23, %v5771_v45 }
0x17eb   : > { %v5742_v55 = vpop.xlane.xlu0 %1664  ;;  %v5744_v43 = vpop.xlane.xlu1 %1658 }
0x17ec   : > { %v1864_v6 = vrot.slane %v5742_v55, %v5768_v44  ;;  %v1855_v51 = vrot.slane %v5744_v43, %v5790_v53 }
0x17ee   : > { %v1856_v35 = vsel %vm1807_vm15, %v1855_v51, %v1851_v29 }
0x17ef   : > { %v5746_v4 = vpop.xlane.xlu0 %1667  ;;  %v5748_v24 = vpop.xlane.xlu1 %1682 }
0x17f0   : > { %v1869_v52 = vrot.slane %v5746_v4, %v5774_v34  ;;  %v1893_v38 = vrot.slane %v5748_v24, %v5774_v34 }
0x17f3   : > { %v5750_v25 = vpop.xlane.xlu0 %1670  ;;  %v5752_v26 = vpop.xlane.xlu1 %1685 }
0x17f4   : > { %6992 = vst [vmem:[#allocation13_spill] sm:$0xff] %v5752_v26  ;;  %v1874_v0 = vrot.slane %v5750_v25, %v5777_v47  ;;  %v1898_v7 = vrot.slane %v5752_v26, %v5777_v47 }
0x17f7   : > { %v5754_v27 = vpop.xlane.xlu1 %1688  ;;  %v5756_v28 = vpop.xlane.xlu0 %1691 }
0x17f8   : > { %6993 = vst [vmem:[#allocation14_spill] sm:$0xff] %v5754_v27 }
0x17fb   : > { %v5759_v31 = vpop.xlane.xlu1 %1661  ;;  %v5761_v32 = vpop.xlane.xlu0 %1673 }
0x17fc   : > { %v1860_v58 = vrot.slane %v5759_v31, %v5771_v45 }
0x17fe   : > { %v1865_v39 = vsel %vm1786_vm12, %v1864_v6, %v1860_v58  ;;  %v1888_v58 = vrot.slane %v5738_v22, %v5768_v44 }
0x17ff   : > { %v5763_v40 = vpop.xlane.xlu1 %1694  ;;  %v5765_v42 = vpop.xlane.xlu0 %1697  ;;  %v1870_v6 = vsel %vm1793_vm13, %v1869_v52, %v1865_v39  ;;  %v1908_v39 = vrot.slane %v5756_v28, %v5771_v45  ;;  %v1879_v52 = vrot.slane %v5761_v32, %v5790_v53 }
0x1800   : > { %v1912_v2 = vrot.slane %v5763_v40, %v5768_v44  ;;  %v1889_v9 = vsel %vm1786_vm12, %v1888_v58, %v1884_v59  ;;  %v1875_v46 = vsel %vm1800_vm14, %v1874_v0, %v1870_v6  ;;  %v1917_v51 = vrot.slane %v5765_v42, %v5774_v34 }
0x1801   : > { %v1980_v58 = vsel %vm1979_vm9, %v1856_v35, %v1978_v37  ;;  %v1880_v29 = vsel %vm1807_vm15, %v1879_v52, %v1875_v46  ;;  %v1903_v35 = vrot.slane %v5754_v27, %v5790_v53  ;;  %v1894_v52 = vsel %vm1793_vm13, %v1893_v38, %v1889_v9 }
0x1802   : > { %v1913_v59 = vsel %vm1786_vm12, %v1912_v2, %v1908_v39  ;;  %v1982_v27 = vsel %vm1981_vm8, %v1880_v29, %v1980_v58  ;;  %v1899_v26 = vsel %vm1800_vm14, %v1898_v7, %v1894_v52 }
0x1803   : > { %v5781_v49 = vpop.xlane.xlu1 %1706  ;;  %v5783_v50 = vpop.xlane.xlu0 %1709  ;;  %v1918_v30 = vsel %vm1793_vm13, %v1917_v51, %v1913_v59 }
0x1804   : > { %6996 = vst [vmem:[#allocation17_spill] sm:$0xff] %v5781_v49  ;;  %v1932_v57 = vrot.slane %v5781_v49, %v5771_v45  ;;  %v1936_v60 = vrot.slane %v5783_v50, %v5768_v44 }
0x1807   : > { %v5805_v62 = vpop.xlane.xlu1 %1712  ;;  %v5807_v63 = vpop.xlane.xlu0 %1700 }
0x1808   : > { %6997 = vst [vmem:[#allocation18_spill] sm:$0xff] %v5805_v62  ;;  %v1941_v61 = vrot.slane %v5805_v62, %v5774_v34  ;;  %v1922_v6 = vrot.slane %v5807_v63, %v5777_v47 }
0x180b   : > { %v5833_v54 = vpop.xlane.xlu1 %1715  ;;  %v5835_v56 = vpop.xlane.xlu0 %1703 }
0x180c   : > { %6998 = vst [vmem:[#allocation19_spill] sm:$0xff] %v5833_v54  ;;  %v1946_v0 = vrot.slane %v5833_v54, %v5777_v47  ;;  %v1927_v5 = vrot.slane %v5835_v56, %v5790_v53  ;;  %v1937_v54 = vsel %vm1786_vm12, %v1936_v60, %v1932_v57  ;;  %v1904_v57 = vsel %vm1807_vm15, %v1903_v35, %v1899_v26 }
0x180d   : > { %v1942_v49 = vsel %vm1793_vm13, %v1941_v61, %v1937_v54 }
0x180f   : > { %v5853_v48 = vpop.xlane.xlu1 %1718  ;;  %v5855_v10 = vpop.xlane.xlu0 %1721 }
0x1810   : > { %6999 = vst [vmem:[#allocation20_spill] sm:$0xff] %v5853_v48  ;;  %v1951_v39 = vrot.slane %v5853_v48, %v5790_v53  ;;  %v1956_v1 = vrot.slane %v5855_v10, %v5771_v45  ;;  %v1923_v48 = vsel %vm1800_vm14, %v1922_v6, %v1918_v30  ;;  %v6940_v6 = vsub.s32 3, %v5593_v36 }
0x1811   : > { %v1928_v9 = vsel %vm1807_vm15, %v1927_v5, %v1923_v48 }
0x1813   : > { %v5884_v37 = vpop.xlane.xlu1 %1724  ;;  %v5886_v2 = vpop.xlane.xlu0 %1727 }
0x1814   : > { %v1960_v46 = vrot.slane %v5884_v37, %v5768_v44  ;;  %v1965_v62 = vrot.slane %v5886_v2, %v5774_v34  ;;  %v1947_v44 = vsel %vm1800_vm14, %v1946_v0, %v1942_v49  ;;  %v1984_v49 = vsel %vm1983_vm7, %v1904_v57, %v1982_v27 }
0x1815   : > { %v1986_v48 = vsel %vm1985_vm6, %v1928_v9, %v1984_v49 }
0x1816   : > { %v1961_v45 = vsel %vm1786_vm12, %v1960_v46, %v1956_v1  ;;  %v1952_v1 = vsel %vm1807_vm15, %v1951_v39, %v1947_v44 }
0x1817   : > { %v5908_v38 = vpop.xlane.xlu1 %1733  ;;  %v5910_v51 = vpop.xlane.xlu0 %1730  ;;  %v1966_v60 = vsel %vm1793_vm13, %v1965_v62, %v1961_v45  ;;  %v1988_v58 = vsel %vm1987_vm5, %v1952_v1, %v1986_v48  ;;  %v6938_v45 = vsub.s32 2, %v5593_v36  ;;  %v5934_v62 = vsub.s32 1, %v5593_v36 }
0x1818   : > { %v1975_v54 = vrot.slane %v5908_v38, %v5790_v53  ;;  %v1970_v30 = vrot.slane %v5910_v51, %v5777_v47  ;;  %v6935_v1 = vsub.s32 4, %v5593_v36 }
0x181a   : > { %v1971_v5 = vsel %vm1800_vm14, %v1970_v30, %v1966_v60 }
0x181b   : > { %v1976_v26 = vsel %vm1807_vm15, %v1975_v54, %v1971_v5 }
0x181c   : > { %v1990_v59 = vsel %vm1989_vm4, %v1976_v26, %v1988_v58 }
0x181d   : > { %v1993_v61 = vsel %vm1992_vm3, %v1990_v59, -inf }
0x181e   : > { %1994 = vmax.xlane.f32.xlu0 %v1993_v61 }
0x18ab   : > { %v5926_v44 = vpop.xlane.xlu0 %1994 }
0x18ac   : > { %v5931_v27 = vrot.slane %v5926_v44, %v5600_v41  ;;  %v5940_v7 = vrot.slane %v5926_v44, %v6938_v45  ;;  %v5946_v0 = vrot.slane %v5926_v44, %v5934_v62  ;;  %v5953_v39 = vrot.slane %v5926_v44, %v6940_v6 }
0x18ae   : > { %v2038_v29 = vsub.f32 %v5710_v11, %v5931_v27  ;;  %v2037_v35 = vsub.f32 %v5712_v12, %v5931_v27  ;;  %v2049_v52 = vsub.f32 %v5732_v33, %v5940_v7  ;;  %v2042_v11 = vsub.f32 %v5724_v18, %v5946_v0 }
0x18af   : > { %v2053_v54 = vsub.f32 %v5742_v55, %v5953_v39  ;;  %v2043_v30 = vsub.f32 %v5720_v16, %v5946_v0  ;;  %v2046_v33 = vsub.f32 %v5736_v8, %v5946_v0  ;;  %v2039_v18 = vsub.f32 %v5714_v13, %v5931_v27 }
0x18b0   : > { %v2079_v46 = vmul.f32 1.442695, %v2038_v29  ;;  %v2077_v9 = vmul.f32 1.442695, %v2037_v35  ;;  %v2101_v57 = vmul.f32 1.442695, %v2049_v52  ;;  %v5971_v55 = vrot.slane %v5926_v44, %v6935_v1 }
0x18b1   : > { %v2087_v12 = vmul.f32 1.442695, %v2042_v11  ;;  %v2109_v60 = vmul.f32 1.442695, %v2053_v54  ;;  %v2089_v49 = vmul.f32 1.442695, %v2043_v30  ;;  %v2054_v16 = vsub.f32 %v5746_v4, %v5953_v39 }
0x18b2   : > { %4942 = vpow2.f32 %v2079_v46  ;;  %v2095_v5 = vmul.f32 1.442695, %v2046_v33  ;;  %v2081_v48 = vmul.f32 1.442695, %v2039_v18  ;;  %v2044_v8 = vsub.f32 %v5722_v17, %v5946_v0 }
0x18b3   : > { %4944 = vpow2.f32 %v2077_v9  ;;  %v6939_v13 = vsub.s32 5, %v5593_v36  ;;  %v2111_v59 = vmul.f32 1.442695, %v2054_v16  ;;  %v2058_v4 = vsub.f32 %v5738_v22, %v5971_v55 }
0x18b4   : > { %4946 = vpow2.f32 %v2101_v57  ;;  %v2091_v61 = vmul.f32 1.442695, %v2044_v8  ;;  %v2047_v17 = vsub.f32 %v5728_v3, %v5940_v7  ;;  %v2055_v52 = vsub.f32 %v5750_v25, %v5953_v39 }
0x18b5   : > { %4948 = vpow2.f32 %v2087_v12  ;;  %v5996_v46 = vrot.slane %v5926_v44, %v6939_v13  ;;  %v2119_v22 = vmul.f32 1.442695, %v2058_v4  ;;  %v2048_v9 = vsub.f32 %v5726_v20, %v5940_v7 }
0x18b6   : > { %4950 = vpow2.f32 %v2109_v60  ;;  %v2097_v3 = vmul.f32 1.442695, %v2047_v17  ;;  %v2113_v54 = vmul.f32 1.442695, %v2055_v52  ;;  %v2040_v30 = vsub.f32 %v5718_v15, %v5931_v27 }
0x18b7   : > { %4952 = vpow2.f32 %v2089_v49  ;;  %v2062_v12 = vsub.f32 %v5756_v28, %v5996_v46  ;;  %v2099_v25 = vmul.f32 1.442695, %v2048_v9  ;;  %v6937_v33 = vsub.s32 6, %v5593_v36 }
0x18b8   : > { %4954 = vpow2.f32 %v2095_v5  ;;  %v2056_v49 = vsub.f32 %v5761_v32, %v5953_v39  ;;  %v2083_v18 = vmul.f32 1.442695, %v2040_v30  ;;  %v2045_v15 = vsub.f32 %v5730_v21, %v5946_v0 }
0x18b9   : > { %4956 = vpow2.f32 %v2081_v48  ;;  %v2127_v28 = vmul.f32 1.442695, %v2062_v12  ;;  %v6032_v48 = vrot.slane %v5926_v44, %v6937_v33  ;;  %v2064_v32 = vsub.f32 %v5765_v42, %v5996_v46 }
0x18ba   : > { %4958 = vpow2.f32 %v2111_v59  ;;  %v2115_v8 = vmul.f32 1.442695, %v2056_v49  ;;  %v2093_v21 = vmul.f32 1.442695, %v2045_v15  ;;  %v2052_v0 = vsub.f32 %v5759_v31, %v5953_v39 }
0x18bb   : > { %4960 = vpow2.f32 %v2091_v61  ;;  %v6936_v61 = vsub.s32 7, %v5593_v36  ;;  %v2068_v42 = vsub.f32 %v5783_v50, %v6032_v48  ;;  %v2131_v17 = vmul.f32 1.442695, %v2064_v32 }
0x18bc   : > { %v5977_v26 = vpop.eup %4942  ;;  %4962 = vpow2.f32 %v2119_v22  ;;  %v2041_v22 = vsub.f32 %v5716_v14, %v5931_v27  ;;  %v2107_v31 = vmul.f32 1.442695, %v2052_v0  ;;  %v2065_v50 = vsub.f32 %v5807_v63, %v5996_v46 }
0x18bd   : > { %v5979_v58 = vpop.eup %4944  ;;  %2201 = vperm.xlu0 %4829, %v5977_v26   ;;  %4964 = vpow2.f32 %v2097_v3  ;;  %v6058_v3 = vrot.slane %v5926_v44, %v6936_v61  ;;  %v2139_v9 = vmul.f32 1.442695, %v2068_v42  ;;  %v2050_v14 = vsub.f32 %v5734_v19, %v5940_v7 }
0x18be   : > { %2198 = vperm.xlu1 %4828, %v5979_v58   ;;  %v5988_v29 = vpop.eup %4946  ;;  %4966 = vpow2.f32 %v2113_v54  ;;  %v2085_v27 = vmul.f32 1.442695, %v2041_v22  ;;  %v2057_v63 = vsub.f32 %v5740_v23, %v5971_v55 }
0x18bf   : > { %7000 = vst [vmem:[#allocation21_spill] sm:$0xff] %v5988_v29  ;;  %v5990_v35 = vpop.eup %4948  ;;  %4968 = vpow2.f32 %v2099_v25  ;;  %v2072_v44 = vsub.f32 %v5855_v10, %v6058_v3  ;;  %v2133_v25 = vmul.f32 1.442695, %v2065_v50  ;;  %v2103_v19 = vmul.f32 1.442695, %v2050_v14 }
0x18c0   : > { %v6003_v11 = vpop.eup %4950  ;;  %4970 = vpow2.f32 %v2127_v28  ;;  %v2066_v28 = vsub.f32 %v5835_v56, %v5996_v46  ;;  %v2117_v23 = vmul.f32 1.442695, %v2057_v63  ;;  %v2059_v56 = vsub.f32 %v5748_v24, %v5971_v55 }
0x18c1   : > { %2234 = vperm.xlu0 %4829, %v5988_v29   ;;  %7001 = vst [vmem:[#allocation22_spill] sm:$0xff] %v6003_v11  ;;  %v6005_v57 = vpop.eup %4952  ;;  %4972 = vpow2.f32 %v2083_v18  ;;  %v2147_v10 = vmul.f32 1.442695, %v2072_v44  ;;  %v2051_v18 = vsub.f32 %v5744_v43, %v5940_v7  ;;  %v2075_v42 = vsub.f32 %v5910_v51, %v6058_v3  ;;  %v7012_v51 = vld [vmem:[#allocation13_spill] sm:$0xff] }
0x18c2   : > { %2213 = vperm.xlu1 %4828, %v5990_v35   ;;  %v6013_v60 = vpop.eup %4954  ;;  %4974 = vpow2.f32 %v2115_v8  ;;  %v2074_v8 = vsub.f32 %v5886_v2, %v6058_v3  ;;  %v2121_v24 = vmul.f32 1.442695, %v2059_v56 }
0x18c3   : > { %7002 = vst [vmem:[#allocation23_spill] sm:$0xff] %v6013_v60  ;;  %v6015_v20 = vpop.eup %4956  ;;  %4976 = vpow2.f32 %v2093_v21  ;;  %v2135_v21 = vmul.f32 1.442695, %v2066_v28  ;;  %v2105_v0 = vmul.f32 1.442695, %v2051_v18  ;;  %v7018_v28 = vld [vmem:[#allocation14_spill] sm:$0xff] }
0x18c4   : > { %7003 = vst [vmem:[#allocation24_spill] sm:$0xff] %v6015_v20  ;;  %v6024_v5 = vpop.eup %4958  ;;  %4978 = vpow2.f32 %v2131_v17  ;;  %v2151_v2 = vmul.f32 1.442695, %v2074_v8  ;;  %v2063_v17 = vsub.f32 %v5763_v40, %v5996_v46  ;;  %v2153_v50 = vmul.f32 1.442695, %v2075_v42  ;;  %v7015_v46 = vld [vmem:[#allocation17_spill] sm:$0xff] }
0x18c5   : > { %2246 = vperm.xlu0 %4829, %v6003_v11   ;;  %7004 = vst [vmem:[#allocation25_spill] sm:$0xff] %v6024_v5  ;;  %v6026_v16 = vpop.eup %4960  ;;  %4980 = vpow2.f32 %v2107_v31  ;;  %v2067_v44 = vsub.f32 %v7015_v46, %v6032_v48  ;;  %v7026_v46 = vld [vmem:[#allocation20_spill] sm:$0xff] }
0x18c6   : > { %2216 = vperm.xlu1 %4828, %v6005_v57   ;;  %7005 = vst [vmem:[#allocation26_spill] sm:$0xff] %v6026_v16  ;;  %v6039_v59 = vpop.eup %4962  ;;  %4982 = vpow2.f32 %v2139_v9  ;;  %v2060_v9 = vsub.f32 %v7012_v51, %v5971_v55  ;;  %v2129_v14 = vmul.f32 1.442695, %v2063_v17 }
0x18c7   : > { %7006 = vst [vmem:[#allocation27_spill] sm:$0xff] %v6039_v59  ;;  %v6041_v4 = vpop.eup %4964  ;;  %4984 = vpow2.f32 %v2085_v27  ;;  %v2137_v18 = vmul.f32 1.442695, %v2067_v44  ;;  %v2071_v44 = vsub.f32 %v7026_v46, %v6032_v48 }
0x18c8   : > { %v6050_v39 = vpop.eup %4966  ;;  %4986 = vpow2.f32 %v2133_v25  ;;  %v2123_v25 = vmul.f32 1.442695, %v2060_v9 }
0x18c9   : > { %2225 = vperm.xlu0 %4829, %v6013_v60   ;;  %v6052_v52 = vpop.eup %4968  ;;  %4988 = vpow2.f32 %v2103_v19 }
0x18ca   : > { %2204 = vperm.xlu1 %4828, %v6015_v20   ;;  %v6065_v54 = vpop.eup %4970  ;;  %4990 = vpow2.f32 %v2147_v10  ;;  %v2061_v10 = vsub.f32 %v7018_v28, %v5971_v55  ;;  %v2073_v55 = vsub.f32 %v5884_v37, %v6058_v3  ;;  %v2076_v28 = vsub.f32 %v5908_v38, %v6058_v3 }
0x18cb   : > { %v6067_v12 = vpop.eup %4972  ;;  %4992 = vpow2.f32 %v2117_v23 }
0x18cc   : > { %7007 = vst [vmem:[#allocation28_spill] sm:$0xff] %v6067_v12  ;;  %v6075_v30 = vpop.eup %4974  ;;  %4994 = vpow2.f32 %v2135_v21  ;;  %v7021_v21 = vld [vmem:[#allocation18_spill] sm:$0xff]  ;;  %v2149_v9 = vmul.f32 1.442695, %v2073_v55 }
0x18cd   : > { %2249 = vperm.xlu0 %4829, %v6024_v5   ;;  %7008 = vst [vmem:[#allocation29_spill] sm:$0xff] %v6075_v30  ;;  %v6077_v49 = vpop.eup %4976  ;;  %4996 = vpow2.f32 %v2105_v0  ;;  %v2069_v56 = vsub.f32 %v7021_v21, %v6032_v48  ;;  %v2125_v0 = vmul.f32 1.442695, %v2061_v10  ;;  %v2145_v10 = vmul.f32 1.442695, %v2071_v44 }
0x18ce   : > { %2219 = vperm.xlu1 %4828, %v6026_v16   ;;  %v6085_v15 = vpop.eup %4978  ;;  %4998 = vpow2.f32 %v2151_v2  ;;  %v2155_v21 = vmul.f32 1.442695, %v2076_v28 }
0x18cf   : > { %7009 = vst [vmem:[#allocation30_spill] sm:$0xff] %v6085_v15  ;;  %v6087_v32 = vpop.eup %4980  ;;  %5000 = vpow2.f32 %v2121_v24  ;;  %v2141_v17 = vmul.f32 1.442695, %v2069_v56 }
0x18d0   : > { %v6095_v43 = vpop.eup %4982  ;;  %5002 = vpow2.f32 %v2153_v50  ;;  %v7025_v50 = vld [vmem:[#allocation19_spill] sm:$0xff] }
0x18d1   : > { %2261 = vperm.xlu0 %4829, %v6039_v59   ;;  %7010 = vst [vmem:[#allocation31_spill] sm:$0xff] %v6095_v43  ;;  %v6097_v7 = vpop.eup %4984  ;;  %5004 = vpow2.f32 %v2129_v14  ;;  %v2070_v51 = vsub.f32 %v7025_v50, %v6032_v48 }
0x18d2   : > { %2228 = vperm.xlu1 %4828, %v6041_v4   ;;  %v6105_v22 = vpop.eup %4986  ;;  %5006 = vpow2.f32 %v2123_v25 }
0x18d3   : > { %7011 = vst [vmem:[#allocation32_spill] sm:$0xff] %v6105_v22  ;;  %v6107_v31 = vpop.eup %4988  ;;  %5008 = vpow2.f32 %v2137_v18  ;;  %v2143_v25 = vmul.f32 1.442695, %v2070_v51 }
0x18d4   : > { %v6113_v27 = vpop.eup %4990  ;;  %5010 = vpow2.f32 %v2125_v0 }
0x18d5   : > { %2252 = vperm.xlu0 %4829, %v6050_v39   ;;  %7013 = vst [vmem:[#allocation13_spill] sm:$0xff] %v6113_v27  ;;  %v6115_v40 = vpop.eup %4992  ;;  %5012 = vpow2.f32 %v2141_v17 }
0x18d6   : > { %2231 = vperm.xlu1 %4828, %v6052_v52   ;;  %7014 = vst [vmem:[#allocation33_spill] sm:$0xff] %v6115_v40  ;;  %v6121_v63 = vpop.eup %4994  ;;  %5014 = vpow2.f32 %v2149_v9 }
0x18d7   : > { %7016 = vst [vmem:[#allocation17_spill] sm:$0xff] %v6121_v63  ;;  %v6123_v19 = vpop.eup %4996  ;;  %5016 = vpow2.f32 %v2143_v25 }
0x18d8   : > { %7017 = vst [vmem:[#allocation34_spill] sm:$0xff] %v6123_v19  ;;  %v6129_v23 = vpop.eup %4998  ;;  %5018 = vpow2.f32 %v2145_v10 }
0x18d9   : > { %2273 = vperm.xlu0 %4829, %v6065_v54   ;;  %7019 = vst [vmem:[#allocation14_spill] sm:$0xff] %v6129_v23  ;;  %v6131_v8 = vpop.eup %5000  ;;  %5020 = vpow2.f32 %v2155_v21 }
0x18da   : > { %2207 = vperm.xlu1 %4828, %v6067_v12   ;;  %7020 = vst [vmem:[#allocation35_spill] sm:$0xff] %v6131_v8  ;;  %v6137_v42 = vpop.eup %5002 }
0x18db   : > { %7022 = vst [vmem:[#allocation18_spill] sm:$0xff] %v6137_v42  ;;  %v6139_v2 = vpop.eup %5004 }
0x18dc   : > { %7023 = vst [vmem:[#allocation36_spill] sm:$0xff] %v6139_v2  ;;  %v6145_v24 = vpop.eup %5006 }
0x18dd   : > { %2255 = vperm.xlu0 %4829, %v6075_v30   ;;  %7024 = vst [vmem:[#allocation37_spill] sm:$0xff] %v6145_v24  ;;  %v6150_v14 = vpop.eup %5008 }
0x18de   : > { %2222 = vperm.xlu1 %4828, %v6077_v49   ;;  %v6155_v37 = vpop.eup %5010 }
0x18df   : > { %7027 = vst [vmem:[#allocation19_spill] sm:$0xff] %v6155_v37  ;;  %v6160_v18 = vpop.eup %5012 }
0x18e0   : > { %7028 = vst [vmem:[#allocation20_spill] sm:$0xff] %v6160_v18  ;;  %v6163_v56 = vpop.eup %5014 }
0x18e1   : > { %2279 = vperm.xlu0 %4829, %v6085_v15   ;;  %7029 = vst [vmem:[#allocation38_spill] sm:$0xff] %v6163_v56  ;;  %v6166_v48 = vpop.eup %5016 }
0x18e2   : > { %2243 = vperm.xlu1 %4828, %v6087_v32   ;;  %7030 = vst [vmem:[#allocation39_spill] sm:$0xff] %v6166_v48  ;;  %v6169_v0 = vpop.eup %5018 }
0x18e3   : > { %7031 = vst [vmem:[#allocation40_spill] sm:$0xff] %v6169_v0  ;;  %v6172_v38 = vpop.eup %5020 }
0x18e4   : > { %7032 = vst [vmem:[#allocation41_spill] sm:$0xff] %v6172_v38 }
0x18e5   : > { %2291 = vperm.xlu0 %4829, %v6095_v43  }
0x18e6   : > { %2210 = vperm.xlu1 %4828, %v6097_v7  }
0x18e9   : > { %2282 = vperm.xlu0 %4829, %v6105_v22  }
0x18ea   : > { %2237 = vperm.xlu1 %4828, %v6107_v31  }
0x18ed   : > { %2303 = vperm.xlu0 %4829, %v6113_v27  }
0x18ee   : > { %2258 = vperm.xlu1 %4828, %v6115_v40  }
0x18f1   : > { %2285 = vperm.xlu0 %4829, %v6121_v63   ;;  %v7034_v63 = vld [vmem:[#allocation16_spill] sm:$0xff] }
0x18f2   : > { %2240 = vperm.xlu1 %4828, %v6123_v19  }
0x18f5   : > { %2309 = vperm.xlu0 %4829, %v6129_v23  }
0x18f6   : > { %2264 = vperm.xlu1 %4828, %v6131_v8  }
0x18f9   : > { %2312 = vperm.xlu0 %4829, %v6137_v42  }
0x18fa   : > { %2276 = vperm.xlu1 %4828, %v6139_v2  }
0x18fe   : > { %2267 = vperm.xlu1 %4828, %v6145_v24  }
0x1902   : > { %2288 = vperm.xlu1 %4828, %v6150_v14  }
0x1906   : > { %2270 = vperm.xlu1 %4828, %v6155_v37  }
0x190a   : > { %2294 = vperm.xlu1 %4828, %v6160_v18  }
0x190e   : > { %2306 = vperm.xlu1 %4828, %v6163_v56  }
0x1912   : > { %2297 = vperm.xlu1 %4828, %v6166_v48  }
0x1916   : > { %2300 = vperm.xlu1 %4828, %v6169_v0   ;;  %v7033_v0 = vld [vmem:[#allocation15_spill] sm:$0xff] }
0x191a   : > { %2315 = vperm.xlu1 %4828, %v6172_v38  }
0x193c   : > { %v2202_v3 = vpop.permute.xlu0 %2201 }
0x193d   : > { %v2199_v55 = vpop.permute.xlu1 %2198  ;;  %v2324_v12 = vrot.slane %v2202_v3, %v7033_v0 }
0x193e   : > { %v2320_v59 = vrot.slane %v2199_v55, %v7034_v63 }
0x1940   : > { %v6175_v50 = vpop.permute.xlu0 %2234  ;;  %v2325_v3 = vsel %vm1786_vm12, %v2324_v12, %v2320_v59 }
0x1941   : > { %v2214_v17 = vpop.permute.xlu1 %2213  ;;  %v2377_v55 = vrot.slane %v6175_v50, %v5774_v34 }
0x1942   : > { %v2344_v11 = vrot.slane %v2214_v17, %v7034_v63 }
0x1944   : > { %v2247_v9 = vpop.permute.xlu0 %2246 }
0x1945   : > { %v2217_v51 = vpop.permute.xlu1 %2216 }
0x1946   : > { %v2348_v40 = vrot.slane %v2217_v51, %v7033_v0 }
0x1948   : > { %v2226_v25 = vpop.permute.xlu0 %2225 }
0x1949   : > { %v2205_v46 = vpop.permute.xlu1 %2204 }
0x194a   : > { %v2329_v22 = vrot.slane %v2205_v46, %v5774_v34  ;;  %v2396_v46 = vrot.slane %v2247_v9, %v7033_v0 }
0x194c   : > { %v2250_v10 = vpop.permute.xlu0 %2249 }
0x194d   : > { %v2220_v44 = vpop.permute.xlu1 %2219 }
0x194e   : > { %v2353_v29 = vrot.slane %v2220_v44, %v5774_v34  ;;  %v2349_v44 = vsel %vm1786_vm12, %v2348_v40, %v2344_v11 }
0x1950   : > { %v6177_v61 = vpop.permute.xlu0 %2261  ;;  %v2354_v59 = vsel %vm1793_vm13, %v2353_v29, %v2349_v44 }
0x1951   : > { %v2229_v28 = vpop.permute.xlu1 %2228 }
0x1952   : > { %v2368_v27 = vrot.slane %v2229_v28, %v7034_v63 }
0x1954   : > { %v6179_v45 = vpop.permute.xlu0 %2252 }
0x1955   : > { %v2232_v21 = vpop.permute.xlu1 %2231 }
0x1956   : > { %v2372_v18 = vrot.slane %v2232_v21, %v7033_v0  ;;  %v2363_v21 = vrot.slane %v2226_v25, %v5790_v53 }
0x1958   : > { %v2274_v38 = vpop.permute.xlu0 %2273  ;;  %v2373_v12 = vsel %vm1786_vm12, %v2372_v18, %v2368_v27 }
0x1959   : > { %v2208_v1 = vpop.permute.xlu1 %2207  ;;  %v2440_v27 = vrot.slane %v2274_v38, %v7034_v63 }
0x195a   : > { %v2334_v17 = vrot.slane %v2208_v1, %v5777_v47  ;;  %v2420_v1 = vrot.slane %v6177_v61, %v7033_v0 }
0x195c   : > { %v6181_v48 = vpop.permute.xlu0 %2255 }
0x195d   : > { %v2223_v33 = vpop.permute.xlu1 %2222  ;;  %v2411_v61 = vrot.slane %v6181_v48, %v5790_v53 }
0x195e   : > { %v2358_v19 = vrot.slane %v2223_v33, %v5777_v47  ;;  %v2401_v33 = vrot.slane %v2250_v10, %v5774_v34 }
0x1960   : > { %v6185_v24 = vpop.permute.xlu0 %2279  ;;  %v2359_v50 = vsel %vm1800_vm14, %v2358_v19, %v2354_v59 }
0x1961   : > { %v2244_v13 = vpop.permute.xlu1 %2243 }
0x1962   : > { %v2392_v16 = vrot.slane %v2244_v13, %v7034_v63  ;;  %v2330_v13 = vsel %vm1793_vm13, %v2329_v22, %v2325_v3  ;;  %v2406_v22 = vrot.slane %v6179_v45, %v5777_v47 }
0x1963   : > { %v2335_v19 = vsel %vm1800_vm14, %v2334_v17, %v2330_v13 }
0x1964   : > { %v6189_v15 = vpop.permute.xlu0 %2291  ;;  %v2397_v9 = vsel %vm1786_vm12, %v2396_v46, %v2392_v16  ;;  %v2378_v16 = vsel %vm1793_vm13, %v2377_v55, %v2373_v12 }
0x1965   : > { %v2211_v6 = vpop.permute.xlu1 %2210  ;;  %v2402_v45 = vsel %vm1793_vm13, %v2401_v33, %v2397_v9  ;;  %v2468_v44 = vrot.slane %v6189_v15, %v7033_v0 }
0x1966   : > { %v2339_v11 = vrot.slane %v2211_v6, %v5790_v53 }
0x1968   : > { %v6193_v8 = vpop.permute.xlu0 %2282  ;;  %v2340_v18 = vsel %vm1807_vm15, %v2339_v11, %v2335_v19 }
0x1969   : > { %v2238_v42 = vpop.permute.xlu1 %2237 }
0x196a   : > { %v2382_v40 = vrot.slane %v2238_v42, %v5777_v47  ;;  %v2364_v42 = vsel %vm1807_vm15, %v2363_v21, %v2359_v50 }
0x196b   : > { %v2509_v17 = vsel %vm1977_vm10, %v2364_v42, %v2340_v18 }
0x196c   : > { %v6197_v5 = vpop.permute.xlu0 %2303  ;;  %v2383_v38 = vsel %vm1800_vm14, %v2382_v40, %v2378_v16 }
0x196d   : > { %v6183_v23 = vpop.permute.xlu1 %2258  ;;  %v2488_v13 = vrot.slane %v6197_v5, %v7034_v63 }
0x196e   : > { %v2416_v6 = vrot.slane %v6183_v23, %v7034_v63 }
0x1970   : > { %v6218_v20 = vpop.permute.xlu0 %2285  ;;  %v2421_v21 = vsel %vm1786_vm12, %v2420_v1, %v2416_v6 }
0x1971   : > { %v2241_v30 = vpop.permute.xlu1 %2240 }
0x1972   : > { %v2387_v25 = vrot.slane %v2241_v30, %v5790_v53  ;;  %v2449_v30 = vrot.slane %v6185_v24, %v5774_v34  ;;  %v2407_v24 = vsel %vm1800_vm14, %v2406_v22, %v2402_v45 }
0x1973   : > { %v2412_v40 = vsel %vm1807_vm15, %v2411_v61, %v2407_v24 }
0x1974   : > { %v2310_v10 = vpop.permute.xlu0 %2309  ;;  %v2388_v48 = vsel %vm1807_vm15, %v2387_v25, %v2383_v38 }
0x1975   : > { %v6187_v56 = vpop.permute.xlu1 %2264  ;;  %v2510_v59 = vsel %vm1979_vm9, %v2388_v48, %v2509_v17 }
0x1976   : > { %v2511_v25 = vsel %vm1981_vm8, %v2412_v40, %v2510_v59  ;;  %v7039_v59 = vld [vmem:[#allocation24_spill] sm:$0xff]  ;;  %v7047_v40 = vsub.s32 4, %v5593_v36 }
0x1978   : > { %v2313_v11 = vpop.permute.xlu0 %2312 }
0x1979   : > { %v2277_v60 = vpop.permute.xlu1 %2276  ;;  %v2502_v19 = vrot.slane %v2313_v11, %v5777_v47  ;;  %v7046_v11 = vld [vmem:[#allocation21_spill] sm:$0xff] }
0x197a   : > { %v2444_v29 = vrot.slane %v2277_v60, %v7033_v0  ;;  %v2425_v60 = vrot.slane %v6187_v56, %v5774_v34 }
0x197c   : > { %v2445_v3 = vsel %vm1786_vm12, %v2444_v29, %v2440_v27  ;;  %v2459_v29 = vrot.slane %v6218_v20, %v5790_v53 }
0x197d   : > { %v6191_v43 = vpop.permute.xlu1 %2267  ;;  %v2450_v12 = vsel %vm1793_vm13, %v2449_v30, %v2445_v3 }
0x197e   : > { %v2430_v23 = vrot.slane %v6191_v43, %v5777_v47 }
0x1981   : > { %v6195_v2 = vpop.permute.xlu1 %2288 }
0x1982   : > { %v2464_v43 = vrot.slane %v6195_v2, %v7034_v63  ;;  %v2454_v2 = vrot.slane %v6193_v8, %v5777_v47  ;;  %v2497_v63 = vrot.slane %v2310_v10, %v5774_v34 }
0x1984   : > { %v2455_v22 = vsel %vm1800_vm14, %v2454_v2, %v2450_v12  ;;  %v7042_v2 = vld [vmem:[#allocation26_spill] sm:$0xff] }
0x1985   : > { %v6201_v37 = vpop.permute.xlu1 %2270  ;;  %v2460_v42 = vsel %vm1807_vm15, %v2459_v29, %v2455_v22  ;;  %v7048_v22 = vld [vmem:[#allocation32_spill] sm:$0xff] }
0x1986   : > { %v2435_v55 = vrot.slane %v6201_v37, %v5790_v53  ;;  %v2426_v37 = vsel %vm1793_vm13, %v2425_v60, %v2421_v21 }
0x1987   : > { %v2431_v15 = vsel %vm1800_vm14, %v2430_v23, %v2426_v37 }
0x1988   : > { %v2436_v50 = vsel %vm1807_vm15, %v2435_v55, %v2431_v15  ;;  %v7040_v15 = vsub.s32 7, %v5593_v36 }
0x1989   : > { %v2295_v51 = vpop.permute.xlu1 %2294 }
0x198a   : > { %v2473_v33 = vrot.slane %v2295_v51, %v5774_v34  ;;  %v2469_v51 = vsel %vm1786_vm12, %v2468_v44, %v2464_v43  ;;  %v7036_v44 = vsub.s32 5, %v5593_v36  ;;  %v7037_v43 = vsub.s32 2, %v5593_v36 }
0x198c   : > { %v2474_v8 = vsel %vm1793_vm13, %v2473_v33, %v2469_v51 }
0x198d   : > { %v2307_v28 = vpop.permute.xlu1 %2306 }
0x198e   : > { %v2492_v56 = vrot.slane %v2307_v28, %v7033_v0  ;;  %v2512_v28 = vsel %vm1983_vm7, %v2436_v50, %v2511_v25 }
0x198f   : > { %v2513_v60 = vsel %vm1985_vm6, %v2460_v42, %v2512_v28  ;;  %v7050_v28 = vld [vmem:[#allocation19_spill] sm:$0xff]  ;;  %v7054_v42 = vld [vmem:[#allocation40_spill] sm:$0xff] }
0x1990   : > { %v2493_v9 = vsel %vm1786_vm12, %v2492_v56, %v2488_v13  ;;  %v7038_v13 = vsub.s32 6, %v5593_v36 }
0x1991   : > { %v2298_v46 = vpop.permute.xlu1 %2297  ;;  %v2498_v34 = vsel %vm1793_vm13, %v2497_v63, %v2493_v9  ;;  %v7044_v9 = vld [vmem:[#allocation22_spill] sm:$0xff] }
0x1992   : > { %v2478_v0 = vrot.slane %v2298_v46, %v5777_v47  ;;  %v2503_v45 = vsel %vm1800_vm14, %v2502_v19, %v2498_v34 }
0x1994   : > { %v2479_v27 = vsel %vm1800_vm14, %v2478_v0, %v2474_v8  ;;  %v7049_v8 = vld [vmem:[#allocation33_spill] sm:$0xff] }
0x1995   : > { %v2301_v5 = vpop.permute.xlu1 %2300 }
0x1996   : > { %v2483_v1 = vrot.slane %v2301_v5, %v5790_v53 }
0x1998   : > { %v2484_v16 = vsel %vm1807_vm15, %v2483_v1, %v2479_v27  ;;  %v7051_v27 = vld [vmem:[#allocation27_spill] sm:$0xff] }
0x1999   : > { %v2316_v6 = vpop.permute.xlu1 %2315  ;;  %v2514_v30 = vsel %vm1987_vm5, %v2484_v16, %v2513_v60  ;;  %v7052_v16 = vld [vmem:[#allocation17_spill] sm:$0xff] }
0x199a   : > { %v2507_v61 = vrot.slane %v2316_v6, %v5790_v53  ;;  %v7035_v53 = vsub.s32 3, %v5593_v36  ;;  %v7053_v36 = vld [vmem:[#allocation28_spill] sm:$0xff]  ;;  %v7055_v60 = vld [vmem:[#allocation25_spill] sm:$0xff] }
0x199c   : > { %v2508_v20 = vsel %vm1807_vm15, %v2507_v61, %v2503_v45 }
0x199d   : > { %v2515_v18 = vsel %vm1989_vm4, %v2508_v20, %v2514_v30  ;;  %v7056_v30 = vld [vmem:[#allocation36_spill] sm:$0xff] }
0x199e   : > { %v2517_v38 = vsel %vm1992_vm3, %v2515_v18, 0.0  ;;  %vm7078_vm3 = vcmask 258052  }
0x199f   : > { %2518 = vadd.xlane.f32.xlu0 %v2517_v38  ;;  %v7057_v38 = vld [vmem:[#allocation35_spill] sm:$0xff] }
0x1a2c   : > { %v2519_v47 = vpop.xlane.xlu0 %2518 }
0x1a2d   : > { %5022 = vrcp.f32 %v2519_v47 }
0x1a37   : > { %v5023_v10 = vpop.eup %5022 }
0x1a38   : > { %v6299_v23 = vrot.slane %v5023_v10, %v7035_v53  ;;  %v2525_v48 = vrot.slane %v5023_v10, %v5600_v41  ;;  %v6306_v56 = vrot.slane %v5023_v10, %v5934_v62  ;;  %v6313_v21 = vrot.slane %v5023_v10, %v7036_v44 }
0x1a39   : > { %v2533_v17 = vrot.slane %v5023_v10, %v7037_v43  ;;  %v6326_v37 = vrot.slane %v5023_v10, %v7038_v13  ;;  %v2553_v0 = vrot.slane %v5023_v10, %v7040_v15  ;;  %v2541_v1 = vrot.slane %v5023_v10, %v7047_v40  ;;  %v7058_v10 = vld [vmem:[#allocation31_spill] sm:$0xff]  ;;  %v7063_v43 = vld [vmem:[#allocation29_spill] sm:$0xff]  ;;  %v4843_v15 = vld [vmem:[%s6896_s9 + $0x18] sm:$0xff]  }
0x1a3a   : > { %v2577_v3 = vmul.f32 %v6087_v32, %v6299_v23  ;;  %v2562_v55 = vmul.f32 %v5979_v58, %v2525_v48  ;;  %v2570_v46 = vmul.f32 %v6077_v49, %v6306_v56  ;;  %v2563_v24 = vmul.f32 %v5977_v26, %v2525_v48 }
0x1a3b   : > { %v2587_v32 = vmul.f32 %v6065_v54, %v6313_v21  ;;  %v2567_v58 = vmul.f32 %v5990_v35, %v6306_v56  ;;  %v2575_v49 = vmul.f32 %v6107_v31, %v2533_v17  ;;  %v2568_v26 = vmul.f32 %v6005_v57, %v6306_v56 }
0x1a3c   : > { %2679 = vperm.xlu0 %4829, %v2577_v3   ;;  %2604 = vperm.xlu1 %4828, %v2562_v55   ;;  %v2592_v54 = vmul.f32 %v6150_v14, %v6326_v37  ;;  %v2572_v35 = vmul.f32 %v6041_v4, %v2533_v17  ;;  %v2566_v33 = vmul.f32 %v6097_v7, %v2525_v48  ;;  %v7041_v14 = vld [vmem:[#allocation13_spill] sm:$0xff]  ;;  %v7060_v55 = vld [vmem:[#allocation30_spill] sm:$0xff] }
0x1a3d   : > { %v2573_v31 = vmul.f32 %v6052_v52, %v2533_v17  ;;  %v2580_v57 = vmul.f32 %v6050_v39, %v6299_v23  ;;  %v2564_v12 = vmul.f32 %v7039_v59, %v2525_v48  ;;  %v2597_v4 = vmul.f32 %v7041_v14, %v2553_v0  ;;  %v7043_v52 = vld [vmem:[#allocation34_spill] sm:$0xff]  ;;  %v7045_v39 = vld [vmem:[#allocation20_spill] sm:$0xff] }
0x1a3e   : > { %v2569_v50 = vmul.f32 %v7042_v2, %v6306_v56  ;;  %v2576_v7 = vmul.f32 %v7043_v52, %v2533_v17  ;;  %v2578_v5 = vmul.f32 %v7044_v9, %v6299_v23  ;;  %v2594_v63 = vmul.f32 %v7045_v39, %v6326_v37  ;;  %v5091_v2 = vld [vmem:[%s5605_s22 + $0x8] sm:$0xff] }
0x1a3f   : > { %v2574_v51 = vmul.f32 %v7046_v11, %v2533_v17  ;;  %v2590_v25 = vmul.f32 %v7048_v22, %v6313_v21  ;;  %v2582_v29 = vmul.f32 %v7049_v8, %v2541_v1  ;;  %v2586_v34 = vmul.f32 %v7050_v28, %v2541_v1 }
0x1a40   : > { %2644 = vperm.xlu0 %4829, %v2570_v46   ;;  %2609 = vperm.xlu1 %4828, %v2563_v24   ;;  %v2583_v19 = vmul.f32 %v7051_v27, %v2541_v1  ;;  %v2591_v6 = vmul.f32 %v7052_v16, %v6313_v21  ;;  %v2565_v61 = vmul.f32 %v7053_v36, %v2525_v48  ;;  %v7059_v48 = vld [vmem:[#allocation23_spill] sm:$0xff]  ;;  %v7061_v24 = vld [vmem:[#allocation38_spill] sm:$0xff]  ;;  %v5094_v27 = vld [vmem:[%s5605_s22 + $0x50] sm:$0xff] }
0x1a41   : > { %v2596_v45 = vmul.f32 %v7054_v42, %v6326_v37  ;;  %v2579_v20 = vmul.f32 %v7055_v60, %v6299_v23  ;;  %v2588_v18 = vmul.f32 %v7056_v30, %v6313_v21  ;;  %v2584_v47 = vmul.f32 %v7057_v38, %v2541_v1  ;;  %v5096_v30 = vld [vmem:[%s5605_s22 + $0x10] sm:$0xff] }
0x1a42   : > { %v2593_v53 = vmul.f32 %v7058_v10, %v6326_v37  ;;  %v2571_v3 = vmul.f32 %v7059_v48, %v6306_v56  ;;  %v2589_v46 = vmul.f32 %v7060_v55, %v6313_v21  ;;  %v2598_v44 = vmul.f32 %v7061_v24, %v2553_v0  ;;  %v7065_v56 = vld [vmem:[#allocation39_spill] sm:$0xff] }
0x1a43   : > { %v2581_v17 = vmul.f32 %v7063_v43, %v6299_v23  ;;  %v2595_v13 = vmul.f32 %v7065_v56, %v6326_v37  ;;  %v4840_v23 = vld [vmem:[%s6896_s9] sm:$0xff]   ;;  %v4842_v37 = vld [vmem:[%s6896_s9 + $0x10] sm:$0xff]  }
0x1a44   : > { %2729 = vperm.xlu0 %4829, %v2587_v32   ;;  %2629 = vperm.xlu1 %4828, %v2567_v58   ;;  %v7062_v32 = vld [vmem:[#allocation37_spill] sm:$0xff]  ;;  %v5097_v24 = vld [vmem:[%s5605_s22 + $0x60] sm:$0xff] }
0x1a45   : > { %v2585_v58 = vmul.f32 %v7062_v32, %v2541_v1  ;;  %4670 = vmatpush3.bf16.msra.mxu1 %v4840_v23  ;;  %v5093_v1 = vld [vmem:[%s5605_s22 + $0x30] sm:$0xff] }
0x1a48   : > { %2669 = vperm.xlu0 %4829, %v2575_v49   ;;  %2634 = vperm.xlu1 %4828, %v2568_v26   ;;  %v7064_v49 = vld [vmem:[#allocation14_spill] sm:$0xff] }
0x1a49   : > { %v2599_v26 = vmul.f32 %v7064_v49, %v2553_v0 }
0x1a4c   : > { %2754 = vperm.xlu0 %4829, %v2592_v54   ;;  %2654 = vperm.xlu1 %4828, %v2572_v35   ;;  %v7066_v54 = vld [vmem:[#allocation18_spill] sm:$0xff]  ;;  %v7067_v35 = vld [vmem:[#allocation41_spill] sm:$0xff] }
0x1a4d   : > { %v2600_v21 = vmul.f32 %v7066_v54, %v2553_v0  ;;  %v5099_v54 = vld [vmem:[%s5605_s22 + $0x18] sm:$0xff] }
0x1a50   : > { %2624 = vperm.xlu0 %4829, %v2566_v33   ;;  %2659 = vperm.xlu1 %4828, %v2573_v31   ;;  %v2601_v33 = vmul.f32 %v7067_v35, %v2553_v0  ;;  %v4841_v31 = vld [vmem:[%s6896_s9 + $0x8] sm:$0xff]   ;;  %v5090_v0 = vld [vmem:[%s5605_s22] sm:$0xff] }
0x1a51   : > { %v5100_v35 = vld [vmem:[%s5605_s22 + $0x20] sm:$0xf] }
0x1a54   : > { %2694 = vperm.xlu0 %4829, %v2580_v57   ;;  %2614 = vperm.xlu1 %4828, %v2564_v12   ;;  %v7068_v57 = vmov 0.0  }
0x1a55   : > { %4671 = vmatprep.subr.bf16.mxu1 %v7068_v57 }
0x1a56   : > { %4672 = vmatpush3.bf16.msra.mxu1 %v4841_v31 }
0x1a57   : > { %4673 = vmatprep.subr.bf16.mxu1 %v7068_v57 }
0x1a58   : > { %2779 = vperm.xlu0 %4829, %v2597_v4   ;;  %2639 = vperm.xlu1 %4828, %v2569_v50  }
0x1a5a   : > { %4674 = vmatpush3.bf16.msra.mxu1 %v4842_v37  ;;  %v5101_v37 = vld [vmem:[%s5605_s22 + $0x70] sm:$0xf] }
0x1a5b   : > { %4675 = vmatprep.subr.bf16.mxu1 %v7068_v57 }
0x1a5c   : > { %2674 = vperm.xlu0 %4829, %v2576_v7   ;;  %2684 = vperm.xlu1 %4828, %v2578_v5  }
0x1a5e   : > { %4676 = vmatpush3.bf16.msra.mxu1 %v4843_v15 }
0x1a5f   : > { %4705 = vmatprep.subr.bf16.mxu1 %v7068_v57 }
0x1a60   : > { %2764 = vperm.xlu0 %4829, %v2594_v63   ;;  %2664 = vperm.xlu1 %4828, %v2574_v51   ;;  %v5092_v63 = vld [vmem:[%s5605_s22 + $0x28] sm:$0xff] }
0x1a64   : > { %2744 = vperm.xlu0 %4829, %v2590_v25   ;;  %2704 = vperm.xlu1 %4828, %v2582_v29  }
0x1a68   : > { %2724 = vperm.xlu0 %4829, %v2586_v34   ;;  %2709 = vperm.xlu1 %4828, %v2583_v19  }
0x1a6c   : > { %2749 = vperm.xlu0 %4829, %v2591_v6   ;;  %2619 = vperm.xlu1 %4828, %v2565_v61   ;;  %v5095_v6 = vld [vmem:[%s5605_s22 + $0x58] sm:$0xff] }
0x1a70   : > { %2774 = vperm.xlu0 %4829, %v2596_v45   ;;  %2689 = vperm.xlu1 %4828, %v2579_v20  }
0x1a74   : > { %2734 = vperm.xlu1 %4828, %v2588_v18  }
0x1a78   : > { %2714 = vperm.xlu1 %4828, %v2584_v47  }
0x1a7c   : > { %2759 = vperm.xlu1 %4828, %v2593_v53  }
0x1a80   : > { %2649 = vperm.xlu1 %4828, %v2571_v3  }
0x1a84   : > { %2739 = vperm.xlu1 %4828, %v2589_v46  }
0x1a88   : > { %2784 = vperm.xlu1 %4828, %v2598_v44  }
0x1a8c   : > { %2719 = vperm.xlu1 %4828, %v2585_v58  }
0x1a90   : > { %2699 = vperm.xlu1 %4828, %v2581_v17   ;;  %v5098_v17 = vld [vmem:[%s5605_s22 + $0x68] sm:$0xff] }
0x1a94   : > { %2789 = vperm.xlu1 %4828, %v2599_v26  }
0x1a98   : > { %2769 = vperm.xlu1 %4828, %v2595_v13  }
0x1a9c   : > { %2794 = vperm.xlu1 %4828, %v2600_v21  }
0x1aa0   : > { %2799 = vperm.xlu1 %4828, %v2601_v33  }
0x1abb   : > { %v2605_v59 = vpop.permute.xlu1 %2604  ;;  %v6390_v12 = vpop.permute.xlu0 %2679 }
0x1abc   : > { %v2802_v14 = vmul.f32 %v5090_v0, %v2605_v59 }
0x1abe   : > { %v2842_v52 = vsel %vm649_vm1, %v2802_v14, 0.0 }
0x1abf   : > { %v2610_v4 = vpop.permute.xlu1 %2609  ;;  %v6399_v7 = vpop.permute.xlu0 %2644 }
0x1ac0   : > { %v2803_v50 = vmul.f32 %v5091_v2, %v2610_v4 }
0x1ac2   : > { %v2843_v9 = vsel %vm649_vm1, %v2803_v50, 0.0 }
0x1ac3   : > { %v2844_v5 = vadd.f32 %v2843_v9, %v2842_v52  ;;  %v2630_v39 = vpop.permute.xlu1 %2629  ;;  %v6404_v40 = vpop.permute.xlu0 %2729 }
0x1ac4   : > { %v2807_v11 = vmul.f32 %v5092_v63, %v2630_v39 }
0x1ac6   : > { %v2857_v25 = vsel %vm649_vm1, %v2807_v11, 0.0 }
0x1ac7   : > { %v2635_v51 = vpop.permute.xlu1 %2634  ;;  %v2670_v34 = vpop.permute.xlu0 %2669 }
0x1ac8   : > { %v2808_v22 = vmul.f32 %v5093_v1, %v2635_v51  ;;  %v2815_v49 = vmul.f32 %v5098_v17, %v2670_v34 }
0x1aca   : > { %v2858_v8 = vsel %vm649_vm1, %v2808_v22, 0.0  ;;  %v2877_v31 = vsel %vm649_vm1, %v2815_v49, 0.0  ;;  %v5108_v49 = vld [vmem:[%s5605_s22 + $0xa8] sm:$0xff] }
0x1acb   : > { %v2859_v29 = vadd.f32 %v2858_v8, %v2857_v25  ;;  %v2655_v28 = vpop.permute.xlu1 %2654  ;;  %v6413_v20 = vpop.permute.xlu0 %2754 }
0x1acc   : > { %v2812_v19 = vmul.f32 %v5094_v27, %v2655_v28  ;;  %v5103_v28 = vld [vmem:[%s5605_s22 + $0x40] sm:$0xff] }
0x1acd   : > { %v2810_v34 = vmul.f32 %v5103_v28, %v6399_v7 }
0x1ace   : > { %v2872_v61 = vsel %vm649_vm1, %v2812_v19, 0.0 }
0x1acf   : > { %v2660_v16 = vpop.permute.xlu1 %2659  ;;  %v2625_v53 = vpop.permute.xlu0 %2624 }
0x1ad0   : > { %v2813_v36 = vmul.f32 %v5095_v6, %v2660_v16  ;;  %v2806_v33 = vmul.f32 %v5100_v35, %v2625_v53 }
0x1ad2   : > { %v2873_v42 = vsel %vm649_vm1, %v2813_v36, 0.0  ;;  %v2849_v4 = vsel %vm1626_vm11, %v2806_v33, 0.0 }
0x1ad3   : > { %v2874_v45 = vadd.f32 %v2873_v42, %v2872_v61  ;;  %v2615_v60 = vpop.permute.xlu1 %2614  ;;  %v6417_v55 = vpop.permute.xlu0 %2694  ;;  %v2862_v61 = vsel %vm649_vm1, %v2810_v34, 0.0 }
0x1ad4   : > { %v2804_v18 = vmul.f32 %v5096_v30, %v2615_v60  ;;  %v5105_v30 = vld [vmem:[%s5605_s22 + $0x48] sm:$0xf] }
0x1ad6   : > { %v2845_v38 = vsel %vm649_vm1, %v2804_v18, 0.0 }
0x1ad7   : > { %v2846_v47 = vadd.f32 %v2845_v38, %v2844_v5  ;;  %v2640_v10 = vpop.permute.xlu1 %2639  ;;  %v6422_v32 = vpop.permute.xlu0 %2779  ;;  %v5102_v5 = vld [vmem:[%s5605_s22 + $0x38] sm:$0xff]  ;;  %v5106_v38 = vld [vmem:[%s5605_s22 + $0xc8] sm:$0xff] }
0x1ad8   : > { %v2809_v39 = vmul.f32 %v5102_v5, %v2640_v10  ;;  %v5107_v10 = vld [vmem:[%s5605_s22 + $0x80] sm:$0xff] }
0x1ada   : > { %v2860_v22 = vsel %vm649_vm1, %v2809_v39, 0.0 }
0x1adb   : > { %v2685_v48 = vpop.permute.xlu1 %2684  ;;  %v2675_v56 = vpop.permute.xlu0 %2674  ;;  %v2861_v19 = vadd.f32 %v2860_v22, %v2859_v29 }
0x1adc   : > { %v2816_v59 = vmul.f32 %v5101_v37, %v2675_v56  ;;  %v2818_v7 = vmul.f32 %v5107_v10, %v2685_v48  ;;  %v5112_v37 = vld [vmem:[%s5605_s22 + $0x88] sm:$0xff] }
0x1add   : > { %v2863_v53 = vadd.f32 %v2862_v61, %v2861_v19 }
0x1ade   : > { %v2879_v2 = vsel %vm1626_vm11, %v2816_v59, 0.0  ;;  %v2888_v35 = vsel %vm649_vm1, %v2818_v7, 0.0 }
0x1adf   : > { %v2665_v3 = vpop.permute.xlu1 %2664  ;;  %v6434_v63 = vpop.permute.xlu0 %2764 }
0x1ae0   : > { %v2814_v44 = vmul.f32 %v5097_v24, %v2665_v3 }
0x1ae2   : > { %v2875_v43 = vsel %vm649_vm1, %v2814_v44, 0.0 }
0x1ae3   : > { %v6419_v46 = vpop.permute.xlu1 %2704  ;;  %v2876_v13 = vadd.f32 %v2875_v43, %v2874_v45  ;;  %v2745_v16 = vpop.permute.xlu0 %2744  ;;  %v5104_v45 = vld [vmem:[%s5605_s22 + $0xd0] sm:$0xff] }
0x1ae5   : > { %v2878_v14 = vadd.f32 %v2877_v31, %v2876_v13  ;;  %v5109_v13 = vld [vmem:[%s5605_s22 + $0xd8] sm:$0xff] }
0x1ae7   : > { %v2710_v58 = vpop.permute.xlu1 %2709  ;;  %v2880_v9 = vadd.f32 %v2879_v2, %v2878_v14  ;;  %v2725_v3 = vpop.permute.xlu0 %2724 }
0x1ae9   : > { %v2881_v1 = vrot.slane %v2880_v9, 4 }
0x1aeb   : > { %v2620_v26 = vpop.permute.xlu1 %2619  ;;  %v2882_v27 = vadd.f32 %v2881_v1, %v2880_v9 }
0x1aec   : > { %v2805_v21 = vmul.f32 %v5099_v54, %v2620_v26  ;;  %v2823_v26 = vmul.f32 %v5108_v49, %v2710_v58  ;;  %v5110_v54 = vld [vmem:[%s5605_s22 + $0x78] sm:$0xff]  ;;  %v5113_v58 = vld [vmem:[%s5605_s22 + $0xb0] sm:$0xff] }
0x1aed   : > { %v2883_v42 = vrot.slane %v2882_v27, 2  ;;  %v2817_v48 = vmul.f32 %v5110_v54, %v6390_v12 }
0x1aee   : > { %v2847_v23 = vsel %vm649_vm1, %v2805_v21, 0.0  ;;  %v2903_v39 = vsel %vm649_vm1, %v2823_v26, 0.0 }
0x1aef   : > { %v2848_v15 = vadd.f32 %v2847_v23, %v2846_v47  ;;  %v2690_v0 = vpop.permute.xlu1 %2689  ;;  %v2827_v47 = vmul.f32 %v5106_v38, %v6404_v40  ;;  %v2884_v17 = vadd.f32 %v2883_v42, %v2882_v27  ;;  %v5111_v23 = vld [vmem:[%s5605_s22 + $0xa0] sm:$0xff] }
0x1af0   : > { %v2822_v31 = vmul.f32 %v5111_v23, %v6419_v46  ;;  %v2819_v59 = vmul.f32 %v5112_v37, %v2690_v0  ;;  %v5115_v46 = vld [vmem:[%s5605_s22 + $0x90] sm:$0xff]  ;;  %v5116_v42 = vld [vmem:[%s5605_s22 + $0xc0] sm:$0xf] }
0x1af1   : > { %v2850_v50 = vadd.f32 %v2849_v4, %v2848_v15  ;;  %v2917_v21 = vsel %vm649_vm1, %v2827_v47, 0.0  ;;  %v5114_v4 = vld [vmem:[%s5605_s22 + $0xe0] sm:$0xff]  ;;  %v2885_v5 = vrot.slane %v2884_v17, 1  ;;  %v2820_v0 = vmul.f32 %v5115_v46, %v6417_v55 }
0x1af2   : > { %v2830_v2 = vmul.f32 %v5114_v4, %v2745_v16  ;;  %v2902_v28 = vsel %vm649_vm1, %v2822_v31, 0.0  ;;  %v2890_v34 = vsel %vm649_vm1, %v2819_v59, 0.0 }
0x1af3   : > { %v2735_v52 = vpop.permute.xlu1 %2734  ;;  %v2851_v11 = vrot.slane %v2850_v50, 4  ;;  %v2904_v16 = vadd.f32 %v2903_v39, %v2902_v28  ;;  %v2886_v61 = vadd.f32 %v2885_v5, %v2884_v17  ;;  %v2892_v17 = vsel %vm649_vm1, %v2820_v0, 0.0  ;;  %v5124_v28 = vld [vmem:[%s5605_s22 + $0x118] sm:$0xff] }
0x1af4   : > { %v2828_v60 = vmul.f32 %v5104_v45, %v2735_v52  ;;  %v2922_v19 = vsel %vm649_vm1, %v2830_v2, 0.0  ;;  %v2826_v45 = vmul.f32 %v5116_v42, %v2725_v3 }
0x1af5   : > { %v2852_v25 = vadd.f32 %v2851_v11, %v2850_v50  ;;  %v2887_v11 = vsel %vm649_vm1, %v2817_v48, 0.0 }
0x1af6   : > { %v2918_v56 = vsel %vm649_vm1, %v2828_v60, 0.0  ;;  %v5117_v60 = vld [vmem:[%s5605_s22 + $0xe8] sm:$0xf]  ;;  %v2909_v54 = vsel %vm1626_vm11, %v2826_v45, 0.0 }
0x1af7   : > { %v2715_v51 = vpop.permute.xlu1 %2714  ;;  %v2853_v6 = vrot.slane %v2852_v25, 2  ;;  %v2919_v52 = vadd.f32 %v2918_v56, %v2917_v21  ;;  %v5121_v21 = vld [vmem:[%s5605_s22 + $0x98] sm:$0xf] }
0x1af8   : > { %v2824_v15 = vmul.f32 %v5113_v58, %v2715_v51  ;;  %v2750_v51 = vpop.permute.xlu0 %2749 }
0x1af9   : > { %v2854_v24 = vadd.f32 %v2853_v6, %v2852_v25  ;;  %v2889_v25 = vadd.f32 %v2888_v35, %v2887_v11 }
0x1afa   : > { %v2905_v27 = vsel %vm649_vm1, %v2824_v15, 0.0 }
0x1afb   : > { %v6437_v8 = vpop.permute.xlu1 %2759  ;;  %v2855_v50 = vrot.slane %v2854_v24, 1  ;;  %v2891_v47 = vadd.f32 %v2890_v34, %v2889_v25  ;;  %v2906_v10 = vadd.f32 %v2905_v27, %v2904_v16  ;;  %v2837_v34 = vmul.f32 %v5124_v28, %v6422_v32  ;;  %v5125_v16 = vld [vmem:[%s5605_s22 + $0x110] sm:$0xf] }
0x1afc   : > { %v2775_v5 = vpop.permute.xlu0 %2774 }
0x1afd   : > { %v2856_v6 = vadd.f32 %v2855_v50, %v2854_v24  ;;  %v5122_v50 = vld [vmem:[%s5605_s22 + $0x100] sm:$0xff] }
0x1aff   : > { %v2650_v36 = vpop.permute.xlu1 %2649  ;;  %v2962_v3 = vpack.c.bf16 %v2856_v6, %v2856_v6  ;;  %v2836_v6 = vmul.f32 %v5125_v16, %v2775_v5 }
0x1b00   : > { %v2811_v18 = vmul.f32 %v5105_v30, %v2650_v36  ;;  %v2831_v30 = vmul.f32 %v5117_v60, %v2750_v51  ;;  %v5123_v51 = vld [vmem:[%s5605_s22 + $0x120] sm:$0xff] }
0x1b01   : > { %v3042_v59 = vunpack.c.l.b16 %v2962_v3 }
0x1b02   : > { %v2864_v29 = vsel %vm1626_vm11, %v2811_v18, 0.0  ;;  %v5118_v18 = vld [vmem:[%s5605_s22 + $0xb8] sm:$0xff]  ;;  %v2924_v48 = vsel %vm1626_vm11, %v2831_v30, 0.0 }
0x1b03   : > { %v2865_v44 = vadd.f32 %v2864_v29, %v2863_v53  ;;  %v2740_v43 = vpop.permute.xlu1 %2739  ;;  %v5119_v29 = vld [vmem:[%s5605_s22 + $0xf0] sm:$0xff] }
0x1b04   : > { %v2829_v40 = vmul.f32 %v5109_v13, %v2740_v43  ;;  %v5120_v43 = vld [vmem:[%s5605_s22 + $0xf8] sm:$0xff] }
0x1b05   : > { %v2866_v33 = vrot.slane %v2865_v44, 4  ;;  %v2833_v24 = vmul.f32 %v5120_v43, %v6437_v8  ;;  %v2893_v8 = vadd.f32 %v2892_v17, %v2891_v47 }
0x1b06   : > { %v2920_v14 = vsel %vm649_vm1, %v2829_v40, 0.0  ;;  %v2964_v40 = vpack.c.bf16 %v2886_v61, %v2886_v61  ;;  %v5127_v61 = vld [vmem:[%s5605_s22 + $0x108] sm:$0xff] }
0x1b07   : > { %v2867_v12 = vadd.f32 %v2866_v33, %v2865_v44  ;;  %v6461_v9 = vpop.permute.xlu1 %2784  ;;  %v2921_v22 = vadd.f32 %v2920_v14, %v2919_v52  ;;  %v2832_v44 = vmul.f32 %v5119_v29, %v6413_v20  ;;  %v2933_v31 = vsel %vm649_vm1, %v2833_v24, 0.0 }
0x1b08   : > { %v2834_v52 = vmul.f32 %v5122_v50, %v6434_v63 }
0x1b09   : > { %v2868_v1 = vrot.slane %v2867_v12, 2  ;;  %v2923_v53 = vadd.f32 %v2922_v19, %v2921_v22  ;;  %v2932_v2 = vsel %vm649_vm1, %v2832_v44, 0.0  ;;  %v5128_v44 = vld [vmem:[%s5605_s22 + $0x130] sm:$0xff] }
0x1b0a   : > { %v2934_v39 = vadd.f32 %v2933_v31, %v2932_v2  ;;  %v2935_v19 = vsel %vm649_vm1, %v2834_v52, 0.0 }
0x1b0b   : > { %v2869_v36 = vadd.f32 %v2868_v1, %v2867_v12  ;;  %v2720_v55 = vpop.permute.xlu1 %2719  ;;  %v2925_v33 = vadd.f32 %v2924_v48, %v2923_v53  ;;  %v3044_v12 = vunpack.c.l.b16 %v2964_v40  ;;  %v2838_v1 = vmul.f32 %v5123_v51, %v6461_v9  ;;  %v5129_v48 = vld [vmem:[%s5605_s22 + $0x138] sm:$0xf] }
0x1b0c   : > { %v2825_v38 = vmul.f32 %v5118_v18, %v2720_v55  ;;  %v2936_v9 = vadd.f32 %v2935_v19, %v2934_v39  ;;  %v2939_v53 = vsel %vm1626_vm11, %v2836_v6, 0.0 }
0x1b0d   : > { %v2870_v7 = vrot.slane %v2869_v36, 1  ;;  %v2926_v46 = vrot.slane %v2925_v33, 4  ;;  %v2948_v30 = vsel %vm649_vm1, %v2838_v1, 0.0 }
0x1b0e   : > { %v2907_v49 = vsel %vm649_vm1, %v2825_v38, 0.0 }
0x1b0f   : > { %v2871_v26 = vadd.f32 %v2870_v7, %v2869_v36  ;;  %v2908_v56 = vadd.f32 %v2907_v49, %v2906_v10  ;;  %v2700_v13 = vpop.permute.xlu1 %2699  ;;  %v5126_v36 = vld [vmem:[%s5605_s22 + $0x128] sm:$0xff]  ;;  %v2927_v45 = vadd.f32 %v2926_v46, %v2925_v33  ;;  %v2947_v7 = vsel %vm649_vm1, %v2837_v34, 0.0  ;;  %s7075_s22 = smov 32  }
0x1b10   : > { %v2821_v35 = vmul.f32 %v5121_v21, %v2700_v13  ;;  %v2949_v49 = vadd.f32 %v2948_v30, %v2947_v7  ;;  %v6532_v30 = vld [vmem:[%s7070_s6 + $0x8] sm:$0xff]  }
0x1b11   : > { %v2963_v20 = vpack.c.bf16 %v2871_v26, %v2871_v26  ;;  %v2910_v23 = vadd.f32 %v2909_v54, %v2908_v56  ;;  %v2928_v24 = vrot.slane %v2927_v45, 2 }
0x1b12   : > { %v2894_v37 = vsel %vm1626_vm11, %v2821_v35, 0.0 }
0x1b13   : > { %v3043_v58 = vunpack.c.l.b16 %v2963_v20  ;;  %v2911_v15 = vrot.slane %v2910_v23, 4  ;;  %v2895_v14 = vadd.f32 %v2894_v37, %v2893_v8  ;;  %v2790_v4 = vpop.permute.xlu1 %2789  ;;  %v2929_v35 = vadd.f32 %v2928_v24, %v2927_v45 }
0x1b14   : > { %v2839_v55 = vmul.f32 %v5126_v36, %v2790_v4 }
0x1b15   : > { %v3050_v11 = vsel %vm1977_vm10, %v3043_v58, %v3042_v59  ;;  %v2896_v0 = vrot.slane %v2895_v14, 4  ;;  %v2912_v22 = vadd.f32 %v2911_v15, %v2910_v23  ;;  %v2930_v58 = vrot.slane %v2929_v35, 1 }
0x1b16   : > { %v3051_v25 = vsel %vm1979_vm9, %v3044_v12, %v3050_v11  ;;  %v2950_v29 = vsel %vm649_vm1, %v2839_v55, 0.0 }
0x1b17   : > { %v2897_v63 = vadd.f32 %v2896_v0, %v2895_v14  ;;  %v2770_v27 = vpop.permute.xlu1 %2769  ;;  %v2913_v18 = vrot.slane %v2912_v22, 2  ;;  %v2951_v13 = vadd.f32 %v2950_v29, %v2949_v49  ;;  %v2931_v12 = vadd.f32 %v2930_v58, %v2929_v35  ;;  %v4421_v49 = vld [vmem:[%s7072_s7] ss:$0 sm:$0xff] }
0x1b18   : > { %v2835_v42 = vmul.f32 %v5127_v61, %v2770_v27 }
0x1b19   : > { %v2898_v60 = vrot.slane %v2897_v63, 2  ;;  %v2914_v26 = vadd.f32 %v2913_v18, %v2912_v22  ;;  %v2967_v1 = vpack.c.bf16 %v2931_v12, %v2931_v12 }
0x1b1a   : > { %v2937_v38 = vsel %vm649_vm1, %v2835_v42, 0.0 }
0x1b1b   : > { %v2899_v32 = vadd.f32 %v2898_v60, %v2897_v63  ;;  %v2938_v47 = vadd.f32 %v2937_v38, %v2936_v9  ;;  %v2795_v10 = vpop.permute.xlu1 %2794  ;;  %v2915_v8 = vrot.slane %v2914_v26, 1  ;;  %v3047_v16 = vunpack.c.l.b16 %v2967_v1  ;;  %v4845_v60 = vld [vmem:[%s7069_s5 + $0x8] sm:$0xff]   ;;  %v6524_v9 = vld [vmem:[%s7070_s6] sm:$0xff]   ;;  %s5232_s6 = smov [#allocation5]  }
0x1b1c   : > { %v2840_v43 = vmul.f32 %v5128_v44, %v2795_v10  ;;  %s5134_s7 = sshll.u32 %s5232_s6, 4  ;;  %s5135_s7 = int_to_ptr.vmem [resolvable:$false] %s5134_s7 }
0x1b1d   : > { %v2900_v17 = vrot.slane %v2899_v32, 1  ;;  %v2940_v3 = vadd.f32 %v2939_v53, %v2938_v47  ;;  %v2916_v2 = vadd.f32 %v2915_v8, %v2914_v26  ;;  %v7071_v53 = vmov 0   ;;  %s5136_s8 = scalar_lea.vmem %s5135_s7, 256 }
0x1b1e   : > { %v2952_v56 = vsel %vm649_vm1, %v2840_v43, 0.0 }
0x1b1f   : > { %v2941_v40 = vrot.slane %v2940_v3, 4  ;;  %v2800_v54 = vpop.permute.xlu1 %2799  ;;  %v2901_v20 = vadd.f32 %v2900_v17, %v2899_v32  ;;  %v2953_v23 = vadd.f32 %v2952_v56, %v2951_v13  ;;  %v2966_v46 = vpack.c.bf16 %v2916_v2, %v2916_v2 }
0x1b20   : > { %v2841_v21 = vmul.f32 %v5129_v48, %v2800_v54 }
0x1b21   : > { %v2942_v33 = vadd.f32 %v2941_v40, %v2940_v3  ;;  %v2965_v15 = vpack.c.bf16 %v2901_v20, %v2901_v20  ;;  %v3046_v34 = vunpack.c.l.b16 %v2966_v46 }
0x1b22   : > { %v2954_v31 = vsel %vm1626_vm11, %v2841_v21, 0.0 }
0x1b23   : > { %v2943_v37 = vrot.slane %v2942_v33, 2  ;;  %v2955_v59 = vadd.f32 %v2954_v31, %v2953_v23  ;;  %v3045_v5 = vunpack.c.l.b16 %v2965_v15 }
0x1b25   : > { %v2944_v14 = vadd.f32 %v2943_v37, %v2942_v33  ;;  %v2956_v4 = vrot.slane %v2955_v59, 4  ;;  %v3052_v22 = vsel %vm1981_vm8, %v3045_v5, %v3051_v25  ;;  %v4844_v25 = vld [vmem:[%s7069_s5] sm:$0xff]   ;;  %s6785_s5 = scalar_lea.vmem [#allocation3], %s4382_s20  ;;  %s6808_s20 = scalar_lea.hbm %s6905_s18, %s6970_s25 }
0x1b26   : > { %v3053_v27 = vsel %vm1983_vm7, %v3046_v34, %v3052_v22  ;;  %4682 = vmatpush3.bf16.msra.mxu0 %v4844_v25 }
0x1b27   : > { %v2945_v50 = vrot.slane %v2944_v14, 1  ;;  %v2957_v52 = vadd.f32 %v2956_v4, %v2955_v59  ;;  %v3054_v55 = vsel %vm1985_vm6, %v3047_v16, %v3053_v27  ;;  %4683 = vmatprep.subr.bf16.mxu0 %v7068_v57 }
0x1b29   : > { %v2946_v39 = vadd.f32 %v2945_v50, %v2944_v14  ;;  %v2958_v11 = vrot.slane %v2957_v52, 2 }
0x1b2a   : > { %4684 = vmatpush3.bf16.msra.mxu0 %v4845_v60 }
0x1b2b   : > { %v2959_v0 = vadd.f32 %v2958_v11, %v2957_v52  ;;  %v2968_v51 = vpack.c.bf16 %v2946_v39, %v2946_v39  ;;  %4689 = vmatprep.subr.bf16.mxu0 %v7068_v57 }
0x1b2d   : > { %v2960_v28 = vrot.slane %v2959_v0, 1  ;;  %v3048_v19 = vunpack.c.l.b16 %v2968_v51 }
0x1b2f   : > { %v2961_v63 = vadd.f32 %v2960_v28, %v2959_v0  ;;  %v3055_v61 = vsel %vm1987_vm5, %v3048_v19, %v3054_v55 }
0x1b31   : > { %v2969_v6 = vpack.c.bf16 %v2961_v63, %v2961_v63 }
0x1b33   : > { %v3049_v36 = vunpack.c.l.b16 %v2969_v6 }
0x1b35   : > { %v3056_v42 = vsel %vm1989_vm4, %v3049_v36, %v3055_v61  ;;  %vm7079_vm4 = vcmask 260102  }
0x1b36   : > { %v3057_v45 = vpack.c.b16 %v3056_v42, %v3056_v42 }
0x1b38   : > { %4678 = vmatmul.mubr.msk.bf16.vlgmr.msra.gmra.mrb[20].mxu1 %vm649_vm1, %v3057_v45  ;;  %vm4241_vm1 = vcmask 490496  }
0x1b39   : > { %4709 = vmatprep.mubr.msk.bf16.mxu1 %vm5227_vm0, %v7068_v57  ;;  %4706 = vmatpush3.bf16.msra.mxu1 %v6524_v9 }
0x1b3a   : > { %4707 = vmatprep.subr.bf16.mxu1 %v7068_v57 }
0x1b3d   : > { %4708 = vmatpush3.bf16.msra.mxu1 %v6532_v30 }
0x1b3e   : > { %4721 = vmatprep.subr.bf16.mxu1 %v7068_v57 }
0x1c0b   : > { %v3119_v18 = vpop.f32.mrb[20].mxu1 }
0x1c0c   : > { %5024 = vtanh.f32 %v3119_v18  ;;  %v4679_v38 = vpop.f32.mrb[21].mxu1 }
0x1c0d   : > { %v3122_v32 = vpop.f32.mrb[22].mxu1 }
0x1c0e   : > { %v4680_v47 = vpop.f32.mrb[23].mxu1 }
0x1c16   : > { %v5025_v10 = vpop.eup %5024 }
0x1c17   : > { %v3126_v7 = vpack.c.bf16 %v5025_v10, %v5025_v10 }
0x1c19   : > { %4686 = vmatmul.mubr.msk.bf16.vlgmr.msra.gmra.mrb[20].mxu0 %vm709_vm2, %v3126_v7 }
0x1c1a   : > { %4690 = vmatpush3.bf16.msra.mxu0 %v6524_v9  ;;  %4693 = vmatprep.mubr.msk.bf16.mxu0 %vm5227_vm0, %v7068_v57 }
0x1c1b   : > { %4691 = vmatprep.subr.bf16.mxu0 %v7068_v57 }
0x1c1e   : > { %4692 = vmatpush3.bf16.msra.mxu0 %v6532_v30 }
0x1c1f   : > { %4697 = vmatprep.subr.bf16.mxu0 %v7068_v57 }
0x1c21   : > { %4694 = vmatmul.mubr.bf16.vlgmr.msra.gmra.mrb[24].mxu0 %v7071_v53 }
0x1c22   : > { %4698 = vmatpush3.bf16.msra.mxu0 %v6524_v9  ;;  %4701 = vmatprep.mubr.msk.bf16.mxu0 %vm5227_vm0, %v7068_v57 }
0x1c23   : > { %4699 = vmatprep.subr.bf16.mxu0 %v7068_v57 }
0x1c26   : > { %4700 = vmatpush3.bf16.msra.mxu0 %v6532_v30 }
0x1c27   : > { %4713 = vmatprep.subr.bf16.mxu0 %v7068_v57 }
0x1cec   : > { %v3187_v29 = vpop.f32.mrb[20].mxu0 }
0x1ced   : > { %v4687_v44 = vpop.f32.mrb[21].mxu0  ;;  %v6554_v17 = vadd.f32 %v4421_v49, %v3187_v29 }
0x1cee   : > { %v3190_v43 = vpop.f32.mrb[22].mxu0 }
0x1cef   : > { %v4688_v24 = vpop.f32.mrb[23].mxu0 }
0x1cf4   : > { %v3243_v3 = vpop.f32.mrb[24].mxu0 }
0x1cf5   : > { %v3249_v26 = vadd.f32 %v3243_v3, %v6554_v17  ;;  %v4695_v56 = vpop.f32.mrb[25].mxu0 }
0x1cf6   : > { %v3246_v13 = vpop.f32.mrb[26].mxu0 }
0x1cf7   : > { %5026 = vtanh.f32 %v3249_v26  ;;  %v4696_v40 = vpop.f32.mrb[27].mxu0  ;;  %v4427_v48 = vmul.f32 -1.442695, %v3249_v26 }
0x1cf9   : > { %5028 = vpow2.f32 %v4427_v48 }
0x1d01   : > { %v5027_v54 = vpop.eup %5026 }
0x1d02   : > { %3259 = vrot.lane.b32.xlu0 %v5027_v54, %s7073_s1 }
0x1d03   : > { %v5029_v21 = vpop.eup %5028 }
0x1d04   : > { %v3253_v35 = vadd.f32 1.0, %v5029_v21 }
0x1d06   : > { %5030 = vrcp.f32 %v3253_v35 }
0x1d10   : > { %v5031_v20 = vpop.eup %5030 }
0x1d11   : > { %v3257_v8 = vmul.f32 0.0, %v5031_v20 }
0x1d74   : > { %v3260_v33 = vpop.permute.xlu0 %3259 }
0x1d75   : > { %v3262_v23 = vmul.f32 %v5031_v20, %v3260_v33 }
0x1d77   : > { %3264 = vrot.lane.b32.xlu1 %v3262_v23, %s6968_s19 }
0x1de9   : > { %v3265_v31 = vpop.permute.xlu1 %3264 }
0x1dea   : > { %v3267_v37 = vadd.f32 %v3265_v31, %v3257_v8 }
0x1dec   : > { %5032 = vtanh.f32 %v3267_v37  ;;  %v3338_v34 = vrot.slane %v3267_v37, 7 }
0x1df6   : > { %v5033_v59 = vpop.eup %5032 }
0x1df7   : > { %3270 = vrot.lane.b32.xlu0 %v5033_v59, %s7073_s1 }
0x1e69   : > { %v3271_v58 = vpop.permute.xlu0 %3270 }
0x1e6a   : > { %v6560_v15 = vmul.f32 %v5031_v20, %v3271_v58 }
0x1e6c   : > { %v3279_v14 = vpack.c.bf16 %v6560_v15, %v6560_v15 }
0x1e6e   : > { %3281 = vrot.lane.b32.xlu1 %v3279_v14, %s6968_s19 }
0x1ee0   : > { %v3282_v4 = vpop.permute.xlu1 %3281 }
0x1ee1   : > { %4702 = vmatmul.mubr.msk.bf16.vlgmr.msra.gmra.mrb[28].mxu0 %vm709_vm2, %v3282_v4 }
0x1ee2   : > { %4714 = vmatpush3.bf16.msra.mxu0 %v6524_v9  ;;  %4717 = vmatprep.mubr.msk.bf16.mxu0 %vm5227_vm0, %v7068_v57 }
0x1ee3   : > { %4715 = vmatprep.subr.bf16.mxu0 %v7068_v57 }
0x1ee6   : > { %4716 = vmatpush3.bf16.msra.mxu0 %v6532_v30 }
0x1ee7   : > { %4729 = vmatprep.subr.bf16.mxu0 %v7068_v57 }
0x1fb4   : > { %v3320_v2 = vpop.f32.mrb[28].mxu0 }
0x1fb5   : > { %v3327_v50 = vrot.slane %v3320_v2, 7  ;;  %v4703_v52 = vpop.f32.mrb[29].mxu0 }
0x1fb6   : > { %v3323_v12 = vpop.f32.mrb[30].mxu0 }
0x1fb7   : > { %v3329_v5 = vadd.f32 %v3327_v50, %v6554_v17  ;;  %v4704_v39 = vpop.f32.mrb[31].mxu0 }
0x1fb9   : > { %5034 = vtanh.f32 %v3329_v5  ;;  %v4429_v46 = vmul.f32 -1.442695, %v3329_v5 }
0x1fbb   : > { %5036 = vpow2.f32 %v4429_v46 }
0x1fc3   : > { %v5035_v11 = vpop.eup %5034 }
0x1fc4   : > { %3342 = vrot.lane.b32.xlu0 %v5035_v11, %s7073_s1 }
0x1fc5   : > { %v5037_v0 = vpop.eup %5036 }
0x1fc6   : > { %v3333_v51 = vadd.f32 1.0, %v5037_v0 }
0x1fc8   : > { %5038 = vrcp.f32 %v3333_v51 }
0x1fd2   : > { %v5039_v1 = vpop.eup %5038 }
0x1fd3   : > { %v3340_v63 = vmul.f32 %v5039_v1, %v3338_v34 }
0x2036   : > { %v3343_v22 = vpop.permute.xlu0 %3342 }
0x2037   : > { %v3345_v28 = vmul.f32 %v5039_v1, %v3343_v22 }
0x2039   : > { %3347 = vrot.lane.b32.xlu1 %v3345_v28, %s6968_s19 }
0x20ab   : > { %v3348_v27 = vpop.permute.xlu1 %3347 }
0x20ac   : > { %v3350_v19 = vadd.f32 %v3348_v27, %v3340_v63 }
0x20ae   : > { %5040 = vtanh.f32 %v3350_v19  ;;  %v3423_v49 = vrot.slane %v3350_v19, 7 }
0x20b8   : > { %v5041_v16 = vpop.eup %5040 }
0x20b9   : > { %3353 = vrot.lane.b32.xlu0 %v5041_v16, %s7073_s1 }
0x212b   : > { %v3354_v6 = vpop.permute.xlu0 %3353 }
0x212c   : > { %v6576_v36 = vmul.f32 %v5039_v1, %v3354_v6 }
0x212e   : > { %v3362_v55 = vpack.c.bf16 %v6576_v36, %v6576_v36 }
0x2130   : > { %v3364_v61 = vshrl.u32 %v3362_v55, 16 }
0x2132   : > { %3366 = vrot.lane.b32.xlu1 %v3364_v61, %s6968_s19 }
0x21a4   : > { %v3367_v42 = vpop.permute.xlu1 %3366 }
0x21a5   : > { %4710 = vmatmul.mubr.msk.bf16.vlgmr.msra.gmra.mrb[24].mxu1 %vm709_vm2, %v3367_v42 }
0x21a6   : > { %4722 = vmatpush3.bf16.msra.mxu1 %v6524_v9  ;;  %4725 = vmatprep.mubr.msk.bf16.mxu1 %vm5227_vm0, %v7068_v57 }
0x21a7   : > { %4723 = vmatprep.subr.bf16.mxu1 %v7068_v57 }
0x21aa   : > { %4724 = vmatpush3.bf16.msra.mxu1 %v6532_v30 }
0x21ab   : > { %4737 = vmatprep.subr.bf16.mxu1 %v7068_v57 }
0x2278   : > { %v3405_v45 = vpop.f32.mrb[24].mxu1 }
0x2279   : > { %v3412_v25 = vrot.slane %v3405_v45, 6  ;;  %v4711_v60 = vpop.f32.mrb[25].mxu1 }
0x227a   : > { %v3408_v18 = vpop.f32.mrb[26].mxu1 }
0x227b   : > { %v3414_v38 = vadd.f32 %v3412_v25, %v6554_v17  ;;  %v4712_v32 = vpop.f32.mrb[27].mxu1 }
0x227d   : > { %5042 = vtanh.f32 %v3414_v38  ;;  %v4431_v10 = vmul.f32 -1.442695, %v3414_v38 }
0x227f   : > { %5044 = vpow2.f32 %v4431_v10 }
0x2287   : > { %v5043_v47 = vpop.eup %5042 }
0x2288   : > { %3427 = vrot.lane.b32.xlu0 %v5043_v47, %s7073_s1 }
0x2289   : > { %v5045_v7 = vpop.eup %5044 }
0x228a   : > { %v3418_v29 = vadd.f32 1.0, %v5045_v7 }
0x228c   : > { %5046 = vrcp.f32 %v3418_v29 }
0x2296   : > { %v5047_v44 = vpop.eup %5046 }
0x2297   : > { %v3425_v3 = vmul.f32 %v5047_v44, %v3423_v49 }
0x22fa   : > { %v3428_v43 = vpop.permute.xlu0 %3427 }
0x22fb   : > { %v3430_v24 = vmul.f32 %v5047_v44, %v3428_v43 }
0x22fd   : > { %3432 = vrot.lane.b32.xlu1 %v3430_v24, %s6968_s19 }
0x236f   : > { %v3433_v26 = vpop.permute.xlu1 %3432 }
0x2370   : > { %v3435_v56 = vadd.f32 %v3433_v26, %v3425_v3 }
0x2372   : > { %5048 = vtanh.f32 %v3435_v56  ;;  %v3507_v12 = vrot.slane %v3435_v56, 7 }
0x237c   : > { %v5049_v13 = vpop.eup %5048 }
0x237d   : > { %3438 = vrot.lane.b32.xlu0 %v5049_v13, %s7073_s1 }
0x23ef   : > { %v3439_v40 = vpop.permute.xlu0 %3438 }
0x23f0   : > { %v6592_v54 = vmul.f32 %v5047_v44, %v3439_v40 }
0x23f2   : > { %v3447_v48 = vpack.c.bf16 %v6592_v54, %v6592_v54 }
0x23f4   : > { %v3449_v21 = vrot.slane %v3447_v48, 1 }
0x23f6   : > { %3450 = vrot.lane.b32.xlu1 %v3449_v21, %s6968_s19 }
0x2468   : > { %v3451_v35 = vpop.permute.xlu1 %3450 }
0x2469   : > { %4718 = vmatmul.mubr.msk.bf16.vlgmr.msra.gmra.mrb[32].mxu0 %vm709_vm2, %v3451_v35 }
0x246a   : > { %4730 = vmatpush3.bf16.msra.mxu0 %v6524_v9  ;;  %4733 = vmatprep.mubr.msk.bf16.mxu0 %vm5227_vm0, %v7068_v57 }
0x246b   : > { %4731 = vmatprep.subr.bf16.mxu0 %v7068_v57 }
0x246e   : > { %4732 = vmatpush3.bf16.msra.mxu0 %v6532_v30 }
0x246f   : > { %4745 = vmatprep.subr.bf16.mxu0 %v7068_v57 }
0x253c   : > { %v3489_v20 = vpop.f32.mrb[32].mxu0 }
0x253d   : > { %v3496_v33 = vrot.slane %v3489_v20, 5  ;;  %v4719_v23 = vpop.f32.mrb[33].mxu0 }
0x253e   : > { %v3492_v8 = vpop.f32.mrb[34].mxu0 }
0x253f   : > { %v3498_v31 = vadd.f32 %v3496_v33, %v6554_v17  ;;  %v4720_v37 = vpop.f32.mrb[35].mxu0 }
0x2541   : > { %5050 = vtanh.f32 %v3498_v31  ;;  %v4433_v58 = vmul.f32 -1.442695, %v3498_v31 }
0x2543   : > { %5052 = vpow2.f32 %v4433_v58 }
0x254b   : > { %v5051_v59 = vpop.eup %5050 }
0x254c   : > { %3511 = vrot.lane.b32.xlu0 %v5051_v59, %s7073_s1 }
0x254d   : > { %v5053_v14 = vpop.eup %5052 }
0x254e   : > { %v3502_v4 = vadd.f32 1.0, %v5053_v14 }
0x2550   : > { %5054 = vrcp.f32 %v3502_v4  ;;  %v4850_v4 = vld [vmem:[%s6898_s11 + $0x4] ss:$8 sps:$4 sm:$0xff]  }
0x255a   : > { %v5055_v2 = vpop.eup %5054 }
0x255b   : > { %v3509_v5 = vmul.f32 %v5055_v2, %v3507_v12 }
0x25be   : > { %v3512_v50 = vpop.permute.xlu0 %3511 }
0x25bf   : > { %v3514_v52 = vmul.f32 %v5055_v2, %v3512_v50 }
0x25c1   : > { %3516 = vrot.lane.b32.xlu1 %v3514_v52, %s6968_s19 }
0x2633   : > { %v3517_v39 = vpop.permute.xlu1 %3516 }
0x2634   : > { %v3519_v11 = vadd.f32 %v3517_v39, %v3509_v5  ;;  %v4848_v39 = vld [vmem:[%s6898_s11] ss:$8 sps:$4 sm:$0xff]  }
0x2636   : > { %5056 = vtanh.f32 %v3519_v11  ;;  %v3593_v32 = vrot.slane %v3519_v11, 7  ;;  %v4853_v11 = vld [vmem:[%s6898_s11 + $0x14] ss:$8 sps:$4 sm:$0xff]  }
0x2640   : > { %v5057_v46 = vpop.eup %5056 }
0x2641   : > { %3522 = vrot.lane.b32.xlu0 %v5057_v46, %s7073_s1 }
0x26b3   : > { %v3523_v0 = vpop.permute.xlu0 %3522 }
0x26b4   : > { %v6608_v51 = vmul.f32 %v5055_v2, %v3523_v0  ;;  %v4851_v0 = vld [vmem:[%s6898_s11 + $0x10] ss:$8 sps:$4 sm:$0xff]  }
0x26b6   : > { %v3531_v1 = vpack.c.bf16 %v6608_v51, %v6608_v51 }
0x26b8   : > { %v3533_v22 = vshrl.u32 %v3531_v1, 16  ;;  %v7074_v1 = vld [vmem:[#allocation12_spill] sm:$0xff] }
0x26ba   : > { %v3535_v28 = vrot.slane %v3533_v22, 1 }
0x26bc   : > { %3536 = vrot.lane.b32.xlu1 %v3535_v28, %s6968_s19 }
0x272e   : > { %v3537_v34 = vpop.permute.xlu1 %3536 }
0x272f   : > { %4726 = vmatmul.mubr.msk.bf16.vlgmr.msra.gmra.mrb[28].mxu1 %vm709_vm2, %v3537_v34 }
0x2730   : > { %4738 = vmatpush3.bf16.msra.mxu1 %v6524_v9  ;;  %4741 = vmatprep.mubr.msk.bf16.mxu1 %vm5227_vm0, %v7068_v57 }
0x2731   : > { %4739 = vmatprep.subr.bf16.mxu1 %v7068_v57 }
0x2734   : > { %4740 = vmatpush3.bf16.msra.mxu1 %v6532_v30 }
0x2735   : > { %3907 = vmatprep.subr.bf16.mxu1 %v4850_v4  ;;  %v4866_v4 = vld [vmem:[%s6900_s13 + $0x70] sm:$0xff]  }
0x2802   : > { %v3575_v63 = vpop.f32.mrb[28].mxu1 }
0x2803   : > { %v3582_v27 = vrot.slane %v3575_v63, 4  ;;  %v4727_v19 = vpop.f32.mrb[29].mxu1 }
0x2804   : > { %v3578_v16 = vpop.f32.mrb[30].mxu1 }
0x2805   : > { %v3584_v6 = vadd.f32 %v3582_v27, %v6554_v17  ;;  %v4728_v55 = vpop.f32.mrb[31].mxu1 }
0x2807   : > { %5058 = vtanh.f32 %v3584_v6  ;;  %v4435_v42 = vmul.f32 -1.442695, %v3584_v6 }
0x2809   : > { %5060 = vpow2.f32 %v4435_v42 }
0x2811   : > { %v5059_v61 = vpop.eup %5058 }
0x2812   : > { %3597 = vrot.lane.b32.xlu0 %v5059_v61, %s7073_s1 }
0x2813   : > { %v5061_v45 = vpop.eup %5060 }
0x2814   : > { %v3588_v25 = vadd.f32 1.0, %v5061_v45 }
0x2816   : > { %5062 = vrcp.f32 %v3588_v25 }
0x2820   : > { %v5063_v60 = vpop.eup %5062 }
0x2821   : > { %v3595_v47 = vmul.f32 %v5063_v60, %v3593_v32 }
0x2884   : > { %v3598_v18 = vpop.permute.xlu0 %3597 }
0x2885   : > { %v3600_v38 = vmul.f32 %v5063_v60, %v3598_v18 }
0x2887   : > { %3602 = vrot.lane.b32.xlu1 %v3600_v38, %s6968_s19 }
0x28f9   : > { %v3603_v10 = vpop.permute.xlu1 %3602 }
0x28fa   : > { %v3605_v7 = vadd.f32 %v3603_v10, %v3595_v47 }
0x28fc   : > { %5064 = vtanh.f32 %v3605_v7 }
0x2906   : > { %v5065_v29 = vpop.eup %5064 }
0x2907   : > { %3608 = vrot.lane.b32.xlu0 %v5065_v29, %s7073_s1  ;;  %v4854_v29 = vld [vmem:[%s6900_s13 + $0x40] sm:$0xff]  }
0x2979   : > { %v3609_v44 = vpop.permute.xlu0 %3608 }
0x297a   : > { %v6623_v43 = vmul.f32 %v5063_v60, %v3609_v44 }
0x297c   : > { %v3617_v24 = vpack.c.bf16 %v6623_v43, %v6623_v43 }
0x297e   : > { %v3619_v49 = vrot.slane %v3617_v24, 2 }
0x2980   : > { %3620 = vrot.lane.b32.xlu1 %v3619_v49, %s6968_s19 }
0x29f2   : > { %v3621_v3 = vpop.permute.xlu1 %3620 }
0x29f3   : > { %4734 = vmatmul.mubr.msk.bf16.vlgmr.msra.gmra.mrb[36].mxu0 %vm709_vm2, %v3621_v3 }
0x29f4   : > { %4746 = vmatpush3.bf16.msra.mxu0 %v6524_v9  ;;  %4749 = vmatprep.mubr.msk.bf16.mxu0 %vm5227_vm0, %v7068_v57 }
0x29f5   : > { %4747 = vmatprep.subr.bf16.mxu0 %v7068_v57 }
0x29f8   : > { %4748 = vmatpush3.bf16.msra.mxu0 %v6532_v30  ;;  %v3677_v30 = vrot.slane %v3605_v7, 7 }
0x29f9   : > { %4546 = vmatprep.subr.bf16.mxu0 %v4854_v29 }
0x2ac6   : > { %v3659_v26 = vpop.f32.mrb[36].mxu0 }
0x2ac7   : > { %v3666_v56 = vrot.slane %v3659_v26, 3  ;;  %v4735_v13 = vpop.f32.mrb[37].mxu0 }
0x2ac8   : > { %v3662_v40 = vpop.f32.mrb[38].mxu0 }
0x2ac9   : > { %v3668_v48 = vadd.f32 %v3666_v56, %v6554_v17  ;;  %v4736_v21 = vpop.f32.mrb[39].mxu0  ;;  %v3875_v56 = vld [vmem:[%s6899_s12] sm:$0x3] }
0x2aca   : > { %v3884_v13 = vrot.slane %v3875_v56, %v5934_v62  ;;  %v4855_v21 = vld [vmem:[%s6900_s13] sm:$0xff]   ;;  %v4857_v62 = vld [vmem:[%s6900_s13 + $0x8] sm:$0xff]  }
0x2acb   : > { %5066 = vtanh.f32 %v3668_v48  ;;  %v4437_v20 = vmul.f32 -1.442695, %v3668_v48 }
0x2acd   : > { %5068 = vpow2.f32 %v4437_v20 }
0x2ad5   : > { %v5067_v35 = vpop.eup %5066 }
0x2ad6   : > { %3681 = vrot.lane.b32.xlu0 %v5067_v35, %s7073_s1  ;;  %v4856_v35 = vld [vmem:[%s6900_s13 + $0x48] sm:$0xff]  }
0x2ad7   : > { %v5069_v9 = vpop.eup %5068 }
0x2ad8   : > { %v3672_v33 = vadd.f32 1.0, %v5069_v9 }
0x2ada   : > { %5070 = vrcp.f32 %v3672_v33  ;;  %v4858_v33 = vld [vmem:[%s6900_s13 + $0x50] sm:$0xff]  }
0x2ae4   : > { %v5071_v23 = vpop.eup %5070 }
0x2ae5   : > { %v3679_v37 = vmul.f32 %v5071_v23, %v3677_v30  ;;  %v4862_v30 = vld [vmem:[%s6900_s13 + $0x60] sm:$0xff]  }
0x2b48   : > { %v3682_v8 = vpop.permute.xlu0 %3681 }
0x2b49   : > { %v3684_v31 = vmul.f32 %v5071_v23, %v3682_v8  ;;  %v4860_v8 = vld [vmem:[%s6900_s13 + $0x58] sm:$0xff]  }
0x2b4b   : > { %3686 = vrot.lane.b32.xlu1 %v3684_v31, %s6968_s19  ;;  %v4861_v31 = vld [vmem:[%s6900_s13 + $0x18] sm:$0xff]  }
0x2bbd   : > { %v3687_v59 = vpop.permute.xlu1 %3686 }
0x2bbe   : > { %v3689_v58 = vadd.f32 %v3687_v59, %v3679_v37  ;;  %v4863_v37 = vld [vmem:[%s6900_s13 + $0x20] sm:$0xff]   ;;  %v4864_v59 = vld [vmem:[%s6900_s13 + $0x68] sm:$0xff]  }
0x2bc0   : > { %5072 = vtanh.f32 %v3689_v58  ;;  %v3763_v32 = vrot.slane %v3689_v58, 7  ;;  %v4865_v58 = vld [vmem:[%s6900_s13 + $0x28] sm:$0xff]  }
0x2bca   : > { %v5073_v14 = vpop.eup %5072 }
0x2bcb   : > { %3692 = vrot.lane.b32.xlu0 %v5073_v14, %s7073_s1  ;;  %v3880_v14 = vrot.slane %v3875_v56, %v5600_v41  ;;  %v4869_v41 = vld [vmem:[%s6900_s13 + $0x38] sm:$0xff]  }
0x2c3d   : > { %v3693_v2 = vpop.permute.xlu0 %3692 }
0x2c3e   : > { %v6641_v50 = vmul.f32 %v5071_v23, %v3693_v2  ;;  %v4859_v23 = vld [vmem:[%s6900_s13 + $0x10] sm:$0xff]  }
0x2c3f   : > { %v4867_v2 = vld [vmem:[%s6900_s13 + $0x30] sm:$0xff]  }
0x2c40   : > { %v3701_v52 = vpack.c.bf16 %v6641_v50, %v6641_v50 }
0x2c42   : > { %v3703_v12 = vshrl.u32 %v3701_v52, 16 }
0x2c44   : > { %v3705_v5 = vrot.slane %v3703_v12, 2  ;;  %v4868_v12 = vld [vmem:[%s6900_s13 + $0x78] sm:$0xff]  }
0x2c46   : > { %3706 = vrot.lane.b32.xlu1 %v3705_v5, %s6968_s19 }
0x2cb8   : > { %v3707_v46 = vpop.permute.xlu1 %3706 }
0x2cb9   : > { %4742 = vmatmul.mubr.msk.bf16.vlgmr.msra.gmra.mrb[32].mxu1 %vm709_vm2, %v3707_v46  ;;  %v4871_v46 = vld [vmem:[%s6902_s15 + $0x8] sm:$0xff]  }
0x2cba   : > { %3908 = vmatpush1.bf16.msra.mxu1 %v4848_v39  ;;  %3939 = vmatprep.mubr.bf16.mxu1 %v7071_v53 }
0x2cbb   : > { %3909 = vmatprep.subr.bf16.mxu1 %v4853_v11  ;;  %v4870_v11 = vld [vmem:[%s6902_s15] sm:$0xff]  }
0x2cbe   : > { %3910 = vmatpush1.bf16.msra.mxu1 %v4851_v0  ;;  %v4872_v0 = vld [vmem:[%s6902_s15 + $0x10] sm:$0xff]  }
0x2cbf   : > { %4753 = vmatprep.subr.bf16.mxu1 %v7068_v57 }
0x2cc1   : > { %4446 = vmatmul.mubr.msk.bf16.vlgmr.msra.gmra.mrb[36].mxu1 %vm709_vm2, %v7074_v1  ;;  %v4873_v1 = vld [vmem:[%s6902_s15 + $0x18] sm:$0xff]  }
0x2cc2   : > { %4769 = vmatprep.mubr.msk.bf16.mxu1 %vm5227_vm0, %v7068_v57  ;;  %4754 = vmatpush3.bf16.msra.mxu1 %v4870_v11  ;;  %vm7076_vm0 = vcmask 253952  }
0x2cc3   : > { %4755 = vmatprep.subr.bf16.mxu1 %v7068_v57 }
0x2cc6   : > { %4756 = vmatpush3.bf16.msra.mxu1 %v4871_v46 }
0x2cc7   : > { %4757 = vmatprep.subr.bf16.mxu1 %v7068_v57 }
0x2cca   : > { %4758 = vmatpush3.bf16.msra.mxu1 %v4872_v0 }
0x2ccb   : > { %4759 = vmatprep.subr.bf16.mxu1 %v7068_v57 }
0x2cce   : > { %4760 = vmatpush3.bf16.msra.mxu1 %v4873_v1 }
0x2ccf   : > { %4761 = vmatprep.subr.bf16.mxu1 %v7068_v57 }
0x2d8c   : > { %v3745_v22 = vpop.f32.mrb[32].mxu1 }
0x2d8d   : > { %v3752_v28 = vrot.slane %v3745_v22, 2  ;;  %v4743_v34 = vpop.f32.mrb[33].mxu1  ;;  %v4874_v22 = vld [vmem:[%s6902_s15 + $0x20] sm:$0xff]  }
0x2d8e   : > { %v3748_v63 = vpop.f32.mrb[34].mxu1  ;;  %4762 = vmatpush3.bf16.msra.mxu1 %v4874_v22  ;;  %v4876_v34 = vld [vmem:[%s6902_s15 + $0x30] sm:$0xff]  }
0x2d8f   : > { %v3754_v27 = vadd.f32 %v3752_v28, %v6554_v17  ;;  %v4744_v19 = vpop.f32.mrb[35].mxu1  ;;  %v4875_v28 = vld [vmem:[%s6902_s15 + $0x28] sm:$0xff]   ;;  %4763 = vmatprep.subr.bf16.mxu1 %v7068_v57  ;;  %v4877_v63 = vld [vmem:[%s6902_s15 + $0x38] sm:$0xff]  }
0x2d91   : > { %5074 = vtanh.f32 %v3754_v27  ;;  %v4439_v42 = vmul.f32 -1.442695, %v3754_v27 }
0x2d92   : > { %4764 = vmatpush3.bf16.msra.mxu1 %v4875_v28 }
0x2d93   : > { %5076 = vpow2.f32 %v4439_v42  ;;  %4765 = vmatprep.subr.bf16.mxu1 %v7068_v57 }
0x2d94   : > { %v3941_v16 = vpop.f32.mrb[36].mxu1 }
0x2d95   : > { %v3943_v53 = vpop.f32.mrb[37].mxu1  ;;  %v3942_v52 = vadd.f32 %v3941_v16, %v3880_v14 }
0x2d96   : > { %v3945_v6 = vpop.f32.mrb[38].mxu1  ;;  %v3944_v40 = vadd.f32 %v3943_v53, %v3884_v13  ;;  %4766 = vmatpush3.bf16.msra.mxu1 %v4876_v34 }
0x2d97   : > { %v3946_v55 = vpop.f32.mrb[39].mxu1  ;;  %v3948_v5 = vmax.f32 %v3942_v52, 0.0  ;;  %4767 = vmatprep.subr.bf16.mxu1 %v7068_v57 }
0x2d98   : > { %v3949_v48 = vmax.f32 %v3944_v40, 0.0 }
0x2d99   : > { %v3950_v39 = vpack.c.bf16 %v3948_v5, %v3948_v5 }
0x2d9a   : > { %v3951_v20 = vpack.c.bf16 %v3949_v48, %v3949_v48  ;;  %4768 = vmatpush3.bf16.msra.mxu1 %v4877_v63 }
0x2d9b   : > { %v5075_v61 = vpop.eup %5074 }
0x2d9c   : > { %3767 = vrot.lane.b32.xlu0 %v5075_v61, %s7073_s1 }
0x2d9d   : > { %v5077_v45 = vpop.eup %5076 }
0x2d9e   : > { %v3758_v25 = vadd.f32 1.0, %v5077_v45  ;;  %v4447_v45 = vld [vmem:[%s6901_s14] ss:$0 sm:$0xff] }
0x2da0   : > { %5078 = vrcp.f32 %v3758_v25 }
0x2daa   : > { %v5079_v60 = vpop.eup %5078 }
0x2dab   : > { %v3765_v47 = vmul.f32 %v5079_v60, %v3763_v32 }
0x2e0e   : > { %v3768_v18 = vpop.permute.xlu0 %3767 }
0x2e0f   : > { %v3770_v38 = vmul.f32 %v5079_v60, %v3768_v18 }
0x2e11   : > { %3772 = vrot.lane.b32.xlu1 %v3770_v38, %s6968_s19 }
0x2e83   : > { %v3773_v10 = vpop.permute.xlu1 %3772 }
0x2e84   : > { %v6665_v7 = vadd.f32 %v3773_v10, %v3765_v47 }
0x2e86   : > { %5080 = vtanh.f32 %v6665_v7 }
0x2e90   : > { %v5081_v44 = vpop.eup %5080 }
0x2e91   : > { %3778 = vrot.lane.b32.xlu0 %v5081_v44, %s7073_s1 }
0x2f03   : > { %v3779_v24 = vpop.permute.xlu0 %3778 }
0x2f04   : > { %v6672_v49 = vmul.f32 %v5079_v60, %v3779_v24 }
0x2f06   : > { %v3787_v3 = vpack.c.bf16 %v6672_v49, %v6672_v49 }
0x2f08   : > { %v3789_v26 = vrot.slane %v3787_v3, 3 }
0x2f0a   : > { %3790 = vrot.lane.b32.xlu1 %v3789_v26, %s6968_s19  ;;  %v3847_v26 = vrot.slane %v6665_v7, 7 }
0x2f7c   : > { %v3791_v9 = vpop.permute.xlu1 %3790 }
0x2f7d   : > { %4750 = vmatmul.mubr.msk.bf16.vlgmr.msra.gmra.mrb[40].mxu0 %vm709_vm2, %v3791_v9  ;;  %vm7077_vm2 = vcmask 256002  }
0x2f7e   : > { %4547 = vmatpush3.bf16.msra.mxu0 %v4855_v21  ;;  %4119 = vmatprep.mubr.bf16.mxu0 %v3951_v20 }
0x2f7f   : > { %4548 = vmatprep.subr.bf16.mxu0 %v4856_v35 }
0x2f82   : > { %4549 = vmatpush3.bf16.msra.mxu0 %v4857_v62 }
0x2f83   : > { %4550 = vmatprep.subr.bf16.mxu0 %v4858_v33 }
0x2f86   : > { %4551 = vmatpush3.bf16.msra.mxu0 %v4859_v23 }
0x2f87   : > { %4552 = vmatprep.subr.bf16.mxu0 %v4860_v8 }
0x2f8a   : > { %4553 = vmatpush3.bf16.msra.mxu0 %v4861_v31 }
0x2f8b   : > { %4554 = vmatprep.subr.bf16.mxu0 %v4862_v30 }
0x2f8e   : > { %4555 = vmatpush3.bf16.msra.mxu0 %v4863_v37 }
0x2f8f   : > { %4556 = vmatprep.subr.bf16.mxu0 %v4864_v59 }
0x2f92   : > { %4557 = vmatpush3.bf16.msra.mxu0 %v4865_v58 }
0x2f93   : > { %4558 = vmatprep.subr.bf16.mxu0 %v4866_v4 }
0x2f96   : > { %4559 = vmatpush3.bf16.msra.mxu0 %v4867_v2 }
0x2f97   : > { %4560 = vmatprep.subr.bf16.mxu0 %v4868_v12 }
0x2f9a   : > { %4561 = vmatpush3.bf16.msra.mxu0 %v4869_v41 }
0x2f9d   : > { %4120 = vmatmul.mubr.bf16.vlgmr.msra.gmra.mrb[44].mxu0 %v3950_v39 }
0x3050   : > { %v3829_v27 = vpop.f32.mrb[40].mxu0 }
0x3051   : > { %v3836_v19 = vrot.slane %v3829_v27, 1  ;;  %v4751_v16 = vpop.f32.mrb[41].mxu0 }
0x3052   : > { %v3832_v53 = vpop.f32.mrb[42].mxu0 }
0x3053   : > { %v3838_v6 = vadd.f32 %v3836_v19, %v6554_v17  ;;  %v4752_v55 = vpop.f32.mrb[43].mxu0 }
0x3055   : > { %5082 = vtanh.f32 %v3838_v6  ;;  %v4441_v17 = vmul.f32 -1.442695, %v3838_v6 }
0x3057   : > { %5084 = vpow2.f32 %v4441_v17 }
0x305f   : > { %v5083_v61 = vpop.eup %5082 }
0x3060   : > { %3851 = vrot.lane.b32.xlu0 %v5083_v61, %s7073_s1 }
0x3061   : > { %v5085_v10 = vpop.eup %5084 }
0x3062   : > { %v3842_v29 = vadd.f32 1.0, %v5085_v10 }
0x3064   : > { %5086 = vrcp.f32 %v3842_v29 }
0x306e   : > { %v6764_v44 = vpop.eup %5086 }
0x306f   : > { %v3849_v56 = vmul.f32 %v6764_v44, %v3847_v26 }
0x3070   : > { %v4562_v42 = vpop.f32.mrb[44].mxu0 }
0x3071   : > { %v4563_v25 = vpop.f32.mrb[45].mxu0 }
0x3072   : > { %v4564_v60 = vadd.f32 %v4563_v25, %v4562_v42  ;;  %v4565_v57 = vpop.f32.mrb[46].mxu0 }
0x3073   : > { %v4566_v18 = vpop.f32.mrb[47].mxu0 }
0x3074   : > { %v4122_v38 = vadd.f32 %v4564_v60, %v4447_v45 }
0x3076   : > { %v4127_v32 = vmax.f32 %v4122_v38, 0.0 }
0x3078   : > { %v4128_v47 = vpack.c.bf16 %v4127_v32, %v4127_v32 }
0x307a   : > { %4770 = vmatmul.mubr.bf16.vlgmr.msra.gmra.mrb[40].mxu1 %v4128_v47 }
0x30d2   : > { %v3852_v24 = vpop.permute.xlu0 %3851 }
0x30d3   : > { %v3854_v3 = vmul.f32 %v6764_v44, %v3852_v24 }
0x30d5   : > { %3856 = vrot.lane.b32.xlu1 %v3854_v3, %s7075_s22 }
0x30d9   : > { %3275 = vrot.lane.b32.xlu1 %v6560_v15, %s7075_s22 }
0x30dd   : > { %3443 = vrot.lane.b32.xlu1 %v6592_v54, %s7075_s22  ;;  %v4464_v54 = vld [vmem:[%s6903_s16] ss:$0 sm:$0xff] }
0x30e1   : > { %3613 = vrot.lane.b32.xlu1 %v6623_v43, %s7075_s22 }
0x30e5   : > { %3783 = vrot.lane.b32.xlu1 %v6672_v49, %s7075_s22 }
0x3147   : > { %v3857_v13 = vpop.permute.xlu1 %3856 }
0x3148   : > { %v3859_v40 = vadd.f32 %v3857_v13, %v3849_v56 }
0x314a   : > { %5088 = vtanh.f32 %v3859_v40 }
0x314b   : > { %v3276_v15 = vpop.permute.xlu1 %3275 }
0x314c   : > { %3278 = vst.msk [vmem:[%s6785_s5] sm:$0x1] %vm7076_vm0, %v3276_v15 }
0x314d   : > { %v4234_v43 = vpop.f32.mrb[40].mxu1 }
0x314e   : > { %v4235_v7 = vadd.f32 %v4464_v54, %v4234_v43  ;;  %v4771_v49 = vpop.f32.mrb[41].mxu1 }
0x314f   : > { %v4237_v48 = vpop.f32.mrb[42].mxu1  ;;  %v3444_v21 = vpop.permute.xlu1 %3443 }
0x3150   : > { %v4240_v35 = vmax.f32 %v4235_v7, 0.0  ;;  %3446 = vst.msk [vmem:[%s6785_s5] sm:$0x4] %vm7077_vm2, %v3444_v21  ;;  %v4772_v20 = vpop.f32.mrb[43].mxu1 }
0x3152   : > { %4242 = vst.msk [vmem:[%s595_s24] sm:$0xff] %vm4241_vm1, %v4240_v35 }
0x3153   : > { %v3614_v9 = vpop.permute.xlu1 %3613 }
0x3154   : > { %v5089_v62 = vpop.eup %5088  ;;  %3616 = vst.msk [vmem:[%s6785_s5] sm:$0x10] %vm7078_vm3, %v3614_v9 }
0x3155   : > { %3862 = vrot.lane.b32.xlu0 %v5089_v62, %s7073_s1  ;;  %s4275_s1 = sshll.u32 %s595_s24, 4  ;;  %s4276_s1 = int_to_ptr.vmem [resolvable:$true] %s4275_s1 }
0x3156   : > { %s5130_s4 = scalar_lea.vmem %s4276_s1, 128  ;;  %p5137_p1 = scmp.lt.s32.totalorder %s4276_s1, %s5135_s7 }
0x3157   : > { %v3784_v33 = vpop.permute.xlu1 %3783  ;;  %p5131_p12 = scmp.ne.s32.totalorder %s4276_s1, %s5130_s4  ;;  %p5138_p2 = scmp.lt.s32.totalorder %s5136_s8, %s5130_s4 }
0x3158   : > { %3786 = vst.msk [vmem:[%s6785_s5] sm:$0x40] %vm7079_vm4, %v3784_v33 }
0x3159   : > { %3358 = vrot.lane.b32.xlu0 %v6576_v36, %s7075_s22  ;;  %p5132_p13 = pnand %p5131_p12, %p5367_p5  ;;  %p5139_p3 = por %p5138_p2, %p5137_p1 }
0x315b   : > { %p5133_p0 = pneg %p5132_p13 }
0x315d   : > { %3527 = vrot.lane.b32.xlu0 %v6608_v51, %s7075_s22  ;;  %p5140_p4 = pnand %p5139_p3, %p5133_p0 }
0x3161   : > { %3697 = vrot.lane.b32.xlu0 %v6641_v50, %s7075_s22 }
0x3162   : > { %5143 = shalt.err (!%p5140_p4)
}
0x3163   : > { %s5144_s24 = scalar_lea.hbm %s6808_s20, 128  ;;  %s5148_s6 = scalar_lea.hbm %s6905_s18, 256 }
0x3164   : > { %p5145_p7 = scmp.ne.s32.totalorder %s6808_s20, %s5144_s24  ;;  %p5149_p10 = scmp.lt.u32.totalorder %s6808_s20, %s6905_s18 }
0x3165   : > { %p5150_p11 = scmp.lt.u32.totalorder %s5148_s6, %s5144_s24  ;;  %p5152_p13 = scmp.lt.u32.totalorder %s5144_s24, %s6808_s20 }
0x3166   : > { %p5146_p8 = pnand %p5145_p7, %p5367_p5 }
0x3167   : > { %p5151_p12 = por %p5150_p11, %p5149_p10 }
0x3168   : > { %p5147_p9 = pneg %p5146_p8 }
0x3169   : > { %p5153_p0 = por %p5152_p13, %p5151_p12 }
0x316b   : > { %p5154_p1 = pnand %p5153_p0, %p5147_p9 }
0x316d   : > { %5157 = shalt.err (!%p5154_p1)
}
0x316e   : > { %4779 = dma.vmem_to_hbm [thread:$0]  (%p5367_p5), %s4276_s1, 128, %s6808_s20, %s4249_s21   ;;  %vm7080_vm5 = vcmask 254977   ;;  %vm7081_vm6 = vcmask 257027   ;;  %vm7082_vm7 = vcmask 259077   ;;  %vm7084_vm8 = vcmask 261127  }
0x316f   : > { %s4262_s8 = sshll.u32 %s6785_s5, 4  ;;  %s7083_s25 = sshll.u32 %s5350_s0, 7  ;;  %s6844_s8 = int_to_ptr.vmem [resolvable:$true] %s4262_s8 }
0x3170   : > { %s6842_s20 = scalar_lea.hbm %s6904_s17, %s7083_s25  ;;  %s5158_s1 = scalar_lea.vmem %s6844_s8, 128 }
0x3171   : > { %p5159_p2 = scmp.ne.s32.totalorder %s6844_s8, %s5158_s1  ;;  %s5233_s0 = smov [#allocation3]  }
0x3172   : > { %s5162_s21 = sshll.u32 %s5233_s0, 4  ;;  %s5163_s21 = int_to_ptr.vmem [resolvable:$false] %s5162_s21 }
0x3173   : > { %p5160_p3 = pnand %p5159_p2, %p5367_p5  ;;  %s5164_s19 = scalar_lea.vmem %s5163_s21, 256 }
0x3174   : > { %p5165_p7 = scmp.lt.s32.totalorder %s6844_s8, %s5163_s21  ;;  %p5166_p8 = scmp.lt.s32.totalorder %s5164_s19, %s5158_s1 }
0x3175   : > { %p5161_p4 = pneg %p5160_p3 }
0x3176   : > { %p5167_p9 = por %p5166_p8, %p5165_p7 }
0x3178   : > { %p5168_p10 = pnand %p5167_p9, %p5161_p4 }
0x31c7   : > { %v3863_v36 = vpop.permute.xlu0 %3862 }
0x31c8   : > { %v3865_v51 = vmul.f32 %v6764_v44, %v3863_v36 }
0x31ca   : > { %3867 = vrot.lane.b32.xlu0 %v3865_v51, %s7075_s22  ;;  %s4244_s22 = scalar_lea.sflag [#allocation4], %s6777_s29 }
0x31cb   : > { %v3359_v50 = vpop.permute.xlu0 %3358 }
0x31cc   : > { %3361 = vst.msk [vmem:[%s6785_s5] sm:$0x2] %vm7080_vm5, %v3359_v50 }
0x31cf   : > { %v3528_v23 = vpop.permute.xlu0 %3527 }
0x31d0   : > { %3530 = vst.msk [vmem:[%s6785_s5] sm:$0x8] %vm7081_vm6, %v3528_v23 }
0x31d3   : > { %v3698_v8 = vpop.permute.xlu0 %3697 }
0x31d4   : > { %3700 = vst.msk [vmem:[%s6785_s5] sm:$0x20] %vm7082_vm7, %v3698_v8 }
0x323c   : > { %v3868_v31 = vpop.permute.xlu0 %3867 }
0x323d   : > { %3870 = vst.msk [vmem:[%s6785_s5] sm:$0x80] %vm7084_vm8, %v3868_v31 }
0x323e   : > { %5171 = shalt.err (!%p5168_p10)
}
0x323f   : > { %s5172_s29 = scalar_lea.hbm %s6842_s20, 128  ;;  %s5176_s6 = scalar_lea.hbm %s6904_s17, 256 }
0x3240   : > { %p5173_p11 = scmp.ne.s32.totalorder %s6842_s20, %s5172_s29  ;;  %p5177_p0 = scmp.lt.u32.totalorder %s6842_s20, %s6904_s17 }
0x3241   : > { %p5178_p1 = scmp.lt.u32.totalorder %s5176_s6, %s5172_s29  ;;  %p5180_p3 = scmp.lt.u32.totalorder %s5172_s29, %s6842_s20 }
0x3242   : > { %p5174_p12 = pnand %p5173_p11, %p5367_p5 }
0x3243   : > { %p5179_p2 = por %p5178_p1, %p5177_p0 }
0x3244   : > { %p5175_p13 = pneg %p5174_p12 }
0x3245   : > { %p5181_p4 = por %p5180_p3, %p5179_p2 }
0x3247   : > { %p5182_p7 = pnand %p5181_p4, %p5175_p13 }
0x3249   : > { %5185 = shalt.err (!%p5182_p7)
}
0x324a   : > { %4778 = dma.vmem_to_hbm [thread:$0]  (%p5367_p5), %s6844_s8, 128, %s6842_s20, %s4244_s22  }
0x324b PF: > { %p4789_p8 = scmp.ge.s32.totalorder %s5224_s30, 2  ;;  %s4287_s4 = sand.u32 1, %s5212_s27  }
0x324c   : > { %s4288_s24 = scalar_lea.sflag [#allocation4], %s4287_s4 }
0x324d   : > { %p4783_p9 = pnand %p4789_p8, %p5371_p6 }
0x324f   : > { %5203 = dma.done.wait (!%p4783_p9), %s4288_s24, 128  }
0x3250   : > { %5205 = vsyncadd (!%p4783_p9), %s4288_s24, 4294967168  ;;  %s4297_s1 = scalar_lea.sflag [#allocation6], %s4287_s4 }
0x3251   : > { %5207 = dma.done.wait (!%p4783_p9), %s4297_s1, 128  }
0x3252   : > { %5209 = vsyncadd (!%p4783_p9), %s4297_s1, 4294967168  ;;  %s7085_s30 = sld [smem:[#allocation10_spill]]  ;;  %s7086_s2 = sld [smem:[#allocation9_spill]] }
0x3253   : > { %s7087_s29 = sld [smem:[#allocation11_spill]]  ;;  %s7088_s27 = smov %s5216_s28 }
0x3258   : > { %p32_p5 = scmp.ge.s32.totalorder %s7085_s30, 4   ;;  %s7089_s28 = smov %s7086_s2 }
0x325a   :  { %34 = sbr.rel (!%p32_p5) target bundleno = 15 (0xf), region = 143 }
0x3261   :  { %4302 = vsyncpa [#allocation4], 1 }
0x3262   :  { %4304 = vsyncpa [#allocation4 + $0x1], 1 }
0x3263   :  { %4305 = vsyncpa [#allocation6], 1 }
0x3264   :  { %4307 = vsyncpa [#allocation6 + $0x1], 1 }

</bundles_post_ra>
